<compile_context>
chip_gen: v7x
topology: tpu7x:2x2x1
jax: 0.10.0
libtpu: 0.0.40
codegen_flags: <defaults>
</compile_context>

<pallas_src>
import math
import functools

import jax
import jax.numpy as jnp
from jax import lax
from jax.experimental import pallas as pl
from jax.experimental.pallas import tpu as pltpu


LANE = 128          # lane-dense padded vocab width
NEG_INF = -1e30     # finite pad-lane bias: argmax never selects a pad lane,
                    # and masked-row blend (logits * 0.0) stays NaN-free


# ------------------------------ fused kernel ------------------------------- #

def _fused_harmony_kernel(
    song_ref, mask_ref,                              # SMEM scalar prefetch (T,)
    w0_ref, b0_ref,                                  # (Vp+H,4H) bf16, (1,4H) f32
    w1_ref, b1_ref,                                  # (2H,  4H) bf16, (1,4H) f32
    wfc_ref, bfc_ref,                                # (H,   Vp) bf16, (1,Vp) f32
    out_ref,                                         # (T, Vp)  f32
    state_ref,                                       # (4, H)   f32 [h0,h1,c0,c1]
):
    T, Vp = out_ref.shape
    H = state_ref.shape[-1]

    lane_iota = lax.broadcasted_iota(jnp.int32, (1, Vp), 1)
    lane_iota_f = lane_iota.astype(jnp.float32)

    def one_hot_row(tok):
        # tok is a scalar int32 read from SMEM.
        return (lane_iota == tok).astype(jnp.float32)

    def lstm_cell(xh, c, w_ref_, b_ref_):
        # merged input+recurrent matmul: (1, in+H) @ (in+H, 4H); bf16 MXU,
        # f32 accumulation.  Gate order (reordered at init): [i, f, o, g].
        gates = (jnp.dot(xh.astype(w_ref_.dtype), w_ref_[...],
                         preferred_element_type=jnp.float32)
                 + b_ref_[...])
        ifo = jax.nn.sigmoid(gates[:, 0:3 * H])        # one EUP dispatch
        g = jnp.tanh(gates[:, 3 * H:4 * H])
        i_g = ifo[:, 0 * H:1 * H]
        f_g = ifo[:, 1 * H:2 * H]
        o_g = ifo[:, 2 * H:3 * H]
        c_new = f_g * c + i_g * g
        h_new = o_g * jnp.tanh(c_new)
        return h_new, c_new

    # t = 0: start row is a one-hot of song[0]; it is also the first feedback.
    feed_oh = one_hot_row(song_ref[0])                 # (1, Vp) f32, 0/1
    rows = [feed_oh]

    h0 = jnp.zeros((1, H), jnp.float32)
    c0 = jnp.zeros((1, H), jnp.float32)
    h1 = jnp.zeros((1, H), jnp.float32)
    c1 = jnp.zeros((1, H), jnp.float32)

    # Statically unrolled recurrence (T is small and static).
    for t in range(1, T):
        # Layer 0: embedding is folded into w0, so the LHS is the one-hot
        # feedback concatenated with h0 (exact: one-hot rows of emb@Wih0^T).
        xh0 = jnp.concatenate([feed_oh, h0], axis=-1)          # (1, Vp+H)
        h0, c0 = lstm_cell(xh0, c0, w0_ref, b0_ref)

        xh1 = jnp.concatenate([h0, h1], axis=-1)               # (1, 2H)
        h1, c1 = lstm_cell(xh1, c1, w1_ref, b1_ref)

        # dropout == identity (eval); FC head (pad lanes forced to -1e30)
        logits = (jnp.dot(h1.astype(wfc_ref.dtype), wfc_ref[...],
                          preferred_element_type=jnp.float32)
                  + bfc_ref[...])                               # (1, Vp)

        # first-index argmax emitted directly as a one-hot
        # (torch.argmax tie-break = lowest index)
        row_max = jnp.max(logits, axis=-1, keepdims=True)       # (1,1)
        cand = jnp.where(logits == row_max, lane_iota_f, jnp.float32(Vp))
        pred_oh = (cand == jnp.min(cand, axis=-1, keepdims=True)
                   ).astype(jnp.float32)                         # (1, Vp) 0/1

        tok_oh = one_hot_row(song_ref[t])                        # (1, Vp)
        w_f = mask_ref[t].astype(jnp.float32)                    # 0.0 / 1.0

        # output row: clamped one-hot if masked, else the logits (exact blend
        # since w_f is exactly 0 or 1 and pad logits are finite -1e30)
        rows.append(tok_oh * w_f + logits * (1.0 - w_f))

        # next-step feedback one-hot: song token if masked, else argmax pick
        feed_oh = tok_oh * w_f + pred_oh * (1.0 - w_f)

    # single unmasked (T, Vp) tile store + single (4, H) state store
    out_ref[...] = jnp.concatenate(rows, axis=0)
    state_ref[...] = jnp.concatenate([h0, h1, c0, c1], axis=0)


# ------------------------------ host wrapper -------------------------------- #

@functools.partial(jax.jit, static_argnames=("vocab_size",))
def model_forward(song, mask, params, *, vocab_size):
    """song: (T,) int token ids, mask: (T,) bool.

    Returns (output, (h, c)):
      output: (T, vocab_size) f32  — matches torch output.view(-1, vocab_size)
      h, c:   (2, 1, H) f32        — final hidden/cell state per LSTM layer
    """
    T = song.shape[0]
    H = params["b0"].shape[-1] // 4
    Vp = params["bfc"].shape[-1]

    song_i = song.astype(jnp.int32)
    mask_i = mask.astype(jnp.int32)

    weights = (params["w0"], params["b0"],
               params["w1"], params["b1"],
               params["wfc"], params["bfc"])

    def whole(shape):
        return pl.BlockSpec(shape, lambda i, s, m: (0,) * len(shape))

    out_pad, state = pl.pallas_call(
        _fused_harmony_kernel,
        grid_spec=pltpu.PrefetchScalarGridSpec(
            num_scalar_prefetch=2,
            grid=(1,),
            in_specs=[whole(a.shape) for a in weights],
            out_specs=(
                pl.BlockSpec((T, Vp), lambda i, s, m: (0, 0)),
                pl.BlockSpec((4, H), lambda i, s, m: (0, 0)),
            ),
        ),
        out_shape=(
            jax.ShapeDtypeStruct((T, Vp), jnp.float32),
            jax.ShapeDtypeStruct((4, H), jnp.float32),
        ),
        compiler_params=pltpu.CompilerParams(
            dimension_semantics=("arbitrary",)),
    )(song_i, mask_i, *weights)

    output = out_pad[:, :vocab_size]
    h_final = state[0:2].reshape(2, 1, H)
    c_final = state[2:4].reshape(2, 1, H)
    return output, (h_final, c_final)


# ------------------------------- param init --------------------------------- #

def init_params(key, embedding_dim, hidden_dim, vocab_size, vpad=LANE):
    """Random params in the packed layout the kernel expects.

    Layout transforms done once at init (zero runtime cost):
      * embedding folded into layer-0 input weights: emb @ Wih0^T  (Vp, 4H)
      * gate columns permuted from PyTorch [i,f,g,o] to [i,f,o,g]
      * FC head / biases padded lane-dense to vpad (pad bias = -1e30)
    """
    E, H, V = embedding_dim, hidden_dim, vocab_size
    assert V <= vpad
    ks = jax.random.split(key, 11)
    stdv = 1.0 / math.sqrt(H)

    def u(k, shape):
        return jax.random.uniform(k, shape, jnp.float32, -stdv, stdv)

    # PyTorch layout: weight_ih (4H, in), weight_hh (4H, H), biases (4H,)
    wih0, whh0 = u(ks[0], (4 * H, E)), u(ks[1], (4 * H, H))
    b0 = u(ks[2], (4 * H,)) + u(ks[3], (4 * H,))
    wih1, whh1 = u(ks[4], (4 * H, H)), u(ks[5], (4 * H, H))
    b1 = u(ks[6], (4 * H,)) + u(ks[7], (4 * H,))
    wfc, bfc = u(ks[8], (V, H)), u(ks[9], (V,))
    emb = jax.random.normal(ks[10], (V, E), jnp.float32)

    def gate_perm(a):
        # permute the trailing 4H axis: [i, f, g, o] -> [i, f, o, g]
        return jnp.concatenate(
            [a[..., 0:H], a[..., H:2 * H], a[..., 3 * H:4 * H],
             a[..., 2 * H:3 * H]], axis=-1)

    # fold embedding into layer-0 input weights (exact in f32, cast bf16 after)
    embw0 = emb @ wih0.T                                     # (V, 4H) f32
    embw0_p = jnp.zeros((vpad, 4 * H), jnp.float32).at[:V].set(embw0)

    w0 = gate_perm(jnp.concatenate([embw0_p, whh0.T], axis=0))   # (Vp+H, 4H)
    w1 = gate_perm(jnp.concatenate([wih1.T, whh1.T], axis=0))    # (2H,   4H)
    b0p = gate_perm(b0.reshape(1, 4 * H))
    b1p = gate_perm(b1.reshape(1, 4 * H))

    # lane-dense padded FC head
    wfc_p = jnp.zeros((H, vpad), jnp.float32).at[:, :V].set(wfc.T)
    bfc_p = jnp.full((1, vpad), NEG_INF, jnp.float32).at[0, :V].set(bfc)

    return {
        "w0": w0.astype(jnp.bfloat16),                  # bf16 (Vp+H, 4H)
        "b0": b0p,                                      # f32  (1, 4H)
        "w1": w1.astype(jnp.bfloat16),                  # bf16 (2H, 4H)
        "b1": b1p,                                      # f32  (1, 4H)
        "wfc": wfc_p.astype(jnp.bfloat16),              # bf16 (H, Vp)
        "bfc": bfc_p,                                   # f32  (1, Vp), pads -1e30
    }


# ---------------------------------- main ------------------------------------ #

if __name__ == "__main__":
    EMBEDDING_DIM = 128
    HIDDEN_DIM = 128     # small-shape demo (module default is 512; any mult of 128 works)
    VOCAB_SIZE = 111
    SEQ_LEN = 8

    key = jax.random.PRNGKey(0)
    k_params, k_song, k_mask = jax.random.split(key, 3)

    params = init_params(k_params, EMBEDDING_DIM, HIDDEN_DIM, VOCAB_SIZE)
    song = jax.random.randint(k_song, (SEQ_LEN,), 0, VOCAB_SIZE, jnp.int32)
    mask = jax.random.bernoulli(k_mask, 0.5, (SEQ_LEN,))

    output, (h_final, c_final) = model_forward(
        song, mask, params, vocab_size=VOCAB_SIZE)
    jax.block_until_ready((output, h_final, c_final))

    assert output.shape == (SEQ_LEN, VOCAB_SIZE)
    assert h_final.shape == (2, 1, HIDDEN_DIM)
    assert c_final.shape == (2, 1, HIDDEN_DIM)
    assert bool(jnp.isfinite(output).all())
    assert bool(jnp.isfinite(h_final).all()) and bool(jnp.isfinite(c_final).all())
    # masked rows must be exact one-hots of the song token
    mask_np = jax.device_get(mask)
    song_np = jax.device_get(song)
    out_np = jax.device_get(output)
    for t in range(1, SEQ_LEN):
        if bool(mask_np[t]):
            assert float(out_np[t, int(song_np[t])]) == 1.0
            assert float(abs(out_np[t]).sum()) == 1.0
    print("KERNEL_OK")
</pallas_src>

<mosaic_0001>
module attributes {stable_mosaic.version = 11 : i64} {
  func.func @_fused_harmony_kernel(%arg0: i32, %arg1: memref<8xi32, #tpu.memory_space<smem>>, %arg2: memref<8xi32, #tpu.memory_space<smem>>, %arg3: memref<256x512xbf16, #tpu.memory_space<vmem>>, %arg4: memref<1x512xf32, #tpu.memory_space<vmem>>, %arg5: memref<256x512xbf16, #tpu.memory_space<vmem>>, %arg6: memref<1x512xf32, #tpu.memory_space<vmem>>, %arg7: memref<128x128xbf16, #tpu.memory_space<vmem>>, %arg8: memref<1x128xf32, #tpu.memory_space<vmem>>, %arg9: memref<8x128xf32, #tpu.memory_space<vmem>>, %arg10: memref<4x128xf32, #tpu.memory_space<vmem>>) attributes {dimension_semantics = [#tpu.dimension_semantics<arbitrary>], iteration_bounds = array<i64: 1>, scalar_prefetch = 2 : i64, scratch_operands = 0 : i64, tpu.core_type = #tpu.core_type<tc>, window_params = [{pipeline_mode = #tpu.pipeline_mode<synchronous>, transform_indices = @transform_0, window_bounds = array<i64: 256, 512>}, {pipeline_mode = #tpu.pipeline_mode<synchronous>, transform_indices = @transform_1, window_bounds = array<i64: 1, 512>}, {pipeline_mode = #tpu.pipeline_mode<synchronous>, transform_indices = @transform_2, window_bounds = array<i64: 256, 512>}, {pipeline_mode = #tpu.pipeline_mode<synchronous>, transform_indices = @transform_3, window_bounds = array<i64: 1, 512>}, {pipeline_mode = #tpu.pipeline_mode<synchronous>, transform_indices = @transform_4, window_bounds = array<i64: 128, 128>}, {pipeline_mode = #tpu.pipeline_mode<synchronous>, transform_indices = @transform_5, window_bounds = array<i64: 1, 128>}, {pipeline_mode = #tpu.pipeline_mode<synchronous>, transform_indices = @transform_6, window_bounds = array<i64: 8, 128>}, {pipeline_mode = #tpu.pipeline_mode<synchronous>, transform_indices = @transform_7, window_bounds = array<i64: 4, 128>}]} {
    %0 = tpu.iota {dimensions = array<i32: 1>} : vector<1x128xi32>
    %1 = arith.sitofp %0 : vector<1x128xi32> to vector<1x128xf32>
    %c0 = arith.constant 0 : index
    %2 = memref.load %arg1[%c0] : memref<8xi32, #tpu.memory_space<smem>>
    %3 = vector.broadcast %2 : i32 to vector<1x128xi32>
    %4 = arith.cmpi eq, %0, %3 : vector<1x128xi32>
    %5 = arith.extui %4 : vector<1x128xi1> to vector<1x128xi32>
    %6 = arith.sitofp %5 : vector<1x128xi32> to vector<1x128xf32>
    %cst = arith.constant 0.000000e+00 : f32
    %7 = vector.broadcast %cst : f32 to vector<1x128xf32>
    %cst_0 = arith.constant 0.000000e+00 : f32
    %8 = vector.broadcast %cst_0 : f32 to vector<1x128xf32>
    %cst_1 = arith.constant 0.000000e+00 : f32
    %9 = vector.broadcast %cst_1 : f32 to vector<1x128xf32>
    %cst_2 = arith.constant 0.000000e+00 : f32
    %10 = vector.broadcast %cst_2 : f32 to vector<1x128xf32>
    %11 = tpu.concatenate %6, %7 in 1 : vector<1x128xf32>, vector<1x128xf32> -> vector<1x256xf32>
    %12 = arith.truncf %11 : vector<1x256xf32> to vector<1x256xbf16>
    %c0_3 = arith.constant 0 : index
    %c0_4 = arith.constant 0 : index
    %13 = vector.load %arg3[%c0_3, %c0_4] : memref<256x512xbf16, #tpu.memory_space<vmem>>, vector<256x512xbf16>
    %cst_5 = arith.constant dense<0.000000e+00> : vector<1x512xf32>
    %14 = tpu.matmul %12, %13, %cst_5 {dimension_numbers = #tpu.dot_dimension_numbers<[1], [0], [0], [1], [0, 0, 1, 1], [], []>} : vector<1x256xbf16>, vector<256x512xbf16>, vector<1x512xf32> -> vector<1x512xf32>
    %c0_6 = arith.constant 0 : index
    %c0_7 = arith.constant 0 : index
    %15 = vector.load %arg4[%c0_6, %c0_7] : memref<1x512xf32, #tpu.memory_space<vmem>>, vector<1x512xf32>
    %16 = arith.addf %14, %15 : vector<1x512xf32>
    %17 = vector.extract_strided_slice %16 {offsets = [0, 0], sizes = [1, 384], strides = [1, 1]} : vector<1x512xf32> to vector<1x384xf32>
    %18 = arith.negf %17 : vector<1x384xf32>
    %19 = math.exp %18 : vector<1x384xf32>
    %cst_8 = arith.constant 1.000000e+00 : f32
    %20 = vector.broadcast %cst_8 : f32 to vector<1x384xf32>
    %21 = arith.addf %20, %19 : vector<1x384xf32>
    %22 = arith.divf %20, %21 : vector<1x384xf32>
    %23 = vector.extract_strided_slice %16 {offsets = [0, 384], sizes = [1, 128], strides = [1, 1]} : vector<1x512xf32> to vector<1x128xf32>
    %24 = math.tanh %23 : vector<1x128xf32>
    %25 = vector.extract_strided_slice %22 {offsets = [0, 0], sizes = [1, 128], strides = [1, 1]} : vector<1x384xf32> to vector<1x128xf32>
    %26 = vector.extract_strided_slice %22 {offsets = [0, 128], sizes = [1, 128], strides = [1, 1]} : vector<1x384xf32> to vector<1x128xf32>
    %27 = vector.extract_strided_slice %22 {offsets = [0, 256], sizes = [1, 128], strides = [1, 1]} : vector<1x384xf32> to vector<1x128xf32>
    %28 = arith.mulf %26, %8 : vector<1x128xf32>
    %29 = arith.mulf %25, %24 : vector<1x128xf32>
    %30 = arith.addf %28, %29 : vector<1x128xf32>
    %31 = math.tanh %30 : vector<1x128xf32>
    %32 = arith.mulf %27, %31 : vector<1x128xf32>
    %33 = tpu.concatenate %32, %9 in 1 : vector<1x128xf32>, vector<1x128xf32> -> vector<1x256xf32>
    %34 = arith.truncf %33 : vector<1x256xf32> to vector<1x256xbf16>
    %c0_9 = arith.constant 0 : index
    %c0_10 = arith.constant 0 : index
    %35 = vector.load %arg5[%c0_9, %c0_10] : memref<256x512xbf16, #tpu.memory_space<vmem>>, vector<256x512xbf16>
    %cst_11 = arith.constant dense<0.000000e+00> : vector<1x512xf32>
    %36 = tpu.matmul %34, %35, %cst_11 {dimension_numbers = #tpu.dot_dimension_numbers<[1], [0], [0], [1], [0, 0, 1, 1], [], []>} : vector<1x256xbf16>, vector<256x512xbf16>, vector<1x512xf32> -> vector<1x512xf32>
    %c0_12 = arith.constant 0 : index
    %c0_13 = arith.constant 0 : index
    %37 = vector.load %arg6[%c0_12, %c0_13] : memref<1x512xf32, #tpu.memory_space<vmem>>, vector<1x512xf32>
    %38 = arith.addf %36, %37 : vector<1x512xf32>
    %39 = vector.extract_strided_slice %38 {offsets = [0, 0], sizes = [1, 384], strides = [1, 1]} : vector<1x512xf32> to vector<1x384xf32>
    %40 = arith.negf %39 : vector<1x384xf32>
    %41 = math.exp %40 : vector<1x384xf32>
    %cst_14 = arith.constant 1.000000e+00 : f32
    %42 = vector.broadcast %cst_14 : f32 to vector<1x384xf32>
    %43 = arith.addf %42, %41 : vector<1x384xf32>
    %44 = arith.divf %42, %43 : vector<1x384xf32>
    %45 = vector.extract_strided_slice %38 {offsets = [0, 384], sizes = [1, 128], strides = [1, 1]} : vector<1x512xf32> to vector<1x128xf32>
    %46 = math.tanh %45 : vector<1x128xf32>
    %47 = vector.extract_strided_slice %44 {offsets = [0, 0], sizes = [1, 128], strides = [1, 1]} : vector<1x384xf32> to vector<1x128xf32>
    %48 = vector.extract_strided_slice %44 {offsets = [0, 128], sizes = [1, 128], strides = [1, 1]} : vector<1x384xf32> to vector<1x128xf32>
    %49 = vector.extract_strided_slice %44 {offsets = [0, 256], sizes = [1, 128], strides = [1, 1]} : vector<1x384xf32> to vector<1x128xf32>
    %50 = arith.mulf %48, %10 : vector<1x128xf32>
    %51 = arith.mulf %47, %46 : vector<1x128xf32>
    %52 = arith.addf %50, %51 : vector<1x128xf32>
    %53 = math.tanh %52 : vector<1x128xf32>
    %54 = arith.mulf %49, %53 : vector<1x128xf32>
    %55 = arith.truncf %54 : vector<1x128xf32> to vector<1x128xbf16>
    %c0_15 = arith.constant 0 : index
    %c0_16 = arith.constant 0 : index
    %56 = vector.load %arg7[%c0_15, %c0_16] : memref<128x128xbf16, #tpu.memory_space<vmem>>, vector<128x128xbf16>
    %cst_17 = arith.constant dense<0.000000e+00> : vector<1x128xf32>
    %57 = tpu.matmul %55, %56, %cst_17 {dimension_numbers = #tpu.dot_dimension_numbers<[1], [0], [0], [1], [0, 0, 1, 1], [], []>} : vector<1x128xbf16>, vector<128x128xbf16>, vector<1x128xf32> -> vector<1x128xf32>
    %c0_18 = arith.constant 0 : index
    %c0_19 = arith.constant 0 : index
    %58 = vector.load %arg8[%c0_18, %c0_19] : memref<1x128xf32, #tpu.memory_space<vmem>>, vector<1x128xf32>
    %59 = arith.addf %57, %58 : vector<1x128xf32>
    %cst_20 = arith.constant dense<0xFF800000> : vector<1xf32>
    %60 = vector.multi_reduction <maximumf>, %59, %cst_20 [1] : vector<1x128xf32> to vector<1xf32>
    %61 = vector.shape_cast %60 : vector<1xf32> to vector<1x1xf32>
    %62 = vector.broadcast %61 : vector<1x1xf32> to vector<1x128xf32>
    %63 = arith.cmpf oeq, %59, %62 : vector<1x128xf32>
    %cst_21 = arith.constant 1.280000e+02 : f32
    %64 = vector.broadcast %cst_21 : f32 to vector<1x128xf32>
    %65 = arith.select %63, %1, %64 : vector<1x128xi1>, vector<1x128xf32>
    %cst_22 = arith.constant dense<0x7F800000> : vector<1xf32>
    %66 = vector.multi_reduction <minimumf>, %65, %cst_22 [1] : vector<1x128xf32> to vector<1xf32>
    %67 = vector.shape_cast %66 : vector<1xf32> to vector<1x1xf32>
    %68 = vector.broadcast %67 : vector<1x1xf32> to vector<1x128xf32>
    %69 = arith.cmpf oeq, %65, %68 : vector<1x128xf32>
    %70 = arith.extui %69 : vector<1x128xi1> to vector<1x128xi32>
    %71 = arith.sitofp %70 : vector<1x128xi32> to vector<1x128xf32>
    %c1 = arith.constant 1 : index
    %72 = memref.load %arg1[%c1] : memref<8xi32, #tpu.memory_space<smem>>
    %73 = vector.broadcast %72 : i32 to vector<1x128xi32>
    %74 = arith.cmpi eq, %0, %73 : vector<1x128xi32>
    %75 = arith.extui %74 : vector<1x128xi1> to vector<1x128xi32>
    %76 = arith.sitofp %75 : vector<1x128xi32> to vector<1x128xf32>
    %c1_23 = arith.constant 1 : index
    %77 = memref.load %arg2[%c1_23] : memref<8xi32, #tpu.memory_space<smem>>
    %78 = arith.sitofp %77 : i32 to f32
    %79 = vector.broadcast %78 : f32 to vector<1x128xf32>
    %80 = arith.mulf %76, %79 : vector<1x128xf32>
    %cst_24 = arith.constant 1.000000e+00 : f32
    %81 = arith.subf %cst_24, %78 : f32
    %82 = vector.broadcast %81 : f32 to vector<1x128xf32>
    %83 = arith.mulf %59, %82 : vector<1x128xf32>
    %84 = arith.addf %80, %83 : vector<1x128xf32>
    %85 = vector.broadcast %78 : f32 to vector<1x128xf32>
    %86 = arith.mulf %76, %85 : vector<1x128xf32>
    %cst_25 = arith.constant 1.000000e+00 : f32
    %87 = arith.subf %cst_25, %78 : f32
    %88 = vector.broadcast %87 : f32 to vector<1x128xf32>
    %89 = arith.mulf %71, %88 : vector<1x128xf32>
    %90 = arith.addf %86, %89 : vector<1x128xf32>
    %91 = tpu.concatenate %90, %32 in 1 : vector<1x128xf32>, vector<1x128xf32> -> vector<1x256xf32>
    %92 = arith.truncf %91 : vector<1x256xf32> to vector<1x256xbf16>
    %c0_26 = arith.constant 0 : index
    %c0_27 = arith.constant 0 : index
    %93 = vector.load %arg3[%c0_26, %c0_27] : memref<256x512xbf16, #tpu.memory_space<vmem>>, vector<256x512xbf16>
    %cst_28 = arith.constant dense<0.000000e+00> : vector<1x512xf32>
    %94 = tpu.matmul %92, %93, %cst_28 {dimension_numbers = #tpu.dot_dimension_numbers<[1], [0], [0], [1], [0, 0, 1, 1], [], []>} : vector<1x256xbf16>, vector<256x512xbf16>, vector<1x512xf32> -> vector<1x512xf32>
    %c0_29 = arith.constant 0 : index
    %c0_30 = arith.constant 0 : index
    %95 = vector.load %arg4[%c0_29, %c0_30] : memref<1x512xf32, #tpu.memory_space<vmem>>, vector<1x512xf32>
    %96 = arith.addf %94, %95 : vector<1x512xf32>
    %97 = vector.extract_strided_slice %96 {offsets = [0, 0], sizes = [1, 384], strides = [1, 1]} : vector<1x512xf32> to vector<1x384xf32>
    %98 = arith.negf %97 : vector<1x384xf32>
    %99 = math.exp %98 : vector<1x384xf32>
    %cst_31 = arith.constant 1.000000e+00 : f32
    %100 = vector.broadcast %cst_31 : f32 to vector<1x384xf32>
    %101 = arith.addf %100, %99 : vector<1x384xf32>
    %102 = arith.divf %100, %101 : vector<1x384xf32>
    %103 = vector.extract_strided_slice %96 {offsets = [0, 384], sizes = [1, 128], strides = [1, 1]} : vector<1x512xf32> to vector<1x128xf32>
    %104 = math.tanh %103 : vector<1x128xf32>
    %105 = vector.extract_strided_slice %102 {offsets = [0, 0], sizes = [1, 128], strides = [1, 1]} : vector<1x384xf32> to vector<1x128xf32>
    %106 = vector.extract_strided_slice %102 {offsets = [0, 128], sizes = [1, 128], strides = [1, 1]} : vector<1x384xf32> to vector<1x128xf32>
    %107 = vector.extract_strided_slice %102 {offsets = [0, 256], sizes = [1, 128], strides = [1, 1]} : vector<1x384xf32> to vector<1x128xf32>
    %108 = arith.mulf %106, %30 : vector<1x128xf32>
    %109 = arith.mulf %105, %104 : vector<1x128xf32>
    %110 = arith.addf %108, %109 : vector<1x128xf32>
    %111 = math.tanh %110 : vector<1x128xf32>
    %112 = arith.mulf %107, %111 : vector<1x128xf32>
    %113 = tpu.concatenate %112, %54 in 1 : vector<1x128xf32>, vector<1x128xf32> -> vector<1x256xf32>
    %114 = arith.truncf %113 : vector<1x256xf32> to vector<1x256xbf16>
    %c0_32 = arith.constant 0 : index
    %c0_33 = arith.constant 0 : index
    %115 = vector.load %arg5[%c0_32, %c0_33] : memref<256x512xbf16, #tpu.memory_space<vmem>>, vector<256x512xbf16>
    %cst_34 = arith.constant dense<0.000000e+00> : vector<1x512xf32>
    %116 = tpu.matmul %114, %115, %cst_34 {dimension_numbers = #tpu.dot_dimension_numbers<[1], [0], [0], [1], [0, 0, 1, 1], [], []>} : vector<1x256xbf16>, vector<256x512xbf16>, vector<1x512xf32> -> vector<1x512xf32>
    %c0_35 = arith.constant 0 : index
    %c0_36 = arith.constant 0 : index
    %117 = vector.load %arg6[%c0_35, %c0_36] : memref<1x512xf32, #tpu.memory_space<vmem>>, vector<1x512xf32>
    %118 = arith.addf %116, %117 : vector<1x512xf32>
    %119 = vector.extract_strided_slice %118 {offsets = [0, 0], sizes = [1, 384], strides = [1, 1]} : vector<1x512xf32> to vector<1x384xf32>
    %120 = arith.negf %119 : vector<1x384xf32>
    %121 = math.exp %120 : vector<1x384xf32>
    %cst_37 = arith.constant 1.000000e+00 : f32
    %122 = vector.broadcast %cst_37 : f32 to vector<1x384xf32>
    %123 = arith.addf %122, %121 : vector<1x384xf32>
    %124 = arith.divf %122, %123 : vector<1x384xf32>
    %125 = vector.extract_strided_slice %118 {offsets = [0, 384], sizes = [1, 128], strides = [1, 1]} : vector<1x512xf32> to vector<1x128xf32>
    %126 = math.tanh %125 : vector<1x128xf32>
    %127 = vector.extract_strided_slice %124 {offsets = [0, 0], sizes = [1, 128], strides = [1, 1]} : vector<1x384xf32> to vector<1x128xf32>
    %128 = vector.extract_strided_slice %124 {offsets = [0, 128], sizes = [1, 128], strides = [1, 1]} : vector<1x384xf32> to vector<1x128xf32>
    %129 = vector.extract_strided_slice %124 {offsets = [0, 256], sizes = [1, 128], strides = [1, 1]} : vector<1x384xf32> to vector<1x128xf32>
    %130 = arith.mulf %128, %52 : vector<1x128xf32>
    %131 = arith.mulf %127, %126 : vector<1x128xf32>
    %132 = arith.addf %130, %131 : vector<1x128xf32>
    %133 = math.tanh %132 : vector<1x128xf32>
    %134 = arith.mulf %129, %133 : vector<1x128xf32>
    %135 = arith.truncf %134 : vector<1x128xf32> to vector<1x128xbf16>
    %c0_38 = arith.constant 0 : index
    %c0_39 = arith.constant 0 : index
    %136 = vector.load %arg7[%c0_38, %c0_39] : memref<128x128xbf16, #tpu.memory_space<vmem>>, vector<128x128xbf16>
    %cst_40 = arith.constant dense<0.000000e+00> : vector<1x128xf32>
    %137 = tpu.matmul %135, %136, %cst_40 {dimension_numbers = #tpu.dot_dimension_numbers<[1], [0], [0], [1], [0, 0, 1, 1], [], []>} : vector<1x128xbf16>, vector<128x128xbf16>, vector<1x128xf32> -> vector<1x128xf32>
    %c0_41 = arith.constant 0 : index
    %c0_42 = arith.constant 0 : index
    %138 = vector.load %arg8[%c0_41, %c0_42] : memref<1x128xf32, #tpu.memory_space<vmem>>, vector<1x128xf32>
    %139 = arith.addf %137, %138 : vector<1x128xf32>
    %cst_43 = arith.constant dense<0xFF800000> : vector<1xf32>
    %140 = vector.multi_reduction <maximumf>, %139, %cst_43 [1] : vector<1x128xf32> to vector<1xf32>
    %141 = vector.shape_cast %140 : vector<1xf32> to vector<1x1xf32>
    %142 = vector.broadcast %141 : vector<1x1xf32> to vector<1x128xf32>
    %143 = arith.cmpf oeq, %139, %142 : vector<1x128xf32>
    %cst_44 = arith.constant 1.280000e+02 : f32
    %144 = vector.broadcast %cst_44 : f32 to vector<1x128xf32>
    %145 = arith.select %143, %1, %144 : vector<1x128xi1>, vector<1x128xf32>
    %cst_45 = arith.constant dense<0x7F800000> : vector<1xf32>
    %146 = vector.multi_reduction <minimumf>, %145, %cst_45 [1] : vector<1x128xf32> to vector<1xf32>
    %147 = vector.shape_cast %146 : vector<1xf32> to vector<1x1xf32>
    %148 = vector.broadcast %147 : vector<1x1xf32> to vector<1x128xf32>
    %149 = arith.cmpf oeq, %145, %148 : vector<1x128xf32>
    %150 = arith.extui %149 : vector<1x128xi1> to vector<1x128xi32>
    %151 = arith.sitofp %150 : vector<1x128xi32> to vector<1x128xf32>
    %c2 = arith.constant 2 : index
    %152 = memref.load %arg1[%c2] : memref<8xi32, #tpu.memory_space<smem>>
    %153 = vector.broadcast %152 : i32 to vector<1x128xi32>
    %154 = arith.cmpi eq, %0, %153 : vector<1x128xi32>
    %155 = arith.extui %154 : vector<1x128xi1> to vector<1x128xi32>
    %156 = arith.sitofp %155 : vector<1x128xi32> to vector<1x128xf32>
    %c2_46 = arith.constant 2 : index
    %157 = memref.load %arg2[%c2_46] : memref<8xi32, #tpu.memory_space<smem>>
    %158 = arith.sitofp %157 : i32 to f32
    %159 = vector.broadcast %158 : f32 to vector<1x128xf32>
    %160 = arith.mulf %156, %159 : vector<1x128xf32>
    %cst_47 = arith.constant 1.000000e+00 : f32
    %161 = arith.subf %cst_47, %158 : f32
    %162 = vector.broadcast %161 : f32 to vector<1x128xf32>
    %163 = arith.mulf %139, %162 : vector<1x128xf32>
    %164 = arith.addf %160, %163 : vector<1x128xf32>
    %165 = vector.broadcast %158 : f32 to vector<1x128xf32>
    %166 = arith.mulf %156, %165 : vector<1x128xf32>
    %cst_48 = arith.constant 1.000000e+00 : f32
    %167 = arith.subf %cst_48, %158 : f32
    %168 = vector.broadcast %167 : f32 to vector<1x128xf32>
    %169 = arith.mulf %151, %168 : vector<1x128xf32>
    %170 = arith.addf %166, %169 : vector<1x128xf32>
    %171 = tpu.concatenate %170, %112 in 1 : vector<1x128xf32>, vector<1x128xf32> -> vector<1x256xf32>
    %172 = arith.truncf %171 : vector<1x256xf32> to vector<1x256xbf16>
    %c0_49 = arith.constant 0 : index
    %c0_50 = arith.constant 0 : index
    %173 = vector.load %arg3[%c0_49, %c0_50] : memref<256x512xbf16, #tpu.memory_space<vmem>>, vector<256x512xbf16>
    %cst_51 = arith.constant dense<0.000000e+00> : vector<1x512xf32>
    %174 = tpu.matmul %172, %173, %cst_51 {dimension_numbers = #tpu.dot_dimension_numbers<[1], [0], [0], [1], [0, 0, 1, 1], [], []>} : vector<1x256xbf16>, vector<256x512xbf16>, vector<1x512xf32> -> vector<1x512xf32>
    %c0_52 = arith.constant 0 : index
    %c0_53 = arith.constant 0 : index
    %175 = vector.load %arg4[%c0_52, %c0_53] : memref<1x512xf32, #tpu.memory_space<vmem>>, vector<1x512xf32>
    %176 = arith.addf %174, %175 : vector<1x512xf32>
    %177 = vector.extract_strided_slice %176 {offsets = [0, 0], sizes = [1, 384], strides = [1, 1]} : vector<1x512xf32> to vector<1x384xf32>
    %178 = arith.negf %177 : vector<1x384xf32>
    %179 = math.exp %178 : vector<1x384xf32>
    %cst_54 = arith.constant 1.000000e+00 : f32
    %180 = vector.broadcast %cst_54 : f32 to vector<1x384xf32>
    %181 = arith.addf %180, %179 : vector<1x384xf32>
    %182 = arith.divf %180, %181 : vector<1x384xf32>
    %183 = vector.extract_strided_slice %176 {offsets = [0, 384], sizes = [1, 128], strides = [1, 1]} : vector<1x512xf32> to vector<1x128xf32>
    %184 = math.tanh %183 : vector<1x128xf32>
    %185 = vector.extract_strided_slice %182 {offsets = [0, 0], sizes = [1, 128], strides = [1, 1]} : vector<1x384xf32> to vector<1x128xf32>
    %186 = vector.extract_strided_slice %182 {offsets = [0, 128], sizes = [1, 128], strides = [1, 1]} : vector<1x384xf32> to vector<1x128xf32>
    %187 = vector.extract_strided_slice %182 {offsets = [0, 256], sizes = [1, 128], strides = [1, 1]} : vector<1x384xf32> to vector<1x128xf32>
    %188 = arith.mulf %186, %110 : vector<1x128xf32>
    %189 = arith.mulf %185, %184 : vector<1x128xf32>
    %190 = arith.addf %188, %189 : vector<1x128xf32>
    %191 = math.tanh %190 : vector<1x128xf32>
    %192 = arith.mulf %187, %191 : vector<1x128xf32>
    %193 = tpu.concatenate %192, %134 in 1 : vector<1x128xf32>, vector<1x128xf32> -> vector<1x256xf32>
    %194 = arith.truncf %193 : vector<1x256xf32> to vector<1x256xbf16>
    %c0_55 = arith.constant 0 : index
    %c0_56 = arith.constant 0 : index
    %195 = vector.load %arg5[%c0_55, %c0_56] : memref<256x512xbf16, #tpu.memory_space<vmem>>, vector<256x512xbf16>
    %cst_57 = arith.constant dense<0.000000e+00> : vector<1x512xf32>
    %196 = tpu.matmul %194, %195, %cst_57 {dimension_numbers = #tpu.dot_dimension_numbers<[1], [0], [0], [1], [0, 0, 1, 1], [], []>} : vector<1x256xbf16>, vector<256x512xbf16>, vector<1x512xf32> -> vector<1x512xf32>
    %c0_58 = arith.constant 0 : index
    %c0_59 = arith.constant 0 : index
    %197 = vector.load %arg6[%c0_58, %c0_59] : memref<1x512xf32, #tpu.memory_space<vmem>>, vector<1x512xf32>
    %198 = arith.addf %196, %197 : vector<1x512xf32>
    %199 = vector.extract_strided_slice %198 {offsets = [0, 0], sizes = [1, 384], strides = [1, 1]} : vector<1x512xf32> to vector<1x384xf32>
    %200 = arith.negf %199 : vector<1x384xf32>
    %201 = math.exp %200 : vector<1x384xf32>
    %cst_60 = arith.constant 1.000000e+00 : f32
    %202 = vector.broadcast %cst_60 : f32 to vector<1x384xf32>
    %203 = arith.addf %202, %201 : vector<1x384xf32>
    %204 = arith.divf %202, %203 : vector<1x384xf32>
    %205 = vector.extract_strided_slice %198 {offsets = [0, 384], sizes = [1, 128], strides = [1, 1]} : vector<1x512xf32> to vector<1x128xf32>
    %206 = math.tanh %205 : vector<1x128xf32>
    %207 = vector.extract_strided_slice %204 {offsets = [0, 0], sizes = [1, 128], strides = [1, 1]} : vector<1x384xf32> to vector<1x128xf32>
    %208 = vector.extract_strided_slice %204 {offsets = [0, 128], sizes = [1, 128], strides = [1, 1]} : vector<1x384xf32> to vector<1x128xf32>
    %209 = vector.extract_strided_slice %204 {offsets = [0, 256], sizes = [1, 128], strides = [1, 1]} : vector<1x384xf32> to vector<1x128xf32>
    %210 = arith.mulf %208, %132 : vector<1x128xf32>
    %211 = arith.mulf %207, %206 : vector<1x128xf32>
    %212 = arith.addf %210, %211 : vector<1x128xf32>
    %213 = math.tanh %212 : vector<1x128xf32>
    %214 = arith.mulf %209, %213 : vector<1x128xf32>
    %215 = arith.truncf %214 : vector<1x128xf32> to vector<1x128xbf16>
    %c0_61 = arith.constant 0 : index
    %c0_62 = arith.constant 0 : index
    %216 = vector.load %arg7[%c0_61, %c0_62] : memref<128x128xbf16, #tpu.memory_space<vmem>>, vector<128x128xbf16>
    %cst_63 = arith.constant dense<0.000000e+00> : vector<1x128xf32>
    %217 = tpu.matmul %215, %216, %cst_63 {dimension_numbers = #tpu.dot_dimension_numbers<[1], [0], [0], [1], [0, 0, 1, 1], [], []>} : vector<1x128xbf16>, vector<128x128xbf16>, vector<1x128xf32> -> vector<1x128xf32>
    %c0_64 = arith.constant 0 : index
    %c0_65 = arith.constant 0 : index
    %218 = vector.load %arg8[%c0_64, %c0_65] : memref<1x128xf32, #tpu.memory_space<vmem>>, vector<1x128xf32>
    %219 = arith.addf %217, %218 : vector<1x128xf32>
    %cst_66 = arith.constant dense<0xFF800000> : vector<1xf32>
    %220 = vector.multi_reduction <maximumf>, %219, %cst_66 [1] : vector<1x128xf32> to vector<1xf32>
    %221 = vector.shape_cast %220 : vector<1xf32> to vector<1x1xf32>
    %222 = vector.broadcast %221 : vector<1x1xf32> to vector<1x128xf32>
    %223 = arith.cmpf oeq, %219, %222 : vector<1x128xf32>
    %cst_67 = arith.constant 1.280000e+02 : f32
    %224 = vector.broadcast %cst_67 : f32 to vector<1x128xf32>
    %225 = arith.select %223, %1, %224 : vector<1x128xi1>, vector<1x128xf32>
    %cst_68 = arith.constant dense<0x7F800000> : vector<1xf32>
    %226 = vector.multi_reduction <minimumf>, %225, %cst_68 [1] : vector<1x128xf32> to vector<1xf32>
    %227 = vector.shape_cast %226 : vector<1xf32> to vector<1x1xf32>
    %228 = vector.broadcast %227 : vector<1x1xf32> to vector<1x128xf32>
    %229 = arith.cmpf oeq, %225, %228 : vector<1x128xf32>
    %230 = arith.extui %229 : vector<1x128xi1> to vector<1x128xi32>
    %231 = arith.sitofp %230 : vector<1x128xi32> to vector<1x128xf32>
    %c3 = arith.constant 3 : index
    %232 = memref.load %arg1[%c3] : memref<8xi32, #tpu.memory_space<smem>>
    %233 = vector.broadcast %232 : i32 to vector<1x128xi32>
    %234 = arith.cmpi eq, %0, %233 : vector<1x128xi32>
    %235 = arith.extui %234 : vector<1x128xi1> to vector<1x128xi32>
    %236 = arith.sitofp %235 : vector<1x128xi32> to vector<1x128xf32>
    %c3_69 = arith.constant 3 : index
    %237 = memref.load %arg2[%c3_69] : memref<8xi32, #tpu.memory_space<smem>>
    %238 = arith.sitofp %237 : i32 to f32
    %239 = vector.broadcast %238 : f32 to vector<1x128xf32>
    %240 = arith.mulf %236, %239 : vector<1x128xf32>
    %cst_70 = arith.constant 1.000000e+00 : f32
    %241 = arith.subf %cst_70, %238 : f32
    %242 = vector.broadcast %241 : f32 to vector<1x128xf32>
    %243 = arith.mulf %219, %242 : vector<1x128xf32>
    %244 = arith.addf %240, %243 : vector<1x128xf32>
    %245 = vector.broadcast %238 : f32 to vector<1x128xf32>
    %246 = arith.mulf %236, %245 : vector<1x128xf32>
    %cst_71 = arith.constant 1.000000e+00 : f32
    %247 = arith.subf %cst_71, %238 : f32
    %248 = vector.broadcast %247 : f32 to vector<1x128xf32>
    %249 = arith.mulf %231, %248 : vector<1x128xf32>
    %250 = arith.addf %246, %249 : vector<1x128xf32>
    %251 = tpu.concatenate %250, %192 in 1 : vector<1x128xf32>, vector<1x128xf32> -> vector<1x256xf32>
    %252 = arith.truncf %251 : vector<1x256xf32> to vector<1x256xbf16>
    %c0_72 = arith.constant 0 : index
    %c0_73 = arith.constant 0 : index
    %253 = vector.load %arg3[%c0_72, %c0_73] : memref<256x512xbf16, #tpu.memory_space<vmem>>, vector<256x512xbf16>
    %cst_74 = arith.constant dense<0.000000e+00> : vector<1x512xf32>
    %254 = tpu.matmul %252, %253, %cst_74 {dimension_numbers = #tpu.dot_dimension_numbers<[1], [0], [0], [1], [0, 0, 1, 1], [], []>} : vector<1x256xbf16>, vector<256x512xbf16>, vector<1x512xf32> -> vector<1x512xf32>
    %c0_75 = arith.constant 0 : index
    %c0_76 = arith.constant 0 : index
    %255 = vector.load %arg4[%c0_75, %c0_76] : memref<1x512xf32, #tpu.memory_space<vmem>>, vector<1x512xf32>
    %256 = arith.addf %254, %255 : vector<1x512xf32>
    %257 = vector.extract_strided_slice %256 {offsets = [0, 0], sizes = [1, 384], strides = [1, 1]} : vector<1x512xf32> to vector<1x384xf32>
    %258 = arith.negf %257 : vector<1x384xf32>
    %259 = math.exp %258 : vector<1x384xf32>
    %cst_77 = arith.constant 1.000000e+00 : f32
    %260 = vector.broadcast %cst_77 : f32 to vector<1x384xf32>
    %261 = arith.addf %260, %259 : vector<1x384xf32>
    %262 = arith.divf %260, %261 : vector<1x384xf32>
    %263 = vector.extract_strided_slice %256 {offsets = [0, 384], sizes = [1, 128], strides = [1, 1]} : vector<1x512xf32> to vector<1x128xf32>
    %264 = math.tanh %263 : vector<1x128xf32>
    %265 = vector.extract_strided_slice %262 {offsets = [0, 0], sizes = [1, 128], strides = [1, 1]} : vector<1x384xf32> to vector<1x128xf32>
    %266 = vector.extract_strided_slice %262 {offsets = [0, 128], sizes = [1, 128], strides = [1, 1]} : vector<1x384xf32> to vector<1x128xf32>
    %267 = vector.extract_strided_slice %262 {offsets = [0, 256], sizes = [1, 128], strides = [1, 1]} : vector<1x384xf32> to vector<1x128xf32>
    %268 = arith.mulf %266, %190 : vector<1x128xf32>
    %269 = arith.mulf %265, %264 : vector<1x128xf32>
    %270 = arith.addf %268, %269 : vector<1x128xf32>
    %271 = math.tanh %270 : vector<1x128xf32>
    %272 = arith.mulf %267, %271 : vector<1x128xf32>
    %273 = tpu.concatenate %272, %214 in 1 : vector<1x128xf32>, vector<1x128xf32> -> vector<1x256xf32>
    %274 = arith.truncf %273 : vector<1x256xf32> to vector<1x256xbf16>
    %c0_78 = arith.constant 0 : index
    %c0_79 = arith.constant 0 : index
    %275 = vector.load %arg5[%c0_78, %c0_79] : memref<256x512xbf16, #tpu.memory_space<vmem>>, vector<256x512xbf16>
    %cst_80 = arith.constant dense<0.000000e+00> : vector<1x512xf32>
    %276 = tpu.matmul %274, %275, %cst_80 {dimension_numbers = #tpu.dot_dimension_numbers<[1], [0], [0], [1], [0, 0, 1, 1], [], []>} : vector<1x256xbf16>, vector<256x512xbf16>, vector<1x512xf32> -> vector<1x512xf32>
    %c0_81 = arith.constant 0 : index
    %c0_82 = arith.constant 0 : index
    %277 = vector.load %arg6[%c0_81, %c0_82] : memref<1x512xf32, #tpu.memory_space<vmem>>, vector<1x512xf32>
    %278 = arith.addf %276, %277 : vector<1x512xf32>
    %279 = vector.extract_strided_slice %278 {offsets = [0, 0], sizes = [1, 384], strides = [1, 1]} : vector<1x512xf32> to vector<1x384xf32>
    %280 = arith.negf %279 : vector<1x384xf32>
    %281 = math.exp %280 : vector<1x384xf32>
    %cst_83 = arith.constant 1.000000e+00 : f32
    %282 = vector.broadcast %cst_83 : f32 to vector<1x384xf32>
    %283 = arith.addf %282, %281 : vector<1x384xf32>
    %284 = arith.divf %282, %283 : vector<1x384xf32>
    %285 = vector.extract_strided_slice %278 {offsets = [0, 384], sizes = [1, 128], strides = [1, 1]} : vector<1x512xf32> to vector<1x128xf32>
    %286 = math.tanh %285 : vector<1x128xf32>
    %287 = vector.extract_strided_slice %284 {offsets = [0, 0], sizes = [1, 128], strides = [1, 1]} : vector<1x384xf32> to vector<1x128xf32>
    %288 = vector.extract_strided_slice %284 {offsets = [0, 128], sizes = [1, 128], strides = [1, 1]} : vector<1x384xf32> to vector<1x128xf32>
    %289 = vector.extract_strided_slice %284 {offsets = [0, 256], sizes = [1, 128], strides = [1, 1]} : vector<1x384xf32> to vector<1x128xf32>
    %290 = arith.mulf %288, %212 : vector<1x128xf32>
    %291 = arith.mulf %287, %286 : vector<1x128xf32>
    %292 = arith.addf %290, %291 : vector<1x128xf32>
    %293 = math.tanh %292 : vector<1x128xf32>
    %294 = arith.mulf %289, %293 : vector<1x128xf32>
    %295 = arith.truncf %294 : vector<1x128xf32> to vector<1x128xbf16>
    %c0_84 = arith.constant 0 : index
    %c0_85 = arith.constant 0 : index
    %296 = vector.load %arg7[%c0_84, %c0_85] : memref<128x128xbf16, #tpu.memory_space<vmem>>, vector<128x128xbf16>
    %cst_86 = arith.constant dense<0.000000e+00> : vector<1x128xf32>
    %297 = tpu.matmul %295, %296, %cst_86 {dimension_numbers = #tpu.dot_dimension_numbers<[1], [0], [0], [1], [0, 0, 1, 1], [], []>} : vector<1x128xbf16>, vector<128x128xbf16>, vector<1x128xf32> -> vector<1x128xf32>
    %c0_87 = arith.constant 0 : index
    %c0_88 = arith.constant 0 : index
    %298 = vector.load %arg8[%c0_87, %c0_88] : memref<1x128xf32, #tpu.memory_space<vmem>>, vector<1x128xf32>
    %299 = arith.addf %297, %298 : vector<1x128xf32>
    %cst_89 = arith.constant dense<0xFF800000> : vector<1xf32>
    %300 = vector.multi_reduction <maximumf>, %299, %cst_89 [1] : vector<1x128xf32> to vector<1xf32>
    %301 = vector.shape_cast %300 : vector<1xf32> to vector<1x1xf32>
    %302 = vector.broadcast %301 : vector<1x1xf32> to vector<1x128xf32>
    %303 = arith.cmpf oeq, %299, %302 : vector<1x128xf32>
    %cst_90 = arith.constant 1.280000e+02 : f32
    %304 = vector.broadcast %cst_90 : f32 to vector<1x128xf32>
    %305 = arith.select %303, %1, %304 : vector<1x128xi1>, vector<1x128xf32>
    %cst_91 = arith.constant dense<0x7F800000> : vector<1xf32>
    %306 = vector.multi_reduction <minimumf>, %305, %cst_91 [1] : vector<1x128xf32> to vector<1xf32>
    %307 = vector.shape_cast %306 : vector<1xf32> to vector<1x1xf32>
    %308 = vector.broadcast %307 : vector<1x1xf32> to vector<1x128xf32>
    %309 = arith.cmpf oeq, %305, %308 : vector<1x128xf32>
    %310 = arith.extui %309 : vector<1x128xi1> to vector<1x128xi32>
    %311 = arith.sitofp %310 : vector<1x128xi32> to vector<1x128xf32>
    %c4 = arith.constant 4 : index
    %312 = memref.load %arg1[%c4] : memref<8xi32, #tpu.memory_space<smem>>
    %313 = vector.broadcast %312 : i32 to vector<1x128xi32>
    %314 = arith.cmpi eq, %0, %313 : vector<1x128xi32>
    %315 = arith.extui %314 : vector<1x128xi1> to vector<1x128xi32>
    %316 = arith.sitofp %315 : vector<1x128xi32> to vector<1x128xf32>
    %c4_92 = arith.constant 4 : index
    %317 = memref.load %arg2[%c4_92] : memref<8xi32, #tpu.memory_space<smem>>
    %318 = arith.sitofp %317 : i32 to f32
    %319 = vector.broadcast %318 : f32 to vector<1x128xf32>
    %320 = arith.mulf %316, %319 : vector<1x128xf32>
    %cst_93 = arith.constant 1.000000e+00 : f32
    %321 = arith.subf %cst_93, %318 : f32
    %322 = vector.broadcast %321 : f32 to vector<1x128xf32>
    %323 = arith.mulf %299, %322 : vector<1x128xf32>
    %324 = arith.addf %320, %323 : vector<1x128xf32>
    %325 = vector.broadcast %318 : f32 to vector<1x128xf32>
    %326 = arith.mulf %316, %325 : vector<1x128xf32>
    %cst_94 = arith.constant 1.000000e+00 : f32
    %327 = arith.subf %cst_94, %318 : f32
    %328 = vector.broadcast %327 : f32 to vector<1x128xf32>
    %329 = arith.mulf %311, %328 : vector<1x128xf32>
    %330 = arith.addf %326, %329 : vector<1x128xf32>
    %331 = tpu.concatenate %330, %272 in 1 : vector<1x128xf32>, vector<1x128xf32> -> vector<1x256xf32>
    %332 = arith.truncf %331 : vector<1x256xf32> to vector<1x256xbf16>
    %c0_95 = arith.constant 0 : index
    %c0_96 = arith.constant 0 : index
    %333 = vector.load %arg3[%c0_95, %c0_96] : memref<256x512xbf16, #tpu.memory_space<vmem>>, vector<256x512xbf16>
    %cst_97 = arith.constant dense<0.000000e+00> : vector<1x512xf32>
    %334 = tpu.matmul %332, %333, %cst_97 {dimension_numbers = #tpu.dot_dimension_numbers<[1], [0], [0], [1], [0, 0, 1, 1], [], []>} : vector<1x256xbf16>, vector<256x512xbf16>, vector<1x512xf32> -> vector<1x512xf32>
    %c0_98 = arith.constant 0 : index
    %c0_99 = arith.constant 0 : index
    %335 = vector.load %arg4[%c0_98, %c0_99] : memref<1x512xf32, #tpu.memory_space<vmem>>, vector<1x512xf32>
    %336 = arith.addf %334, %335 : vector<1x512xf32>
    %337 = vector.extract_strided_slice %336 {offsets = [0, 0], sizes = [1, 384], strides = [1, 1]} : vector<1x512xf32> to vector<1x384xf32>
    %338 = arith.negf %337 : vector<1x384xf32>
    %339 = math.exp %338 : vector<1x384xf32>
    %cst_100 = arith.constant 1.000000e+00 : f32
    %340 = vector.broadcast %cst_100 : f32 to vector<1x384xf32>
    %341 = arith.addf %340, %339 : vector<1x384xf32>
    %342 = arith.divf %340, %341 : vector<1x384xf32>
    %343 = vector.extract_strided_slice %336 {offsets = [0, 384], sizes = [1, 128], strides = [1, 1]} : vector<1x512xf32> to vector<1x128xf32>
    %344 = math.tanh %343 : vector<1x128xf32>
    %345 = vector.extract_strided_slice %342 {offsets = [0, 0], sizes = [1, 128], strides = [1, 1]} : vector<1x384xf32> to vector<1x128xf32>
    %346 = vector.extract_strided_slice %342 {offsets = [0, 128], sizes = [1, 128], strides = [1, 1]} : vector<1x384xf32> to vector<1x128xf32>
    %347 = vector.extract_strided_slice %342 {offsets = [0, 256], sizes = [1, 128], strides = [1, 1]} : vector<1x384xf32> to vector<1x128xf32>
    %348 = arith.mulf %346, %270 : vector<1x128xf32>
    %349 = arith.mulf %345, %344 : vector<1x128xf32>
    %350 = arith.addf %348, %349 : vector<1x128xf32>
    %351 = math.tanh %350 : vector<1x128xf32>
    %352 = arith.mulf %347, %351 : vector<1x128xf32>
    %353 = tpu.concatenate %352, %294 in 1 : vector<1x128xf32>, vector<1x128xf32> -> vector<1x256xf32>
    %354 = arith.truncf %353 : vector<1x256xf32> to vector<1x256xbf16>
    %c0_101 = arith.constant 0 : index
    %c0_102 = arith.constant 0 : index
    %355 = vector.load %arg5[%c0_101, %c0_102] : memref<256x512xbf16, #tpu.memory_space<vmem>>, vector<256x512xbf16>
    %cst_103 = arith.constant dense<0.000000e+00> : vector<1x512xf32>
    %356 = tpu.matmul %354, %355, %cst_103 {dimension_numbers = #tpu.dot_dimension_numbers<[1], [0], [0], [1], [0, 0, 1, 1], [], []>} : vector<1x256xbf16>, vector<256x512xbf16>, vector<1x512xf32> -> vector<1x512xf32>
    %c0_104 = arith.constant 0 : index
    %c0_105 = arith.constant 0 : index
    %357 = vector.load %arg6[%c0_104, %c0_105] : memref<1x512xf32, #tpu.memory_space<vmem>>, vector<1x512xf32>
    %358 = arith.addf %356, %357 : vector<1x512xf32>
    %359 = vector.extract_strided_slice %358 {offsets = [0, 0], sizes = [1, 384], strides = [1, 1]} : vector<1x512xf32> to vector<1x384xf32>
    %360 = arith.negf %359 : vector<1x384xf32>
    %361 = math.exp %360 : vector<1x384xf32>
    %cst_106 = arith.constant 1.000000e+00 : f32
    %362 = vector.broadcast %cst_106 : f32 to vector<1x384xf32>
    %363 = arith.addf %362, %361 : vector<1x384xf32>
    %364 = arith.divf %362, %363 : vector<1x384xf32>
    %365 = vector.extract_strided_slice %358 {offsets = [0, 384], sizes = [1, 128], strides = [1, 1]} : vector<1x512xf32> to vector<1x128xf32>
    %366 = math.tanh %365 : vector<1x128xf32>
    %367 = vector.extract_strided_slice %364 {offsets = [0, 0], sizes = [1, 128], strides = [1, 1]} : vector<1x384xf32> to vector<1x128xf32>
    %368 = vector.extract_strided_slice %364 {offsets = [0, 128], sizes = [1, 128], strides = [1, 1]} : vector<1x384xf32> to vector<1x128xf32>
    %369 = vector.extract_strided_slice %364 {offsets = [0, 256], sizes = [1, 128], strides = [1, 1]} : vector<1x384xf32> to vector<1x128xf32>
    %370 = arith.mulf %368, %292 : vector<1x128xf32>
    %371 = arith.mulf %367, %366 : vector<1x128xf32>
    %372 = arith.addf %370, %371 : vector<1x128xf32>
    %373 = math.tanh %372 : vector<1x128xf32>
    %374 = arith.mulf %369, %373 : vector<1x128xf32>
    %375 = arith.truncf %374 : vector<1x128xf32> to vector<1x128xbf16>
    %c0_107 = arith.constant 0 : index
    %c0_108 = arith.constant 0 : index
    %376 = vector.load %arg7[%c0_107, %c0_108] : memref<128x128xbf16, #tpu.memory_space<vmem>>, vector<128x128xbf16>
    %cst_109 = arith.constant dense<0.000000e+00> : vector<1x128xf32>
    %377 = tpu.matmul %375, %376, %cst_109 {dimension_numbers = #tpu.dot_dimension_numbers<[1], [0], [0], [1], [0, 0, 1, 1], [], []>} : vector<1x128xbf16>, vector<128x128xbf16>, vector<1x128xf32> -> vector<1x128xf32>
    %c0_110 = arith.constant 0 : index
    %c0_111 = arith.constant 0 : index
    %378 = vector.load %arg8[%c0_110, %c0_111] : memref<1x128xf32, #tpu.memory_space<vmem>>, vector<1x128xf32>
    %379 = arith.addf %377, %378 : vector<1x128xf32>
    %cst_112 = arith.constant dense<0xFF800000> : vector<1xf32>
    %380 = vector.multi_reduction <maximumf>, %379, %cst_112 [1] : vector<1x128xf32> to vector<1xf32>
    %381 = vector.shape_cast %380 : vector<1xf32> to vector<1x1xf32>
    %382 = vector.broadcast %381 : vector<1x1xf32> to vector<1x128xf32>
    %383 = arith.cmpf oeq, %379, %382 : vector<1x128xf32>
    %cst_113 = arith.constant 1.280000e+02 : f32
    %384 = vector.broadcast %cst_113 : f32 to vector<1x128xf32>
    %385 = arith.select %383, %1, %384 : vector<1x128xi1>, vector<1x128xf32>
    %cst_114 = arith.constant dense<0x7F800000> : vector<1xf32>
    %386 = vector.multi_reduction <minimumf>, %385, %cst_114 [1] : vector<1x128xf32> to vector<1xf32>
    %387 = vector.shape_cast %386 : vector<1xf32> to vector<1x1xf32>
    %388 = vector.broadcast %387 : vector<1x1xf32> to vector<1x128xf32>
    %389 = arith.cmpf oeq, %385, %388 : vector<1x128xf32>
    %390 = arith.extui %389 : vector<1x128xi1> to vector<1x128xi32>
    %391 = arith.sitofp %390 : vector<1x128xi32> to vector<1x128xf32>
    %c5 = arith.constant 5 : index
    %392 = memref.load %arg1[%c5] : memref<8xi32, #tpu.memory_space<smem>>
    %393 = vector.broadcast %392 : i32 to vector<1x128xi32>
    %394 = arith.cmpi eq, %0, %393 : vector<1x128xi32>
    %395 = arith.extui %394 : vector<1x128xi1> to vector<1x128xi32>
    %396 = arith.sitofp %395 : vector<1x128xi32> to vector<1x128xf32>
    %c5_115 = arith.constant 5 : index
    %397 = memref.load %arg2[%c5_115] : memref<8xi32, #tpu.memory_space<smem>>
    %398 = arith.sitofp %397 : i32 to f32
    %399 = vector.broadcast %398 : f32 to vector<1x128xf32>
    %400 = arith.mulf %396, %399 : vector<1x128xf32>
    %cst_116 = arith.constant 1.000000e+00 : f32
    %401 = arith.subf %cst_116, %398 : f32
    %402 = vector.broadcast %401 : f32 to vector<1x128xf32>
    %403 = arith.mulf %379, %402 : vector<1x128xf32>
    %404 = arith.addf %400, %403 : vector<1x128xf32>
    %405 = vector.broadcast %398 : f32 to vector<1x128xf32>
    %406 = arith.mulf %396, %405 : vector<1x128xf32>
    %cst_117 = arith.constant 1.000000e+00 : f32
    %407 = arith.subf %cst_117, %398 : f32
    %408 = vector.broadcast %407 : f32 to vector<1x128xf32>
    %409 = arith.mulf %391, %408 : vector<1x128xf32>
    %410 = arith.addf %406, %409 : vector<1x128xf32>
    %411 = tpu.concatenate %410, %352 in 1 : vector<1x128xf32>, vector<1x128xf32> -> vector<1x256xf32>
    %412 = arith.truncf %411 : vector<1x256xf32> to vector<1x256xbf16>
    %c0_118 = arith.constant 0 : index
    %c0_119 = arith.constant 0 : index
    %413 = vector.load %arg3[%c0_118, %c0_119] : memref<256x512xbf16, #tpu.memory_space<vmem>>, vector<256x512xbf16>
    %cst_120 = arith.constant dense<0.000000e+00> : vector<1x512xf32>
    %414 = tpu.matmul %412, %413, %cst_120 {dimension_numbers = #tpu.dot_dimension_numbers<[1], [0], [0], [1], [0, 0, 1, 1], [], []>} : vector<1x256xbf16>, vector<256x512xbf16>, vector<1x512xf32> -> vector<1x512xf32>
    %c0_121 = arith.constant 0 : index
    %c0_122 = arith.constant 0 : index
    %415 = vector.load %arg4[%c0_121, %c0_122] : memref<1x512xf32, #tpu.memory_space<vmem>>, vector<1x512xf32>
    %416 = arith.addf %414, %415 : vector<1x512xf32>
    %417 = vector.extract_strided_slice %416 {offsets = [0, 0], sizes = [1, 384], strides = [1, 1]} : vector<1x512xf32> to vector<1x384xf32>
    %418 = arith.negf %417 : vector<1x384xf32>
    %419 = math.exp %418 : vector<1x384xf32>
    %cst_123 = arith.constant 1.000000e+00 : f32
    %420 = vector.broadcast %cst_123 : f32 to vector<1x384xf32>
    %421 = arith.addf %420, %419 : vector<1x384xf32>
    %422 = arith.divf %420, %421 : vector<1x384xf32>
    %423 = vector.extract_strided_slice %416 {offsets = [0, 384], sizes = [1, 128], strides = [1, 1]} : vector<1x512xf32> to vector<1x128xf32>
    %424 = math.tanh %423 : vector<1x128xf32>
    %425 = vector.extract_strided_slice %422 {offsets = [0, 0], sizes = [1, 128], strides = [1, 1]} : vector<1x384xf32> to vector<1x128xf32>
    %426 = vector.extract_strided_slice %422 {offsets = [0, 128], sizes = [1, 128], strides = [1, 1]} : vector<1x384xf32> to vector<1x128xf32>
    %427 = vector.extract_strided_slice %422 {offsets = [0, 256], sizes = [1, 128], strides = [1, 1]} : vector<1x384xf32> to vector<1x128xf32>
    %428 = arith.mulf %426, %350 : vector<1x128xf32>
    %429 = arith.mulf %425, %424 : vector<1x128xf32>
    %430 = arith.addf %428, %429 : vector<1x128xf32>
    %431 = math.tanh %430 : vector<1x128xf32>
    %432 = arith.mulf %427, %431 : vector<1x128xf32>
    %433 = tpu.concatenate %432, %374 in 1 : vector<1x128xf32>, vector<1x128xf32> -> vector<1x256xf32>
    %434 = arith.truncf %433 : vector<1x256xf32> to vector<1x256xbf16>
    %c0_124 = arith.constant 0 : index
    %c0_125 = arith.constant 0 : index
    %435 = vector.load %arg5[%c0_124, %c0_125] : memref<256x512xbf16, #tpu.memory_space<vmem>>, vector<256x512xbf16>
    %cst_126 = arith.constant dense<0.000000e+00> : vector<1x512xf32>
    %436 = tpu.matmul %434, %435, %cst_126 {dimension_numbers = #tpu.dot_dimension_numbers<[1], [0], [0], [1], [0, 0, 1, 1], [], []>} : vector<1x256xbf16>, vector<256x512xbf16>, vector<1x512xf32> -> vector<1x512xf32>
    %c0_127 = arith.constant 0 : index
    %c0_128 = arith.constant 0 : index
    %437 = vector.load %arg6[%c0_127, %c0_128] : memref<1x512xf32, #tpu.memory_space<vmem>>, vector<1x512xf32>
    %438 = arith.addf %436, %437 : vector<1x512xf32>
    %439 = vector.extract_strided_slice %438 {offsets = [0, 0], sizes = [1, 384], strides = [1, 1]} : vector<1x512xf32> to vector<1x384xf32>
    %440 = arith.negf %439 : vector<1x384xf32>
    %441 = math.exp %440 : vector<1x384xf32>
    %cst_129 = arith.constant 1.000000e+00 : f32
    %442 = vector.broadcast %cst_129 : f32 to vector<1x384xf32>
    %443 = arith.addf %442, %441 : vector<1x384xf32>
    %444 = arith.divf %442, %443 : vector<1x384xf32>
    %445 = vector.extract_strided_slice %438 {offsets = [0, 384], sizes = [1, 128], strides = [1, 1]} : vector<1x512xf32> to vector<1x128xf32>
    %446 = math.tanh %445 : vector<1x128xf32>
    %447 = vector.extract_strided_slice %444 {offsets = [0, 0], sizes = [1, 128], strides = [1, 1]} : vector<1x384xf32> to vector<1x128xf32>
    %448 = vector.extract_strided_slice %444 {offsets = [0, 128], sizes = [1, 128], strides = [1, 1]} : vector<1x384xf32> to vector<1x128xf32>
    %449 = vector.extract_strided_slice %444 {offsets = [0, 256], sizes = [1, 128], strides = [1, 1]} : vector<1x384xf32> to vector<1x128xf32>
    %450 = arith.mulf %448, %372 : vector<1x128xf32>
    %451 = arith.mulf %447, %446 : vector<1x128xf32>
    %452 = arith.addf %450, %451 : vector<1x128xf32>
    %453 = math.tanh %452 : vector<1x128xf32>
    %454 = arith.mulf %449, %453 : vector<1x128xf32>
    %455 = arith.truncf %454 : vector<1x128xf32> to vector<1x128xbf16>
    %c0_130 = arith.constant 0 : index
    %c0_131 = arith.constant 0 : index
    %456 = vector.load %arg7[%c0_130, %c0_131] : memref<128x128xbf16, #tpu.memory_space<vmem>>, vector<128x128xbf16>
    %cst_132 = arith.constant dense<0.000000e+00> : vector<1x128xf32>
    %457 = tpu.matmul %455, %456, %cst_132 {dimension_numbers = #tpu.dot_dimension_numbers<[1], [0], [0], [1], [0, 0, 1, 1], [], []>} : vector<1x128xbf16>, vector<128x128xbf16>, vector<1x128xf32> -> vector<1x128xf32>
    %c0_133 = arith.constant 0 : index
    %c0_134 = arith.constant 0 : index
    %458 = vector.load %arg8[%c0_133, %c0_134] : memref<1x128xf32, #tpu.memory_space<vmem>>, vector<1x128xf32>
    %459 = arith.addf %457, %458 : vector<1x128xf32>
    %cst_135 = arith.constant dense<0xFF800000> : vector<1xf32>
    %460 = vector.multi_reduction <maximumf>, %459, %cst_135 [1] : vector<1x128xf32> to vector<1xf32>
    %461 = vector.shape_cast %460 : vector<1xf32> to vector<1x1xf32>
    %462 = vector.broadcast %461 : vector<1x1xf32> to vector<1x128xf32>
    %463 = arith.cmpf oeq, %459, %462 : vector<1x128xf32>
    %cst_136 = arith.constant 1.280000e+02 : f32
    %464 = vector.broadcast %cst_136 : f32 to vector<1x128xf32>
    %465 = arith.select %463, %1, %464 : vector<1x128xi1>, vector<1x128xf32>
    %cst_137 = arith.constant dense<0x7F800000> : vector<1xf32>
    %466 = vector.multi_reduction <minimumf>, %465, %cst_137 [1] : vector<1x128xf32> to vector<1xf32>
    %467 = vector.shape_cast %466 : vector<1xf32> to vector<1x1xf32>
    %468 = vector.broadcast %467 : vector<1x1xf32> to vector<1x128xf32>
    %469 = arith.cmpf oeq, %465, %468 : vector<1x128xf32>
    %470 = arith.extui %469 : vector<1x128xi1> to vector<1x128xi32>
    %471 = arith.sitofp %470 : vector<1x128xi32> to vector<1x128xf32>
    %c6 = arith.constant 6 : index
    %472 = memref.load %arg1[%c6] : memref<8xi32, #tpu.memory_space<smem>>
    %473 = vector.broadcast %472 : i32 to vector<1x128xi32>
    %474 = arith.cmpi eq, %0, %473 : vector<1x128xi32>
    %475 = arith.extui %474 : vector<1x128xi1> to vector<1x128xi32>
    %476 = arith.sitofp %475 : vector<1x128xi32> to vector<1x128xf32>
    %c6_138 = arith.constant 6 : index
    %477 = memref.load %arg2[%c6_138] : memref<8xi32, #tpu.memory_space<smem>>
    %478 = arith.sitofp %477 : i32 to f32
    %479 = vector.broadcast %478 : f32 to vector<1x128xf32>
    %480 = arith.mulf %476, %479 : vector<1x128xf32>
    %cst_139 = arith.constant 1.000000e+00 : f32
    %481 = arith.subf %cst_139, %478 : f32
    %482 = vector.broadcast %481 : f32 to vector<1x128xf32>
    %483 = arith.mulf %459, %482 : vector<1x128xf32>
    %484 = arith.addf %480, %483 : vector<1x128xf32>
    %485 = vector.broadcast %478 : f32 to vector<1x128xf32>
    %486 = arith.mulf %476, %485 : vector<1x128xf32>
    %cst_140 = arith.constant 1.000000e+00 : f32
    %487 = arith.subf %cst_140, %478 : f32
    %488 = vector.broadcast %487 : f32 to vector<1x128xf32>
    %489 = arith.mulf %471, %488 : vector<1x128xf32>
    %490 = arith.addf %486, %489 : vector<1x128xf32>
    %491 = tpu.concatenate %490, %432 in 1 : vector<1x128xf32>, vector<1x128xf32> -> vector<1x256xf32>
    %492 = arith.truncf %491 : vector<1x256xf32> to vector<1x256xbf16>
    %c0_141 = arith.constant 0 : index
    %c0_142 = arith.constant 0 : index
    %493 = vector.load %arg3[%c0_141, %c0_142] : memref<256x512xbf16, #tpu.memory_space<vmem>>, vector<256x512xbf16>
    %cst_143 = arith.constant dense<0.000000e+00> : vector<1x512xf32>
    %494 = tpu.matmul %492, %493, %cst_143 {dimension_numbers = #tpu.dot_dimension_numbers<[1], [0], [0], [1], [0, 0, 1, 1], [], []>} : vector<1x256xbf16>, vector<256x512xbf16>, vector<1x512xf32> -> vector<1x512xf32>
    %c0_144 = arith.constant 0 : index
    %c0_145 = arith.constant 0 : index
    %495 = vector.load %arg4[%c0_144, %c0_145] : memref<1x512xf32, #tpu.memory_space<vmem>>, vector<1x512xf32>
    %496 = arith.addf %494, %495 : vector<1x512xf32>
    %497 = vector.extract_strided_slice %496 {offsets = [0, 0], sizes = [1, 384], strides = [1, 1]} : vector<1x512xf32> to vector<1x384xf32>
    %498 = arith.negf %497 : vector<1x384xf32>
    %499 = math.exp %498 : vector<1x384xf32>
    %cst_146 = arith.constant 1.000000e+00 : f32
    %500 = vector.broadcast %cst_146 : f32 to vector<1x384xf32>
    %501 = arith.addf %500, %499 : vector<1x384xf32>
    %502 = arith.divf %500, %501 : vector<1x384xf32>
    %503 = vector.extract_strided_slice %496 {offsets = [0, 384], sizes = [1, 128], strides = [1, 1]} : vector<1x512xf32> to vector<1x128xf32>
    %504 = math.tanh %503 : vector<1x128xf32>
    %505 = vector.extract_strided_slice %502 {offsets = [0, 0], sizes = [1, 128], strides = [1, 1]} : vector<1x384xf32> to vector<1x128xf32>
    %506 = vector.extract_strided_slice %502 {offsets = [0, 128], sizes = [1, 128], strides = [1, 1]} : vector<1x384xf32> to vector<1x128xf32>
    %507 = vector.extract_strided_slice %502 {offsets = [0, 256], sizes = [1, 128], strides = [1, 1]} : vector<1x384xf32> to vector<1x128xf32>
    %508 = arith.mulf %506, %430 : vector<1x128xf32>
    %509 = arith.mulf %505, %504 : vector<1x128xf32>
    %510 = arith.addf %508, %509 : vector<1x128xf32>
    %511 = math.tanh %510 : vector<1x128xf32>
    %512 = arith.mulf %507, %511 : vector<1x128xf32>
    %513 = tpu.concatenate %512, %454 in 1 : vector<1x128xf32>, vector<1x128xf32> -> vector<1x256xf32>
    %514 = arith.truncf %513 : vector<1x256xf32> to vector<1x256xbf16>
    %c0_147 = arith.constant 0 : index
    %c0_148 = arith.constant 0 : index
    %515 = vector.load %arg5[%c0_147, %c0_148] : memref<256x512xbf16, #tpu.memory_space<vmem>>, vector<256x512xbf16>
    %cst_149 = arith.constant dense<0.000000e+00> : vector<1x512xf32>
    %516 = tpu.matmul %514, %515, %cst_149 {dimension_numbers = #tpu.dot_dimension_numbers<[1], [0], [0], [1], [0, 0, 1, 1], [], []>} : vector<1x256xbf16>, vector<256x512xbf16>, vector<1x512xf32> -> vector<1x512xf32>
    %c0_150 = arith.constant 0 : index
    %c0_151 = arith.constant 0 : index
    %517 = vector.load %arg6[%c0_150, %c0_151] : memref<1x512xf32, #tpu.memory_space<vmem>>, vector<1x512xf32>
    %518 = arith.addf %516, %517 : vector<1x512xf32>
    %519 = vector.extract_strided_slice %518 {offsets = [0, 0], sizes = [1, 384], strides = [1, 1]} : vector<1x512xf32> to vector<1x384xf32>
    %520 = arith.negf %519 : vector<1x384xf32>
    %521 = math.exp %520 : vector<1x384xf32>
    %cst_152 = arith.constant 1.000000e+00 : f32
    %522 = vector.broadcast %cst_152 : f32 to vector<1x384xf32>
    %523 = arith.addf %522, %521 : vector<1x384xf32>
    %524 = arith.divf %522, %523 : vector<1x384xf32>
    %525 = vector.extract_strided_slice %518 {offsets = [0, 384], sizes = [1, 128], strides = [1, 1]} : vector<1x512xf32> to vector<1x128xf32>
    %526 = math.tanh %525 : vector<1x128xf32>
    %527 = vector.extract_strided_slice %524 {offsets = [0, 0], sizes = [1, 128], strides = [1, 1]} : vector<1x384xf32> to vector<1x128xf32>
    %528 = vector.extract_strided_slice %524 {offsets = [0, 128], sizes = [1, 128], strides = [1, 1]} : vector<1x384xf32> to vector<1x128xf32>
    %529 = vector.extract_strided_slice %524 {offsets = [0, 256], sizes = [1, 128], strides = [1, 1]} : vector<1x384xf32> to vector<1x128xf32>
    %530 = arith.mulf %528, %452 : vector<1x128xf32>
    %531 = arith.mulf %527, %526 : vector<1x128xf32>
    %532 = arith.addf %530, %531 : vector<1x128xf32>
    %533 = math.tanh %532 : vector<1x128xf32>
    %534 = arith.mulf %529, %533 : vector<1x128xf32>
    %535 = arith.truncf %534 : vector<1x128xf32> to vector<1x128xbf16>
    %c0_153 = arith.constant 0 : index
    %c0_154 = arith.constant 0 : index
    %536 = vector.load %arg7[%c0_153, %c0_154] : memref<128x128xbf16, #tpu.memory_space<vmem>>, vector<128x128xbf16>
    %cst_155 = arith.constant dense<0.000000e+00> : vector<1x128xf32>
    %537 = tpu.matmul %535, %536, %cst_155 {dimension_numbers = #tpu.dot_dimension_numbers<[1], [0], [0], [1], [0, 0, 1, 1], [], []>} : vector<1x128xbf16>, vector<128x128xbf16>, vector<1x128xf32> -> vector<1x128xf32>
    %c0_156 = arith.constant 0 : index
    %c0_157 = arith.constant 0 : index
    %538 = vector.load %arg8[%c0_156, %c0_157] : memref<1x128xf32, #tpu.memory_space<vmem>>, vector<1x128xf32>
    %539 = arith.addf %537, %538 : vector<1x128xf32>
    %c7 = arith.constant 7 : index
    %540 = memref.load %arg1[%c7] : memref<8xi32, #tpu.memory_space<smem>>
    %541 = vector.broadcast %540 : i32 to vector<1x128xi32>
    %542 = arith.cmpi eq, %0, %541 : vector<1x128xi32>
    %543 = arith.extui %542 : vector<1x128xi1> to vector<1x128xi32>
    %544 = arith.sitofp %543 : vector<1x128xi32> to vector<1x128xf32>
    %c7_158 = arith.constant 7 : index
    %545 = memref.load %arg2[%c7_158] : memref<8xi32, #tpu.memory_space<smem>>
    %546 = arith.sitofp %545 : i32 to f32
    %547 = vector.broadcast %546 : f32 to vector<1x128xf32>
    %548 = arith.mulf %544, %547 : vector<1x128xf32>
    %cst_159 = arith.constant 1.000000e+00 : f32
    %549 = arith.subf %cst_159, %546 : f32
    %550 = vector.broadcast %549 : f32 to vector<1x128xf32>
    %551 = arith.mulf %539, %550 : vector<1x128xf32>
    %552 = arith.addf %548, %551 : vector<1x128xf32>
    %553 = tpu.concatenate %6, %84, %164, %244, %324, %404, %484, %552 in 0 : vector<1x128xf32>, vector<1x128xf32>, vector<1x128xf32>, vector<1x128xf32>, vector<1x128xf32>, vector<1x128xf32>, vector<1x128xf32>, vector<1x128xf32> -> vector<8x128xf32>
    %c0_160 = arith.constant 0 : index
    %c0_161 = arith.constant 0 : index
    %554 = vector.load %arg9[%c0_160, %c0_161] : memref<8x128xf32, #tpu.memory_space<vmem>>, vector<8x128xf32>
    tpu.vector_store %arg9[%c0_160, %c0_161], %553 {strides = array<i32>} : memref<8x128xf32, #tpu.memory_space<vmem>>, vector<8x128xf32>,
    %555 = tpu.concatenate %512, %534, %510, %532 in 0 : vector<1x128xf32>, vector<1x128xf32>, vector<1x128xf32>, vector<1x128xf32> -> vector<4x128xf32>
    %c0_162 = arith.constant 0 : index
    %c0_163 = arith.constant 0 : index
    %556 = vector.load %arg10[%c0_162, %c0_163] : memref<4x128xf32, #tpu.memory_space<vmem>>, vector<4x128xf32>
    tpu.vector_store %arg10[%c0_162, %c0_163], %555 {strides = array<i32>} : memref<4x128xf32, #tpu.memory_space<vmem>>, vector<4x128xf32>,
    return
  }
  func.func @transform_0(%arg0: i32, %arg1: memref<8xi32, #tpu.memory_space<smem>>, %arg2: memref<8xi32, #tpu.memory_space<smem>>) -> (i32, i32) {
    %c0_i32 = arith.constant 0 : i32
    %c0_i32_0 = arith.constant 0 : i32
    %c0_i32_1 = arith.constant 0 : i32
    return %c0_i32, %c0_i32_0 : i32, i32
  }
  func.func @transform_1(%arg0: i32, %arg1: memref<8xi32, #tpu.memory_space<smem>>, %arg2: memref<8xi32, #tpu.memory_space<smem>>) -> (i32, i32) {
    %c0_i32 = arith.constant 0 : i32
    %c0_i32_0 = arith.constant 0 : i32
    %c0_i32_1 = arith.constant 0 : i32
    return %c0_i32, %c0_i32_0 : i32, i32
  }
  func.func @transform_2(%arg0: i32, %arg1: memref<8xi32, #tpu.memory_space<smem>>, %arg2: memref<8xi32, #tpu.memory_space<smem>>) -> (i32, i32) {
    %c0_i32 = arith.constant 0 : i32
    %c0_i32_0 = arith.constant 0 : i32
    %c0_i32_1 = arith.constant 0 : i32
    return %c0_i32, %c0_i32_0 : i32, i32
  }
  func.func @transform_3(%arg0: i32, %arg1: memref<8xi32, #tpu.memory_space<smem>>, %arg2: memref<8xi32, #tpu.memory_space<smem>>) -> (i32, i32) {
    %c0_i32 = arith.constant 0 : i32
    %c0_i32_0 = arith.constant 0 : i32
    %c0_i32_1 = arith.constant 0 : i32
    return %c0_i32, %c0_i32_0 : i32, i32
  }
  func.func @transform_4(%arg0: i32, %arg1: memref<8xi32, #tpu.memory_space<smem>>, %arg2: memref<8xi32, #tpu.memory_space<smem>>) -> (i32, i32) {
    %c0_i32 = arith.constant 0 : i32
    %c0_i32_0 = arith.constant 0 : i32
    %c0_i32_1 = arith.constant 0 : i32
    return %c0_i32, %c0_i32_0 : i32, i32
  }
  func.func @transform_5(%arg0: i32, %arg1: memref<8xi32, #tpu.memory_space<smem>>, %arg2: memref<8xi32, #tpu.memory_space<smem>>) -> (i32, i32) {
    %c0_i32 = arith.constant 0 : i32
    %c0_i32_0 = arith.constant 0 : i32
    %c0_i32_1 = arith.constant 0 : i32
    return %c0_i32, %c0_i32_0 : i32, i32
  }
  func.func @transform_6(%arg0: i32, %arg1: memref<8xi32, #tpu.memory_space<smem>>, %arg2: memref<8xi32, #tpu.memory_space<smem>>) -> (i32, i32) {
    %c0_i32 = arith.constant 0 : i32
    %c0_i32_0 = arith.constant 0 : i32
    %c0_i32_1 = arith.constant 0 : i32
    return %c0_i32, %c0_i32_0 : i32, i32
  }
  func.func @transform_7(%arg0: i32, %arg1: memref<8xi32, #tpu.memory_space<smem>>, %arg2: memref<8xi32, #tpu.memory_space<smem>>) -> (i32, i32) {
    %c0_i32 = arith.constant 0 : i32
    %c0_i32_0 = arith.constant 0 : i32
    %c0_i32_1 = arith.constant 0 : i32
    return %c0_i32, %c0_i32_0 : i32, i32
  }
}

</mosaic_0001>

<bundles_post_ra>
// kernel: model_forward.1
= control target key start
LH: loop header
LB: loop body
LE: loop exit
PB: predicated region body
PF: predicated region fallthrough
CT: control target
= control target key end

     0   :  { %s6617_s0 = inlined_call_operand.vmem [shape: s32[8], index: 0, kind: input, shape index: {}]   ;;  %s6618_s2 = inlined_call_operand.hbm [shape: bf16[256,512], index: 2, kind: input, shape index: {}]   ;;  %s6619_s3 = inlined_call_operand.vmem [shape: f32[1,512], index: 3, kind: input, shape index: {}]   ;;  %s6620_s4 = inlined_call_operand.hbm [shape: bf16[256,512], index: 4, kind: input, shape index: {}]   ;;  %s6621_s5 = inlined_call_operand.vmem [shape: f32[1,512], index: 5, kind: input, shape index: {}]   ;;  %s6622_s6 = inlined_call_operand.hbm [shape: bf16[128,128], index: 6, kind: input, shape index: {}]   ;;  %s6623_s7 = inlined_call_operand.vmem [shape: f32[1,128], index: 7, kind: input, shape index: {}]   ;;  %s6624_s8 = inlined_call_operand.hbm [shape: f32[8,128], index: 8, kind: output, shape index: {0}]   ;;  %s6625_s9 = inlined_call_operand.vmem [shape: f32[4,128], index: 9, kind: output, shape index: {1}]   ;;  %s6626_s1 = inlined_call_operand.vmem [shape: s32[8], index: 1, kind: input, shape index: {}]  }
   0x1   :  { %s15_s11 = sshll.u32 %s6617_s0, 4  ;;  %s19_s14 = sshll.u32 %s6626_s1, 4  ;;  %s16_s11 = int_to_ptr.vmem [resolvable:$true] %s15_s11  ;;  %s20_s14 = int_to_ptr.vmem [resolvable:$true] %s19_s14 }
   0x2   :  { %s4242_s15 = scalar_lea.vmem %s16_s11, 16  ;;  %p4247_p1 = scmp.lt.s32.totalorder %s16_s11, %s16_s11 }
   0x3   :  { %p4243_p0 = scmp.ne.s32.totalorder %s16_s11, %s4242_s15  ;;  %p4248_p2 = scmp.lt.s32.totalorder %s4242_s15, %s4242_s15 }
   0x5   :  { %p4249_p3 = por %p4248_p2, %p4247_p1 }
   0x7   :  { %p4250_p4 = pnand %p4249_p3, %p4243_p0 }
   0x9   :  { %4253 = shalt.err (!%p4250_p4)  }
   0xa   :  { %s4362_s16 = smov [#allocation3]   ;;  %s4254_s17 = scalar_lea.vmem %s20_s14, 16 }
   0xb   :  { %18 = dma.vmem_to_smem %s16_s11, 16, %s4362_s16, [#allocation2] }
   0xc   :  { %p4255_p5 = scmp.ne.s32.totalorder %s20_s14, %s4254_s17  ;;  %p4259_p6 = scmp.lt.s32.totalorder %s20_s14, %s20_s14 }
   0xd   :  { %p4260_p7 = scmp.lt.s32.totalorder %s4254_s17, %s4254_s17 }
   0xf   :  { %p4261_p8 = por %p4260_p7, %p4259_p6 }
  0x11   :  { %p4262_p9 = pnand %p4261_p8, %p4255_p5 }
  0x13   :  { %4265 = shalt.err (!%p4262_p9)  }
  0x14   :  { %s4363_s0 = smov [#allocation4]  }
  0x15   :  { %22 = dma.vmem_to_smem %s20_s14, 16, %s4363_s0, [#allocation2] }
  0x16   :  { %4354 = dma.done.wait [#allocation2], 32 }
  0x17   :  { %4355 = vsyncadd [#allocation2], 4294967264 }
  0x18   :  { %24 = sfence }
  0x19   :  { %25 = vsyncpa [#allocation6], 0 }
  0x1a   :  { %26 = vsyncpa [#allocation9], 0 }
  0x1b   :  { %27 = vsyncpa [#allocation7], 0  ;;  %s4364_s1 = smov [#allocation8]   ;;  %s4365_s19 = smov [#allocation5]  }
  0x1c   :  { %s47_s18 = sshll.u32 %s4364_s1, 4  ;;  %s33_s20 = sshll.u32 %s4365_s19, 4  ;;  %s48_s18 = int_to_ptr.vmem [resolvable:$true] %s47_s18  ;;  %s4432_s20 = int_to_ptr.vmem [resolvable:$true] %s33_s20 }
  0x1d   :  { %s4266_s23 = scalar_lea.hbm %s6620_s4, 8192 }
  0x1e   :  { %p4267_p10 = scmp.ne.s32.totalorder %s6620_s4, %s4266_s23  ;;  %p4270_p11 = scmp.lt.u32.totalorder %s4266_s23, %s6620_s4 }
  0x20   :  { %p4272_p12 = pnand %p4270_p11, %p4267_p10 }
  0x22   :  { %4275 = shalt.err (!%p4272_p12)
}
  0x23   :  { %s4276_s28 = scalar_lea.vmem %s48_s18, 8192  ;;  %p4281_p0 = scmp.lt.s32.totalorder %s48_s18, %s48_s18 }
  0x24   :  { %p4277_p13 = scmp.ne.s32.totalorder %s48_s18, %s4276_s28  ;;  %p4282_p1 = scmp.lt.s32.totalorder %s4276_s28, %s4276_s28 }
  0x26   :  { %p4283_p2 = por %p4282_p1, %p4281_p0 }
  0x28   :  { %p4284_p3 = pnand %p4283_p2, %p4277_p13 }
  0x2a   :  { %4287 = shalt.err (!%p4284_p3)
}
  0x2b   :  { %s4366_s29 = smov 256   ;;  %s4367_s30 = smov 16  }
  0x2c   :  { %53 = dma.hbm_to_vmem [thread:$0]  %s6620_s4, 8192, %s48_s18, [#allocation9], %s4366_s29, %s4366_s29, %s4367_s30  }
  0x2d   :  { %s4288_s14 = scalar_lea.hbm %s6618_s2, 8192 }
  0x2e   :  { %p4289_p4 = scmp.ne.s32.totalorder %s6618_s2, %s4288_s14  ;;  %p4292_p5 = scmp.lt.u32.totalorder %s4288_s14, %s6618_s2 }
  0x30   :  { %p4294_p6 = pnand %p4292_p5, %p4289_p4 }
  0x32   :  { %4297 = shalt.err (!%p4294_p6)
}
  0x33   :  { %s4298_s1 = scalar_lea.vmem %s4432_s20, 8192  ;;  %p4303_p8 = scmp.lt.s32.totalorder %s4432_s20, %s4432_s20 }
  0x34   :  { %p4299_p7 = scmp.ne.s32.totalorder %s4432_s20, %s4298_s1  ;;  %p4304_p9 = scmp.lt.s32.totalorder %s4298_s1, %s4298_s1 }
  0x36   :  { %p4305_p10 = por %p4304_p9, %p4303_p8 }
  0x38   :  { %p4306_p11 = pnand %p4305_p10, %p4299_p7 }
  0x3a   :  { %4309 = shalt.err (!%p4306_p11)
}
  0x3b   :  { %39 = dma.hbm_to_vmem [thread:$0]  %s6618_s2, 8192, %s4432_s20, [#allocation6], %s4366_s29, %s4366_s29, %s4367_s30  }
  0x3c   :  { %s4368_s19 = smov [#allocation10]   ;;  %s4310_s24 = scalar_lea.hbm %s6622_s6, 1024 }
  0x3d   :  { %s61_s21 = sshll.u32 %s4368_s19, 4  ;;  %p4311_p12 = scmp.ne.s32.totalorder %s6622_s6, %s4310_s24  ;;  %s62_s21 = int_to_ptr.vmem [resolvable:$true] %s61_s21 }
  0x3e   :  { %p4314_p13 = scmp.lt.u32.totalorder %s4310_s24, %s6622_s6 }
  0x40   :  { %p4316_p0 = pnand %p4314_p13, %p4311_p12 }
  0x42   :  { %4319 = shalt.err (!%p4316_p0)
}
  0x43   :  { %s4320_s10 = scalar_lea.vmem %s62_s21, 1024  ;;  %p4325_p2 = scmp.lt.s32.totalorder %s62_s21, %s62_s21 }
  0x44   :  { %p4321_p1 = scmp.ne.s32.totalorder %s62_s21, %s4320_s10  ;;  %p4326_p3 = scmp.lt.s32.totalorder %s4320_s10, %s4320_s10 }
  0x46   :  { %p4327_p4 = por %p4326_p3, %p4325_p2 }
  0x48   :  { %p4328_p5 = pnand %p4327_p4, %p4321_p1 }
  0x4a   :  { %4331 = shalt.err (!%p4328_p5)
}
  0x4b   :  { %s4369_s2 = smov 64   ;;  %s4370_s20 = smov 4  }
  0x4c   :  { %67 = dma.hbm_to_vmem [thread:$0]  %s6622_s6, 1024, %s62_s21, [#allocation9], %s4369_s2, %s4369_s2, %s4370_s20  }
  0x4d   :  { %4356 = dma.done.wait [#allocation6], 8192  }
  0x4e   :  { %4357 = vsyncadd [#allocation6], 4294959104 }
  0x4f   :  { %4358 = dma.done.wait [#allocation9], 9216  }
  0x50   :  { %4359 = vsyncadd [#allocation9], 4294958080  ;;  %v6628_v0 = vmov 0.0|0.0   ;;  %v4477_v1 = vld [vmem:[#allocation5 + $0x4] ss:$16 sps:$4 sm:$0xff]   ;;  %s83_s6 = sld [smem:[#allocation3]]  ;;  %v6627_v48 = vlaneseq }
  0x51   :  { %528 = vmatprep.mubr.bf16.mxu0 %v6628_v0  ;;  %569 = vmatprep.mubr.bf16.mxu1 %v6628_v0  ;;  %v4479_v2 = vld [vmem:[#allocation5] ss:$16 sps:$4 sm:$0xff]   ;;  %v4482_v3 = vld [vmem:[#allocation5 + $0x24] ss:$16 sps:$4 sm:$0xff]   ;;  %v4490_v6 = vld [vmem:[#allocation5 + $0xc] ss:$16 sps:$4 sm:$0xff]  }
  0x52   :  { %496 = vmatprep.subr.bf16.mxu0 %v4477_v1  ;;  %v4485_v4 = vld [vmem:[#allocation5 + $0x20] ss:$16 sps:$4 sm:$0xff]   ;;  %v4488_v5 = vld [vmem:[#allocation5 + $0x44] ss:$16 sps:$4 sm:$0xff]   ;;  %v3430_v7 = vld [vmem:[#allocation5 + $0x8] ss:$16 sps:$4 sm:$0xff]   ;;  %537 = vmatprep.subr.bf16.mxu1 %v4490_v6 }
  0x53   :  { %497 = vmatpush1.bf16.msra.mxu0 %v4479_v2  ;;  %v4493_v8 = vld [vmem:[#allocation5 + $0x40] ss:$16 sps:$4 sm:$0xff]   ;;  %v4497_v9 = vld [vmem:[#allocation5 + $0x64] ss:$16 sps:$4 sm:$0xff]   ;;  %538 = vmatpush1.bf16.msra.mxu1 %v3430_v7  ;;  %v3433_v10 = vld [vmem:[#allocation5 + $0x2c] ss:$16 sps:$4 sm:$0xff]  }
  0x54   :  { %498 = vmatprep.subr.bf16.mxu0 %v4482_v3  ;;  %v3436_v11 = vld [vmem:[#allocation5 + $0x28] ss:$16 sps:$4 sm:$0xff]   ;;  %539 = vmatprep.subr.bf16.mxu1 %v3433_v10  ;;  %v4500_v12 = vld [vmem:[#allocation5 + $0x60] ss:$16 sps:$4 sm:$0xff]   ;;  %v4502_v13 = vld [vmem:[#allocation5 + $0x84] ss:$16 sps:$4 sm:$0xff]  }
  0x55   :  { %v3439_v14 = vld [vmem:[#allocation5 + $0x4c] ss:$16 sps:$4 sm:$0xff]   ;;  %v3442_v15 = vld [vmem:[#allocation5 + $0x48] ss:$16 sps:$4 sm:$0xff]   ;;  %v4506_v17 = vld [vmem:[#allocation5 + $0x80] ss:$16 sps:$4 sm:$0xff]  }
  0x56   :  { %v3445_v16 = vld [vmem:[#allocation5 + $0x6c] ss:$16 sps:$4 sm:$0xff]   ;;  %v4509_v18 = vld [vmem:[#allocation5 + $0xa4] ss:$16 sps:$4 sm:$0xff]   ;;  %v3448_v19 = vld [vmem:[#allocation5 + $0x68] ss:$16 sps:$4 sm:$0xff]   ;;  %v84_v55 = vstv %s83_s6 }
  0x57   :  { %499 = vmatpush1.bf16.msra.mxu0 %v4485_v4  ;;  %540 = vmatpush1.bf16.msra.mxu1 %v3436_v11  ;;  %v3451_v20 = vld [vmem:[#allocation5 + $0x8c] ss:$16 sps:$4 sm:$0xff]   ;;  %v4512_v21 = vld [vmem:[#allocation5 + $0xa0] ss:$16 sps:$4 sm:$0xff]   ;;  %v4514_v22 = vld [vmem:[#allocation5 + $0xc4] ss:$16 sps:$4 sm:$0xff]  }
  0x58   :  { %500 = vmatprep.subr.bf16.mxu0 %v4488_v5  ;;  %541 = vmatprep.subr.bf16.mxu1 %v3439_v14  ;;  %v4517_v23 = vld [vmem:[#allocation5 + $0x88] ss:$16 sps:$4 sm:$0xff]   ;;  %v4519_v24 = vld [vmem:[#allocation5 + $0xac] ss:$16 sps:$4 sm:$0xff]   ;;  %v4522_v25 = vld [vmem:[#allocation5 + $0xc0] ss:$16 sps:$4 sm:$0xff]  }
  0x59   :  { %v4525_v26 = vld [vmem:[#allocation5 + $0xe4] ss:$16 sps:$4 sm:$0xff]   ;;  %v4528_v27 = vld [vmem:[#allocation5 + $0xa8] ss:$16 sps:$4 sm:$0xff]   ;;  %v4531_v28 = vld [vmem:[#allocation5 + $0xcc] ss:$16 sps:$4 sm:$0xff]  }
  0x5a   :  { %v4534_v29 = vld [vmem:[#allocation5 + $0xe0] ss:$16 sps:$4 sm:$0xff]   ;;  %v4536_v30 = vld [vmem:[#allocation5 + $0x104] ss:$16 sps:$4 sm:$0xff]   ;;  %v4540_v31 = vld [vmem:[#allocation5 + $0xc8] ss:$16 sps:$4 sm:$0xff]  }
  0x5b   :  { %501 = vmatpush1.bf16.msra.mxu0 %v4493_v8  ;;  %542 = vmatpush1.bf16.msra.mxu1 %v3442_v15  ;;  %v4543_v32 = vld [vmem:[#allocation5 + $0xec] ss:$16 sps:$4 sm:$0xff]   ;;  %v4546_v33 = vld [vmem:[#allocation5 + $0x100] ss:$16 sps:$4 sm:$0xff]   ;;  %v4549_v34 = vld [vmem:[#allocation5 + $0x124] ss:$16 sps:$4 sm:$0xff]  }
  0x5c   :  { %502 = vmatprep.subr.bf16.mxu0 %v4497_v9  ;;  %543 = vmatprep.subr.bf16.mxu1 %v3445_v16  ;;  %v4552_v35 = vld [vmem:[#allocation5 + $0xe8] ss:$16 sps:$4 sm:$0xff]   ;;  %v4555_v36 = vld [vmem:[#allocation5 + $0x10c] ss:$16 sps:$4 sm:$0xff]   ;;  %v4558_v37 = vld [vmem:[#allocation5 + $0x120] ss:$16 sps:$4 sm:$0xff]  }
  0x5d   :  { %v4560_v38 = vld [vmem:[#allocation5 + $0x144] ss:$16 sps:$4 sm:$0xff]   ;;  %v4564_v39 = vld [vmem:[#allocation5 + $0x108] ss:$16 sps:$4 sm:$0xff]   ;;  %v4567_v40 = vld [vmem:[#allocation5 + $0x12c] ss:$16 sps:$4 sm:$0xff]  }
  0x5e   :  { %v4569_v41 = vld [vmem:[#allocation5 + $0x140] ss:$16 sps:$4 sm:$0xff]   ;;  %v4572_v42 = vld [vmem:[#allocation5 + $0x164] ss:$16 sps:$4 sm:$0xff]   ;;  %v4576_v43 = vld [vmem:[#allocation5 + $0x128] ss:$16 sps:$4 sm:$0xff]  }
  0x5f   :  { %503 = vmatpush1.bf16.msra.mxu0 %v4500_v12  ;;  %544 = vmatpush1.bf16.msra.mxu1 %v3448_v19  ;;  %v4579_v44 = vld [vmem:[#allocation5 + $0x14c] ss:$16 sps:$4 sm:$0xff]   ;;  %v4581_v45 = vld [vmem:[#allocation5 + $0x160] ss:$16 sps:$4 sm:$0xff]   ;;  %v4584_v46 = vld [vmem:[#allocation5 + $0x184] ss:$16 sps:$4 sm:$0xff]  }
  0x60   :  { %504 = vmatprep.subr.bf16.mxu0 %v4502_v13  ;;  %545 = vmatprep.subr.bf16.mxu1 %v3451_v20  ;;  %v4588_v47 = vld [vmem:[#allocation5 + $0x148] ss:$16 sps:$4 sm:$0xff]   ;;  %v4591_v49 = vld [vmem:[#allocation5 + $0x16c] ss:$16 sps:$4 sm:$0xff]   ;;  %v4594_v50 = vld [vmem:[#allocation5 + $0x180] ss:$16 sps:$4 sm:$0xff]  }
  0x61   :  { %6913 = vst [vmem:[#allocation16_spill] sm:$0xff] %v4588_v47  ;;  %6914 = vst [vmem:[#allocation17_spill] sm:$0xff] %v4591_v49  ;;  %v4596_v51 = vld [vmem:[#allocation5 + $0x1a4] ss:$16 sps:$4 sm:$0xff]   ;;  %v4600_v52 = vld [vmem:[#allocation5 + $0x168] ss:$16 sps:$4 sm:$0xff]  }
  0x62   :  { %6915 = vst [vmem:[#allocation18_spill] sm:$0xff] %v4600_v52  ;;  %v4603_v53 = vand.u32 127, %v6627_v48  ;;  %v4606_v54 = vld [vmem:[#allocation5 + $0x18c] ss:$16 sps:$4 sm:$0xff]   ;;  %v4608_v56 = vld [vmem:[#allocation5 + $0x1a0] ss:$16 sps:$4 sm:$0xff]  }
  0x63   :  { %505 = vmatpush1.bf16.msra.mxu0 %v4506_v17  ;;  %546 = vmatpush1.bf16.msra.mxu1 %v4517_v23  ;;  %6917 = vst [vmem:[#allocation20_spill] sm:$0xff] %v4606_v54  ;;  %v4611_v57 = vld [vmem:[#allocation5 + $0x1c4] ss:$16 sps:$4 sm:$0xff]   ;;  %v4615_v58 = vld [vmem:[#allocation5 + $0x188] ss:$16 sps:$4 sm:$0xff]   ;;  %v6919_v59 = vmov 0 }
  0x64   :  { %506 = vmatprep.subr.bf16.mxu0 %v4509_v18  ;;  %547 = vmatprep.subr.bf16.mxu1 %v4519_v24  ;;  %6916 = vst [vmem:[#allocation19_spill] sm:$0xff] %v4603_v53  ;;  %6918 = vst [vmem:[#allocation21_spill] sm:$0xff] %v4615_v58  ;;  %vm4618_vm0 = vcmp.eq.s32.totalorder %v4603_v53, %v84_v55  ;;  %v4622_v60 = vld [vmem:[#allocation5 + $0x1c0] ss:$16 sps:$4 sm:$0xff]   ;;  %v4625_v61 = vld [vmem:[#allocation5 + $0x1ac] ss:$16 sps:$4 sm:$0xff]  }
  0x65   :  { %v6920_v59 = vsel %vm4618_vm0, 4294967295, %v6919_v59  ;;  %6922 = vst [vmem:[#allocation23_spill] sm:$0xff] %v4625_v61  ;;  %v4627_v62 = vld [vmem:[#allocation5 + $0x1e4] ss:$16 sps:$4 sm:$0xff]   ;;  %v4629_v63 = vld [vmem:[#allocation5 + $0x1a8] ss:$16 sps:$4 sm:$0xff]   ;;  %vm3054_vm1 = vmpackc.low %vm4618_vm0, %vm4618_vm0 }
  0x66   :  { %6921 = vst [vmem:[#allocation22_spill] sm:$0xff] %v6920_v59  ;;  %6923 = vst [vmem:[#allocation24_spill] sm:$0xff] %v4629_v63  ;;  %v4635_v7 = vld [vmem:[#allocation5 + $0x1cc] ss:$16 sps:$4 sm:$0xff]   ;;  %v4639_v10 = vld [vmem:[#allocation5 + $0x1e0] ss:$16 sps:$4 sm:$0xff]  }
  0x67   :  { %507 = vmatpush1.bf16.msra.mxu0 %v4512_v21  ;;  %548 = vmatpush1.bf16.msra.mxu1 %v4528_v27  ;;  %6924 = vst [vmem:[#allocation25_spill] sm:$0xff] %v4635_v7  ;;  %v4642_v11 = vld [vmem:[#allocation5 + $0x1c8] ss:$16 sps:$4 sm:$0xff]   ;;  %v4644_v14 = vld [vmem:[#allocation8 + $0x4] ss:$16 sps:$4 sm:$0xff]   ;;  %vm4374_vm2 = vmmov 0  }
  0x68   :  { %508 = vmatprep.subr.bf16.mxu0 %v4514_v22  ;;  %549 = vmatprep.subr.bf16.mxu1 %v4531_v28  ;;  %6925 = vst [vmem:[#allocation26_spill] sm:$0xff] %v4642_v11  ;;  %v4647_v15 = vld [vmem:[#allocation5 + $0x1ec] ss:$16 sps:$4 sm:$0xff]   ;;  %v4652_v16 = vld [vmem:[#allocation8] ss:$16 sps:$4 sm:$0xff]   ;;  %vm1221_vm3 = vcmask 1040384  }
  0x69   :  { %6926 = vst [vmem:[#allocation27_spill] sm:$0xff] %v4647_v15  ;;  %6927 = vst [vmem:[#allocation28_spill] sm:$0xff] %v4652_v16  ;;  %v4654_v19 = vld [vmem:[#allocation5 + $0x1e8] ss:$16 sps:$4 sm:$0xff]   ;;  %v4656_v20 = vld [vmem:[#allocation8 + $0x24] ss:$16 sps:$4 sm:$0xff]  }
  0x6a   :  { %6928 = vst [vmem:[#allocation29_spill] sm:$0xff] %v4654_v19  ;;  %6929 = vst [vmem:[#allocation30_spill] sm:$0xff] %v4656_v20  ;;  %v4659_v55 = vld [vmem:[#allocation8 + $0xc] ss:$16 sps:$4 sm:$0xff]   ;;  %v4664_v48 = vld [vmem:[#allocation8 + $0x20] ss:$16 sps:$4 sm:$0xff]  }
  0x6b   :  { %509 = vmatpush1.bf16.msra.mxu0 %v4522_v25  ;;  %550 = vmatpush1.bf16.msra.mxu1 %v4540_v31  ;;  %6930 = vst [vmem:[#allocation31_spill] sm:$0xff] %v4659_v55  ;;  %6931 = vst [vmem:[#allocation32_spill] sm:$0xff] %v4664_v48  ;;  %v4372_v0 = vmov 1.0|1.0   ;;  %v4671_v53 = vld [vmem:[#allocation8 + $0x8] ss:$16 sps:$4 sm:$0xff]  }
  0x6c   :  { %510 = vmatprep.subr.bf16.mxu0 %v4525_v26  ;;  %551 = vmatprep.subr.bf16.mxu1 %v4543_v32  ;;  %6932 = vst [vmem:[#allocation33_spill] sm:$0xff] %v4671_v53  ;;  %v4704_v59 = vld [vmem:[#allocation8 + $0x48] ss:$16 sps:$4 sm:$0xff]   ;;  %s3137_s15 = sld [smem:[#allocation3 + $0x1]]  ;;  %s3147_s1 = sld [smem:[#allocation3 + $0x2]] }
  0x6d   :  { %6941 = vst [vmem:[#allocation41_spill] sm:$0xff] %v4704_v59  ;;  %s3139_s16 = sld [smem:[#allocation4 + $0x1]]  ;;  %s3149_s4 = sld [smem:[#allocation4 + $0x2]] }
  0x6e   :  { %s3157_s23 = sld [smem:[#allocation3 + $0x3]]  ;;  %s3167_s27 = sld [smem:[#allocation3 + $0x4]] }
  0x6f   :  { %511 = vmatpush1.bf16.msra.mxu0 %v4534_v29  ;;  %552 = vmatpush1.bf16.msra.mxu1 %v4552_v35  ;;  %s3159_s24 = sld [smem:[#allocation4 + $0x3]]  ;;  %s3169_s28 = sld [smem:[#allocation4 + $0x4]] }
  0x70   :  { %512 = vmatprep.subr.bf16.mxu0 %v4536_v30  ;;  %553 = vmatprep.subr.bf16.mxu1 %v4555_v36  ;;  %s3179_s30 = sld [smem:[#allocation4 + $0x5]]  ;;  %s3187_s12 = sld [smem:[#allocation3 + $0x6]] }
  0x73   :  { %513 = vmatpush1.bf16.msra.mxu0 %v4546_v33  ;;  %554 = vmatpush1.bf16.msra.mxu1 %v4564_v39  ;;  %s1239_s17 = scvt.s32.f32 %s3139_s16  ;;  %s1520_s18 = scvt.s32.f32 %s3149_s4 }
  0x74   :  { %514 = vmatprep.subr.bf16.mxu0 %v4549_v34  ;;  %555 = vmatprep.subr.bf16.mxu1 %v4567_v40  ;;  %s3196_s16 = sld [smem:[#allocation3 + $0x7]] }
  0x75   :  { %s5061_s0 = ssub.f32 1.0, %s1239_s17  ;;  %s1801_s25 = scvt.s32.f32 %s3159_s24 }
  0x76   :  { %s5369_s19 = ssub.f32 1.0, %s1520_s18  ;;  %s2082_s10 = scvt.s32.f32 %s3169_s28 }
  0x77   :  { %515 = vmatpush1.bf16.msra.mxu0 %v4558_v37  ;;  %556 = vmatpush1.bf16.msra.mxu1 %v4576_v43  ;;  %s5710_s26 = ssub.f32 1.0, %s1801_s25  ;;  %s2363_s6 = scvt.s32.f32 %s3179_s30 }
  0x78   :  { %516 = vmatprep.subr.bf16.mxu0 %v4560_v38  ;;  %557 = vmatprep.subr.bf16.mxu1 %v4579_v44  ;;  %s6030_s2 = ssub.f32 1.0, %s2082_s10 }
  0x79   :  { %s6371_s11 = ssub.f32 1.0, %s2363_s6 }
  0x7b   :  { %517 = vmatpush1.bf16.msra.mxu0 %v4569_v41  ;;  %558 = vmatpush1.bf16.msra.mxu1 %v4588_v47 }
  0x7c   :  { %518 = vmatprep.subr.bf16.mxu0 %v4572_v42  ;;  %559 = vmatprep.subr.bf16.mxu1 %v4591_v49 }
  0x7f   :  { %519 = vmatpush1.bf16.msra.mxu0 %v4581_v45  ;;  %560 = vmatpush1.bf16.msra.mxu1 %v4600_v52 }
  0x80   :  { %520 = vmatprep.subr.bf16.mxu0 %v4584_v46  ;;  %561 = vmatprep.subr.bf16.mxu1 %v4606_v54 }
  0x83   :  { %521 = vmatpush1.bf16.msra.mxu0 %v4594_v50  ;;  %562 = vmatpush1.bf16.msra.mxu1 %v4615_v58  ;;  %v4686_v58 = vld [vmem:[#allocation8 + $0x64] ss:$16 sps:$4 sm:$0xff]  }
  0x84   :  { %522 = vmatprep.subr.bf16.mxu0 %v4596_v51  ;;  %563 = vmatprep.subr.bf16.mxu1 %v4625_v61  ;;  %v4684_v61 = vld [vmem:[#allocation8 + $0x28] ss:$16 sps:$4 sm:$0xff]   ;;  %6938 = vst [vmem:[#allocation38_spill] sm:$0xff] %v4686_v58 }
  0x85   :  { %6937 = vst [vmem:[#allocation37_spill] sm:$0xff] %v4684_v61 }
  0x87   :  { %523 = vmatpush1.bf16.msra.mxu0 %v4608_v56  ;;  %564 = vmatpush1.bf16.msra.mxu1 %v4629_v63  ;;  %v6935_v63 = vmov 0.0|0.0  }
  0x88   :  { %524 = vmatprep.subr.bf16.mxu0 %v4611_v57  ;;  %565 = vmatprep.subr.bf16.mxu1 %v4635_v7  ;;  %v4673_v7 = vld [vmem:[#allocation8 + $0x44] ss:$16 sps:$4 sm:$0xff]  }
  0x89   :  { %6933 = vst [vmem:[#allocation34_spill] sm:$0xff] %v4673_v7 }
  0x8b   :  { %525 = vmatpush1.bf16.msra.mxu0 %v4622_v60  ;;  %566 = vmatpush1.bf16.msra.mxu1 %v4642_v11  ;;  %v4676_v11 = vld [vmem:[#allocation8 + $0x2c] ss:$16 sps:$4 sm:$0xff]  }
  0x8c   :  { %526 = vmatprep.subr.bf16.mxu0 %v4627_v62  ;;  %567 = vmatprep.subr.bf16.mxu1 %v4647_v15  ;;  %6934 = vst [vmem:[#allocation35_spill] sm:$0xff] %v4676_v11  ;;  %v4682_v15 = vld [vmem:[#allocation8 + $0x40] ss:$16 sps:$4 sm:$0xff]  }
  0x8d   :  { %6936 = vst [vmem:[#allocation36_spill] sm:$0xff] %v4682_v15 }
  0x8f   :  { %527 = vmatpush1.bf16.msra.mxu0 %v4639_v10  ;;  %568 = vmatpush1.bf16.msra.mxu1 %v4654_v19 }
  0x90   :  { %1009 = vmatprep.subr.bf16.mxu0 %v4644_v14  ;;  %1050 = vmatprep.subr.bf16.mxu1 %v4659_v55 }
  0x92   :  { %3055 = vmatmul.mubr.msk.bf16.vlgmr.msra.gmra.mrb[0].mxu0 %vm3054_vm1, %v4372_v0  ;;  %3057 = vmatmul.mubr.msk.bf16.vlgmr.msra.gmra.mrb[0].mxu1 %vm3054_vm1, %v4372_v0  ;;  %v4708_v0 = vld [vmem:[#allocation8 + $0x6c] ss:$16 sps:$4 sm:$0xff]  }
  0x93   :  { %1010 = vmatpush1.bf16.msra.mxu0 %v4652_v16  ;;  %1041 = vmatprep.mubr.bf16.mxu0 %v6935_v63  ;;  %v4694_v16 = vld [vmem:[#allocation8 + $0x4c] ss:$16 sps:$4 sm:$0xff]   ;;  %6942 = vst [vmem:[#allocation42_spill] sm:$0xff] %v4708_v0 }
  0x94   :  { %1011 = vmatprep.subr.bf16.mxu0 %v4656_v20  ;;  %6939 = vst [vmem:[#allocation39_spill] sm:$0xff] %v4694_v16  ;;  %1051 = vmatpush1.bf16.msra.mxu1 %v4671_v53  ;;  %v4701_v20 = vld [vmem:[#allocation8 + $0x60] ss:$16 sps:$4 sm:$0xff]  }
  0x95   :  { %1052 = vmatprep.subr.bf16.mxu1 %v4676_v11  ;;  %1082 = vmatprep.mubr.bf16.mxu1 %v6935_v63  ;;  %6940 = vst [vmem:[#allocation40_spill] sm:$0xff] %v4701_v20  ;;  %v4716_v63 = vld [vmem:[#allocation8 + $0x84] ss:$16 sps:$4 sm:$0xff]  }
  0x96   :  { %6944 = vst [vmem:[#allocation44_spill] sm:$0xff] %v4716_v63 }
  0x97   :  { %1012 = vmatpush1.bf16.msra.mxu0 %v4664_v48  ;;  %v4834_v48 = vld [vmem:[#allocation8 + $0x1cc] ss:$16 sps:$4 sm:$0xff]  }
  0x98   :  { %1013 = vmatprep.subr.bf16.mxu0 %v4673_v7  ;;  %1053 = vmatpush1.bf16.msra.mxu1 %v4684_v61  ;;  %v4712_v7 = vld [vmem:[#allocation8 + $0x68] ss:$16 sps:$4 sm:$0xff]   ;;  %v4720_v61 = vld [vmem:[#allocation8 + $0x80] ss:$16 sps:$4 sm:$0xff]   ;;  %6985 = vst [vmem:[#allocation85_spill] sm:$0xff] %v4834_v48 }
  0x99   :  { %1054 = vmatprep.subr.bf16.mxu1 %v4694_v16  ;;  %6943 = vst [vmem:[#allocation43_spill] sm:$0xff] %v4712_v7  ;;  %6946 = vst [vmem:[#allocation46_spill] sm:$0xff] %v4720_v61  ;;  %v4832_v16 = vld [vmem:[#allocation8 + $0x1c4] ss:$16 sps:$4 sm:$0xff]  }
  0x9a   :  { %6984 = vst [vmem:[#allocation84_spill] sm:$0xff] %v4832_v16 }
  0x9b   :  { %1014 = vmatpush1.bf16.msra.mxu0 %v4682_v15  ;;  %v4718_v15 = vld [vmem:[#allocation8 + $0x8c] ss:$16 sps:$4 sm:$0xff]  }
  0x9c   :  { %1015 = vmatprep.subr.bf16.mxu0 %v4686_v58  ;;  %1055 = vmatpush1.bf16.msra.mxu1 %v4704_v59  ;;  %6945 = vst [vmem:[#allocation45_spill] sm:$0xff] %v4718_v15  ;;  %v4722_v58 = vld [vmem:[#allocation8 + $0x88] ss:$16 sps:$4 sm:$0xff]  }
  0x9d   :  { %1056 = vmatprep.subr.bf16.mxu1 %v4708_v0  ;;  %6947 = vst [vmem:[#allocation47_spill] sm:$0xff] %v4722_v58  ;;  %v4730_v0 = vld [vmem:[#allocation8 + $0xac] ss:$16 sps:$4 sm:$0xff]   ;;  %v4734_v59 = vld [vmem:[#allocation8 + $0xa8] ss:$16 sps:$4 sm:$0xff]  }
  0x9e   :  { %6949 = vst [vmem:[#allocation49_spill] sm:$0xff] %v4730_v0  ;;  %6951 = vst [vmem:[#allocation51_spill] sm:$0xff] %v4734_v59 }
  0x9f   :  { %1016 = vmatpush1.bf16.msra.mxu0 %v4701_v20  ;;  %v4728_v20 = vld [vmem:[#allocation8 + $0xa4] ss:$16 sps:$4 sm:$0xff]  }
  0xa0   :  { %1057 = vmatpush1.bf16.msra.mxu1 %v4712_v7  ;;  %1017 = vmatprep.subr.bf16.mxu0 %v4716_v63  ;;  %6948 = vst [vmem:[#allocation48_spill] sm:$0xff] %v4728_v20  ;;  %v4732_v7 = vld [vmem:[#allocation8 + $0xa0] ss:$16 sps:$4 sm:$0xff]   ;;  %v4746_v63 = vld [vmem:[#allocation8 + $0xc8] ss:$16 sps:$4 sm:$0xff]  }
  0xa1   :  { %1058 = vmatprep.subr.bf16.mxu1 %v4718_v15  ;;  %6950 = vst [vmem:[#allocation50_spill] sm:$0xff] %v4732_v7  ;;  %v4740_v15 = vld [vmem:[#allocation8 + $0xc4] ss:$16 sps:$4 sm:$0xff]   ;;  %6955 = vst [vmem:[#allocation55_spill] sm:$0xff] %v4746_v63 }
  0xa2   :  { %6952 = vst [vmem:[#allocation52_spill] sm:$0xff] %v4740_v15 }
  0xa3   :  { %1018 = vmatpush1.bf16.msra.mxu0 %v4720_v61  ;;  %v4742_v61 = vld [vmem:[#allocation8 + $0xcc] ss:$16 sps:$4 sm:$0xff]  }
  0xa4   :  { %1059 = vmatpush1.bf16.msra.mxu1 %v4722_v58  ;;  %1019 = vmatprep.subr.bf16.mxu0 %v4728_v20  ;;  %6953 = vst [vmem:[#allocation53_spill] sm:$0xff] %v4742_v61  ;;  %v4744_v58 = vld [vmem:[#allocation8 + $0xc0] ss:$16 sps:$4 sm:$0xff]   ;;  %v4758_v20 = vld [vmem:[#allocation8 + $0xe8] ss:$16 sps:$4 sm:$0xff]  }
  0xa5   :  { %1060 = vmatprep.subr.bf16.mxu1 %v4730_v0  ;;  %6954 = vst [vmem:[#allocation54_spill] sm:$0xff] %v4744_v58  ;;  %v4752_v0 = vld [vmem:[#allocation8 + $0xe4] ss:$16 sps:$4 sm:$0xff]   ;;  %6959 = vst [vmem:[#allocation59_spill] sm:$0xff] %v4758_v20 }
  0xa6   :  { %6956 = vst [vmem:[#allocation56_spill] sm:$0xff] %v4752_v0 }
  0xa7   :  { %1020 = vmatpush1.bf16.msra.mxu0 %v4732_v7  ;;  %v4754_v7 = vld [vmem:[#allocation8 + $0xec] ss:$16 sps:$4 sm:$0xff]  }
  0xa8   :  { %1061 = vmatpush1.bf16.msra.mxu1 %v4734_v59  ;;  %1021 = vmatprep.subr.bf16.mxu0 %v4740_v15  ;;  %6957 = vst [vmem:[#allocation57_spill] sm:$0xff] %v4754_v7  ;;  %v4756_v59 = vld [vmem:[#allocation8 + $0xe0] ss:$16 sps:$4 sm:$0xff]   ;;  %v4770_v15 = vld [vmem:[#allocation8 + $0x108] ss:$16 sps:$4 sm:$0xff]  }
  0xa9   :  { %1062 = vmatprep.subr.bf16.mxu1 %v4742_v61  ;;  %6958 = vst [vmem:[#allocation58_spill] sm:$0xff] %v4756_v59  ;;  %v4764_v61 = vld [vmem:[#allocation8 + $0x104] ss:$16 sps:$4 sm:$0xff]   ;;  %6963 = vst [vmem:[#allocation63_spill] sm:$0xff] %v4770_v15 }
  0xaa   :  { %6960 = vst [vmem:[#allocation60_spill] sm:$0xff] %v4764_v61 }
  0xab   :  { %1022 = vmatpush1.bf16.msra.mxu0 %v4744_v58  ;;  %v4766_v58 = vld [vmem:[#allocation8 + $0x10c] ss:$16 sps:$4 sm:$0xff]  }
  0xac   :  { %1063 = vmatpush1.bf16.msra.mxu1 %v4746_v63  ;;  %1023 = vmatprep.subr.bf16.mxu0 %v4752_v0  ;;  %6961 = vst [vmem:[#allocation61_spill] sm:$0xff] %v4766_v58  ;;  %v4768_v63 = vld [vmem:[#allocation8 + $0x100] ss:$16 sps:$4 sm:$0xff]   ;;  %v4782_v0 = vld [vmem:[#allocation8 + $0x128] ss:$16 sps:$4 sm:$0xff]  }
  0xad   :  { %1064 = vmatprep.subr.bf16.mxu1 %v4754_v7  ;;  %6962 = vst [vmem:[#allocation62_spill] sm:$0xff] %v4768_v63  ;;  %v4776_v7 = vld [vmem:[#allocation8 + $0x124] ss:$16 sps:$4 sm:$0xff]   ;;  %6967 = vst [vmem:[#allocation67_spill] sm:$0xff] %v4782_v0 }
  0xae   :  { %6964 = vst [vmem:[#allocation64_spill] sm:$0xff] %v4776_v7 }
  0xaf   :  { %1024 = vmatpush1.bf16.msra.mxu0 %v4756_v59  ;;  %v4778_v59 = vld [vmem:[#allocation8 + $0x12c] ss:$16 sps:$4 sm:$0xff]  }
  0xb0   :  { %1065 = vmatpush1.bf16.msra.mxu1 %v4758_v20  ;;  %1025 = vmatprep.subr.bf16.mxu0 %v4764_v61  ;;  %6965 = vst [vmem:[#allocation65_spill] sm:$0xff] %v4778_v59  ;;  %v4780_v20 = vld [vmem:[#allocation8 + $0x120] ss:$16 sps:$4 sm:$0xff]   ;;  %v4794_v61 = vld [vmem:[#allocation8 + $0x148] ss:$16 sps:$4 sm:$0xff]  }
  0xb1   :  { %1066 = vmatprep.subr.bf16.mxu1 %v4766_v58  ;;  %6966 = vst [vmem:[#allocation66_spill] sm:$0xff] %v4780_v20  ;;  %v4788_v58 = vld [vmem:[#allocation8 + $0x144] ss:$16 sps:$4 sm:$0xff]   ;;  %6971 = vst [vmem:[#allocation71_spill] sm:$0xff] %v4794_v61 }
  0xb2   :  { %6968 = vst [vmem:[#allocation68_spill] sm:$0xff] %v4788_v58 }
  0xb3   :  { %1026 = vmatpush1.bf16.msra.mxu0 %v4768_v63  ;;  %v4790_v63 = vld [vmem:[#allocation8 + $0x14c] ss:$16 sps:$4 sm:$0xff]  }
  0xb4   :  { %1067 = vmatpush1.bf16.msra.mxu1 %v4770_v15  ;;  %1027 = vmatprep.subr.bf16.mxu0 %v4776_v7  ;;  %6969 = vst [vmem:[#allocation69_spill] sm:$0xff] %v4790_v63  ;;  %v4792_v15 = vld [vmem:[#allocation8 + $0x140] ss:$16 sps:$4 sm:$0xff]   ;;  %v4806_v7 = vld [vmem:[#allocation8 + $0x168] ss:$16 sps:$4 sm:$0xff]  }
  0xb5   :  { %1068 = vmatprep.subr.bf16.mxu1 %v4778_v59  ;;  %6970 = vst [vmem:[#allocation70_spill] sm:$0xff] %v4792_v15  ;;  %v4800_v59 = vld [vmem:[#allocation8 + $0x164] ss:$16 sps:$4 sm:$0xff]   ;;  %6975 = vst [vmem:[#allocation75_spill] sm:$0xff] %v4806_v7 }
  0xb6   :  { %6972 = vst [vmem:[#allocation72_spill] sm:$0xff] %v4800_v59 }
  0xb7   :  { %1028 = vmatpush1.bf16.msra.mxu0 %v4780_v20  ;;  %v4802_v20 = vld [vmem:[#allocation8 + $0x16c] ss:$16 sps:$4 sm:$0xff]  }
  0xb8   :  { %1069 = vmatpush1.bf16.msra.mxu1 %v4782_v0  ;;  %1029 = vmatprep.subr.bf16.mxu0 %v4788_v58  ;;  %6973 = vst [vmem:[#allocation73_spill] sm:$0xff] %v4802_v20  ;;  %v4804_v0 = vld [vmem:[#allocation8 + $0x160] ss:$16 sps:$4 sm:$0xff]   ;;  %v4818_v58 = vld [vmem:[#allocation8 + $0x188] ss:$16 sps:$4 sm:$0xff]  }
  0xb9   :  { %1070 = vmatprep.subr.bf16.mxu1 %v4790_v63  ;;  %6974 = vst [vmem:[#allocation74_spill] sm:$0xff] %v4804_v0  ;;  %v4812_v63 = vld [vmem:[#allocation8 + $0x184] ss:$16 sps:$4 sm:$0xff]   ;;  %6979 = vst [vmem:[#allocation79_spill] sm:$0xff] %v4818_v58 }
  0xba   :  { %6976 = vst [vmem:[#allocation76_spill] sm:$0xff] %v4812_v63 }
  0xbb   :  { %1030 = vmatpush1.bf16.msra.mxu0 %v4792_v15  ;;  %v4814_v15 = vld [vmem:[#allocation8 + $0x18c] ss:$16 sps:$4 sm:$0xff]  }
  0xbc   :  { %1071 = vmatpush1.bf16.msra.mxu1 %v4794_v61  ;;  %1031 = vmatprep.subr.bf16.mxu0 %v4800_v59  ;;  %6977 = vst [vmem:[#allocation77_spill] sm:$0xff] %v4814_v15  ;;  %v4816_v61 = vld [vmem:[#allocation8 + $0x180] ss:$16 sps:$4 sm:$0xff]   ;;  %v4830_v59 = vld [vmem:[#allocation8 + $0x1a8] ss:$16 sps:$4 sm:$0xff]  }
  0xbd   :  { %1072 = vmatprep.subr.bf16.mxu1 %v4802_v20  ;;  %6978 = vst [vmem:[#allocation78_spill] sm:$0xff] %v4816_v61  ;;  %v4824_v20 = vld [vmem:[#allocation8 + $0x1a4] ss:$16 sps:$4 sm:$0xff]   ;;  %6983 = vst [vmem:[#allocation83_spill] sm:$0xff] %v4830_v59 }
  0xbe   :  { %6980 = vst [vmem:[#allocation80_spill] sm:$0xff] %v4824_v20 }
  0xbf   :  { %1032 = vmatpush1.bf16.msra.mxu0 %v4804_v0  ;;  %v4826_v0 = vld [vmem:[#allocation8 + $0x1ac] ss:$16 sps:$4 sm:$0xff]  }
  0xc0   :  { %1073 = vmatpush1.bf16.msra.mxu1 %v4806_v7  ;;  %1033 = vmatprep.subr.bf16.mxu0 %v4812_v63  ;;  %6981 = vst [vmem:[#allocation81_spill] sm:$0xff] %v4826_v0  ;;  %v4828_v7 = vld [vmem:[#allocation8 + $0x1a0] ss:$16 sps:$4 sm:$0xff]   ;;  %v4848_v63 = vld [vmem:[#allocation8 + $0x1ec] ss:$16 sps:$4 sm:$0xff]  }
  0xc1   :  { %1074 = vmatprep.subr.bf16.mxu1 %v4814_v15  ;;  %6982 = vst [vmem:[#allocation82_spill] sm:$0xff] %v4828_v7  ;;  %v4846_v15 = vld [vmem:[#allocation8 + $0x1e4] ss:$16 sps:$4 sm:$0xff]   ;;  %6989 = vst [vmem:[#allocation89_spill] sm:$0xff] %v4848_v63 }
  0xc2   :  { %6988 = vst [vmem:[#allocation88_spill] sm:$0xff] %v4846_v15 }
  0xc3   :  { %1034 = vmatpush1.bf16.msra.mxu0 %v4816_v61  ;;  %v4842_v61 = vld [vmem:[#allocation8 + $0x1c8] ss:$16 sps:$4 sm:$0xff]  }
  0xc4   :  { %1075 = vmatpush1.bf16.msra.mxu1 %v4818_v58  ;;  %1035 = vmatprep.subr.bf16.mxu0 %v4824_v20  ;;  %v4840_v58 = vld [vmem:[#allocation8 + $0x1c0] ss:$16 sps:$4 sm:$0xff]   ;;  %6987 = vst [vmem:[#allocation87_spill] sm:$0xff] %v4842_v61 }
  0xc5   :  { %1076 = vmatprep.subr.bf16.mxu1 %v4826_v0  ;;  %6986 = vst [vmem:[#allocation86_spill] sm:$0xff] %v4840_v58  ;;  %v4852_v0 = vld [vmem:[#allocation8 + $0x1e0] ss:$16 sps:$4 sm:$0xff]  }
  0xc6   :  { %6990 = vst [vmem:[#allocation90_spill] sm:$0xff] %v4852_v0 }
  0xc7   :  { %1036 = vmatpush1.bf16.msra.mxu0 %v4828_v7  ;;  %v4854_v7 = vld [vmem:[#allocation8 + $0x1e8] ss:$16 sps:$4 sm:$0xff]  }
  0xc8   :  { %1077 = vmatpush1.bf16.msra.mxu1 %v4830_v59  ;;  %1037 = vmatprep.subr.bf16.mxu0 %v4832_v16  ;;  %6991 = vst [vmem:[#allocation91_spill] sm:$0xff] %v4854_v7 }
  0xc9   :  { %1078 = vmatprep.subr.bf16.mxu1 %v4834_v48  ;;  %v6696_v48 = vmov 0.0  }
  0xcb   :  { %1038 = vmatpush1.bf16.msra.mxu0 %v4840_v58  ;;  %v6992_v58 = vlaneseq }
  0xcc   :  { %1079 = vmatpush1.bf16.msra.mxu1 %v4842_v61  ;;  %1039 = vmatprep.subr.bf16.mxu0 %v4846_v15  ;;  %v154_v15 = vld [vmem:[%s6619_s3] sm:$0xf]  ;;  %s3189_s3 = sld [smem:[#allocation4 + $0x6]] }
  0xcd   :  { %1080 = vmatprep.subr.bf16.mxu1 %v4848_v63  ;;  %v4863_v16 = vshrl.u32 %v6992_v58, 7 }
  0xcf   :  { %1040 = vmatpush1.bf16.msra.mxu0 %v4852_v0  ;;  %v6705_v61 = vsub.s32 0, %v4863_v16  ;;  %v6707_v63 = vsub.s32 1, %v4863_v16  ;;  %v490_v54 = vsub.s32 3, %v4863_v16 }
  0xd0   :  { %1081 = vmatpush1.bf16.msra.mxu1 %v4854_v7  ;;  %3262 = vmatprep.subr.bf16.mxu0 %v6696_v48 }
  0xd1   :  { %1249 = vmatprep.subr.bf16.mxu1 %v4477_v1  ;;  %v4872_v0 = vrot.slane %v154_v15, %v6705_v61  ;;  %v4876_v48 = vrot.slane %v154_v15, %v6707_v63  ;;  %v6710_v1 = vsub.s32 2, %v4863_v16 }
  0xd2   :  { %s2644_s13 = scvt.s32.f32 %s3189_s3 }
  0xd3   :  { %6993 = vst [vmem:[#allocation92_spill] sm:$0xff] %v4872_v0  ;;  %6994 = vst [vmem:[#allocation93_spill] sm:$0xff] %v4876_v48  ;;  %v4883_v19 = vrot.slane %v154_v15, %v6710_v1 }
  0xd5   :  { %6995 = vst [vmem:[#allocation94_spill] sm:$0xff] %v4883_v19 }
 0x165   :  { %v530_v58 = vpop.f32.mrb[0].mxu0  ;;  %v571_v63 = vpop.f32.mrb[0].mxu1 }
 0x166   :  { %v531_v7 = vadd.f32 %v530_v58, %v4872_v0  ;;  %v532_v59 = vpop.f32.mrb[1].mxu0  ;;  %v573_v52 = vpop.f32.mrb[1].mxu1  ;;  %v572_v49 = vadd.f32 %v571_v63, %v4883_v19 }
 0x167   :  { %v533_v20 = vadd.f32 %v532_v59, %v4876_v48  ;;  %v534_v11 = vpop.f32.mrb[2].mxu0  ;;  %v575_v58 = vpop.f32.mrb[2].mxu1  ;;  %v4889_v59 = vrot.slane %v154_v15, %v490_v54 }
 0x168   :  { %v3058_v53 = vmul.f32 -1.442695, %v531_v7  ;;  %v535_v55 = vpop.f32.mrb[3].mxu0  ;;  %v576_v7 = vpop.f32.mrb[3].mxu1  ;;  %v3060_v11 = vmul.f32 -1.442695, %v572_v49 }
 0x169   :  { %v3059_v61 = vmul.f32 -1.442695, %v533_v20  ;;  %v574_v55 = vadd.f32 %v573_v52, %v4889_v59 }
 0x16a   :  { %3616 = vpow2.f32 %v3058_v53 }
 0x16b   :  { %3618 = vpow2.f32 %v3059_v61 }
 0x16c   :  { %3620 = vpow2.f32 %v3060_v11 }
 0x16d   :  { %3622 = vtanh.f32 %v574_v55 }
 0x174   :  { %v3617_v1 = vpop.eup %3616 }
 0x175   :  { %v3619_v20 = vpop.eup %3618  ;;  %v587_v48 = vadd.f32 1.0, %v3617_v1 }
 0x176   :  { %v588_v53 = vadd.f32 1.0, %v3619_v20  ;;  %v3621_v61 = vpop.eup %3620 }
 0x177   :  { %3624 = vrcp.f32 %v587_v48  ;;  %v3623_v0 = vpop.eup %3622  ;;  %v589_v58 = vadd.f32 1.0, %v3621_v61  ;;  %v6999_v48 = vsub.s32 2, %v4863_v16 }
 0x178   :  { %3626 = vrcp.f32 %v588_v53 }
 0x179   :  { %3628 = vrcp.f32 %v589_v58 }
 0x181   :  { %v3625_v63 = vpop.eup %3624 }
 0x182   :  { %v3627_v19 = vpop.eup %3626  ;;  %v598_v47 = vmul.f32 %v3625_v63, %v3623_v0 }
 0x183   :  { %v597_v15 = vmul.f32 0.0, %v3627_v19  ;;  %v3629_v49 = vpop.eup %3628 }
 0x185   :  { %v4892_v7 = vadd.f32 %v598_v47, %v597_v15 }
 0x187   :  { %3630 = vtanh.f32 %v4892_v7 }
 0x191   :  { %v3631_v52 = vpop.eup %3630 }
 0x192   :  { %v601_v11 = vmul.f32 %v3631_v52, %v3629_v49 }
 0x194   :  { %v4895_v1 = vpack.c.bf16 %v601_v11, %v601_v11  ;;  %v4996_v11 = vld [vmem:[#allocation5 + $0x8] ss:$16 sps:$4 sm:$0xff]  }
 0x196   :  { %1042 = vmatmul.mubr.bf16.vlgmr.msra.gmra.mrb[4].mxu0 %v4895_v1  ;;  %1083 = vmatmul.mubr.bf16.vlgmr.msra.gmra.mrb[4].mxu1 %v4895_v1 }
 0x197   :  { %1281 = vmatprep.mubr.bf16.mxu1 %v4895_v1  ;;  %1250 = vmatpush1.bf16.msra.mxu1 %v4479_v2  ;;  %v4932_v2 = vld [vmem:[#allocation10] sm:$0xff]  }
 0x198   :  { %1251 = vmatprep.subr.bf16.mxu1 %v4482_v3  ;;  %3263 = vmatpush3.bf16.msra.mxu0 %v4932_v2  ;;  %v6996_v3 = vmov 0.0  }
 0x199   :  { %3264 = vmatprep.subr.bf16.mxu0 %v6996_v3  ;;  %3278 = vmatprep.mubr.msk.bf16.mxu0 %vm4374_vm2, %v6996_v3 }
 0x19b   :  { %1252 = vmatpush1.bf16.msra.mxu1 %v4485_v4  ;;  %v4936_v4 = vld [vmem:[#allocation10 + $0x8] sm:$0xff]  }
 0x19c   :  { %1253 = vmatprep.subr.bf16.mxu1 %v4488_v5  ;;  %3265 = vmatpush3.bf16.msra.mxu0 %v4936_v4  ;;  %v4940_v5 = vld [vmem:[#allocation10 + $0x10] sm:$0xff]  }
 0x19d   :  { %3266 = vmatprep.subr.bf16.mxu0 %v6996_v3 }
 0x19f   :  { %1254 = vmatpush1.bf16.msra.mxu1 %v4493_v8  ;;  %v4944_v8 = vld [vmem:[#allocation10 + $0x18] sm:$0xff]  }
 0x1a0   :  { %1255 = vmatprep.subr.bf16.mxu1 %v4497_v9  ;;  %3267 = vmatpush3.bf16.msra.mxu0 %v4940_v5  ;;  %v4948_v9 = vld [vmem:[#allocation10 + $0x20] sm:$0xff]  }
 0x1a1   :  { %3268 = vmatprep.subr.bf16.mxu0 %v6996_v3 }
 0x1a3   :  { %1256 = vmatpush1.bf16.msra.mxu1 %v4500_v12  ;;  %v4951_v12 = vld [vmem:[#allocation10 + $0x28] sm:$0xff]  }
 0x1a4   :  { %1257 = vmatprep.subr.bf16.mxu1 %v4502_v13  ;;  %3269 = vmatpush3.bf16.msra.mxu0 %v4944_v8  ;;  %v4957_v13 = vld [vmem:[#allocation10 + $0x30] sm:$0xff]  }
 0x1a5   :  { %3270 = vmatprep.subr.bf16.mxu0 %v6996_v3 }
 0x1a7   :  { %1258 = vmatpush1.bf16.msra.mxu1 %v4506_v17  ;;  %v4961_v17 = vld [vmem:[#allocation10 + $0x38] sm:$0xff]  }
 0x1a8   :  { %1259 = vmatprep.subr.bf16.mxu1 %v4509_v18  ;;  %3271 = vmatpush3.bf16.msra.mxu0 %v4948_v9  ;;  %v667_v18 = vld [vmem:[%s6621_s5] sm:$0xf]  ;;  %s6517_s5 = ssub.f32 1.0, %s2644_s13 }
 0x1a9   :  { %3272 = vmatprep.subr.bf16.mxu0 %v6996_v3 }
 0x1ab   :  { %1260 = vmatpush1.bf16.msra.mxu1 %v4512_v21  ;;  %v6997_v21 = vsub.s32 0, %v4863_v16 }
 0x1ac   :  { %1261 = vmatprep.subr.bf16.mxu1 %v4514_v22  ;;  %3273 = vmatpush3.bf16.msra.mxu0 %v4951_v12 }
 0x1ad   :  { %3274 = vmatprep.subr.bf16.mxu0 %v6996_v3  ;;  %v4971_v22 = vrot.slane %v667_v18, %v6997_v21  ;;  %v5002_v21 = vld [vmem:[#allocation5 + $0x28] ss:$16 sps:$4 sm:$0xff]  }
 0x1af   :  { %1262 = vmatpush1.bf16.msra.mxu1 %v4522_v25  ;;  %v6998_v25 = vsub.s32 1, %v4863_v16 }
 0x1b0   :  { %1263 = vmatprep.subr.bf16.mxu1 %v4525_v26  ;;  %3275 = vmatpush3.bf16.msra.mxu0 %v4957_v13 }
 0x1b1   :  { %3276 = vmatprep.subr.bf16.mxu0 %v6996_v3  ;;  %v4975_v26 = vrot.slane %v667_v18, %v6998_v25  ;;  %v5005_v25 = vld [vmem:[#allocation5 + $0x4c] ss:$16 sps:$4 sm:$0xff]  }
 0x1b3   :  { %1264 = vmatpush1.bf16.msra.mxu1 %v4534_v29 }
 0x1b4   :  { %1265 = vmatprep.subr.bf16.mxu1 %v4536_v30  ;;  %3277 = vmatpush3.bf16.msra.mxu0 %v4961_v17 }
 0x1b5   :  { %1290 = vmatprep.subr.bf16.mxu0 %v4490_v6 }
 0x1b7   :  { %1266 = vmatpush1.bf16.msra.mxu1 %v4546_v33 }
 0x1b8   :  { %1267 = vmatprep.subr.bf16.mxu1 %v4549_v34 }
 0x1bb   :  { %1268 = vmatpush1.bf16.msra.mxu1 %v4558_v37 }
 0x1bc   :  { %1269 = vmatprep.subr.bf16.mxu1 %v4560_v38 }
 0x1bf   :  { %1270 = vmatpush1.bf16.msra.mxu1 %v4569_v41 }
 0x1c0   :  { %1271 = vmatprep.subr.bf16.mxu1 %v4572_v42 }
 0x1c3   :  { %1272 = vmatpush1.bf16.msra.mxu1 %v4581_v45 }
 0x1c4   :  { %1273 = vmatprep.subr.bf16.mxu1 %v4584_v46 }
 0x1c7   :  { %1274 = vmatpush1.bf16.msra.mxu1 %v4594_v50  ;;  %v4981_v50 = vrot.slane %v667_v18, %v6999_v48 }
 0x1c8   :  { %1275 = vmatprep.subr.bf16.mxu1 %v4596_v51  ;;  %v4985_v51 = vrot.slane %v667_v18, %v490_v54  ;;  %v4999_v18 = vld [vmem:[#allocation5 + $0x2c] ss:$16 sps:$4 sm:$0xff]  }
 0x1cb   :  { %1276 = vmatpush1.bf16.msra.mxu1 %v4608_v56 }
 0x1cc   :  { %1277 = vmatprep.subr.bf16.mxu1 %v4611_v57 }
 0x1cf   :  { %1278 = vmatpush1.bf16.msra.mxu1 %v4622_v60 }
 0x1d0   :  { %1279 = vmatprep.subr.bf16.mxu1 %v4627_v62 }
 0x1d3   :  { %1280 = vmatpush1.bf16.msra.mxu1 %v4639_v10 }
 0x1d4   :  { %1356 = vmatprep.subr.bf16.mxu1 %v4644_v14 }
 0x269   :  { %v1043_v29 = vpop.f32.mrb[4].mxu0  ;;  %v1084_v30 = vpop.f32.mrb[4].mxu1 }
 0x26a   :  { %v1044_v33 = vadd.f32 %v1043_v29, %v4971_v22  ;;  %v1045_v34 = vpop.f32.mrb[5].mxu0  ;;  %v1086_v37 = vpop.f32.mrb[5].mxu1  ;;  %v1085_v56 = vadd.f32 %v1084_v30, %v4981_v50  ;;  %v5008_v29 = vld [vmem:[#allocation5 + $0x48] ss:$16 sps:$4 sm:$0xff]  }
 0x26b   :  { %v1046_v6 = vadd.f32 %v1045_v34, %v4975_v26  ;;  %v1047_v38 = vpop.f32.mrb[6].mxu0  ;;  %v1088_v41 = vpop.f32.mrb[6].mxu1  ;;  %v1087_v57 = vadd.f32 %v1086_v37, %v4985_v51  ;;  %v5014_v30 = vld [vmem:[#allocation5 + $0x68] ss:$16 sps:$4 sm:$0xff]   ;;  %v5047_v34 = vld [vmem:[%s6623_s7] sm:$0x1] }
 0x26c   :  { %v3125_v42 = vmul.f32 -1.442695, %v1044_v33  ;;  %v1048_v45 = vpop.f32.mrb[7].mxu0  ;;  %v1089_v46 = vpop.f32.mrb[7].mxu1  ;;  %v3127_v60 = vmul.f32 -1.442695, %v1085_v56 }
 0x26d   :  { %v3126_v47 = vmul.f32 -1.442695, %v1046_v6  ;;  %v5017_v33 = vld [vmem:[#allocation5 + $0x8c] ss:$16 sps:$4 sm:$0xff]   ;;  %v7013_v46 = vld [vmem:[#allocation19_spill] sm:$0xff] }
 0x26e   :  { %3632 = vpow2.f32 %v3125_v42 }
 0x26f   :  { %3634 = vpow2.f32 %v3126_v47  ;;  %v5055_v47 = vcvt.s32.f32 %v7013_v46 }
 0x270   :  { %3636 = vtanh.f32 %v1087_v57 }
 0x271   :  { %3638 = vpow2.f32 %v3127_v60  ;;  %v1234_v60 = vstv %s3137_s15 }
 0x272   :  { %vm1235_vm5 = vcmp.eq.s32.totalorder %v7013_v46, %v1234_v60  ;;  %v7042_v60 = vld [vmem:[#allocation56_spill] sm:$0xff] }
 0x278   :  { %v3633_v62 = vpop.eup %3632 }
 0x279   :  { %v1100_v10 = vadd.f32 1.0, %v3633_v62  ;;  %v3635_v14 = vpop.eup %3634  ;;  %v3138_v62 = vsel %vm1235_vm5, 1.0, %v6996_v3 }
 0x27a   :  { %v1101_v19 = vadd.f32 1.0, %v3635_v14  ;;  %v3637_v0 = vpop.eup %3636 }
 0x27b   :  { %3640 = vrcp.f32 %v1100_v10  ;;  %v3639_v55 = vpop.eup %3638  ;;  %v1240_v10 = vstv %s1239_s17  ;;  %s3198_s17 = sld [smem:[#allocation4 + $0x7]] }
 0x27c   :  { %3642 = vrcp.f32 %v1101_v19  ;;  %v1102_v54 = vadd.f32 1.0, %v3639_v55  ;;  %v6718_v19 = vstv %s5061_s0  ;;  %v5066_v55 = vmul.f32 %v3138_v62, %v1240_v10  ;;  %v7043_v62 = vld [vmem:[#allocation57_spill] sm:$0xff]  ;;  %v7044_v10 = vld [vmem:[#allocation58_spill] sm:$0xff] }
 0x27e   :  { %3644 = vrcp.f32 %v1102_v54  ;;  %v7016_v54 = vld [vmem:[#allocation28_spill] sm:$0xff] }
 0x285   :  { %v3641_v20 = vpop.eup %3640 }
 0x286   :  { %v1111_v53 = vmul.f32 %v3641_v20, %v3637_v0  ;;  %v3643_v16 = vpop.eup %3642 }
 0x287   :  { %v1110_v61 = vmul.f32 0.0, %v3643_v16 }
 0x288   :  { %v3645_v58 = vpop.eup %3644 }
 0x289   :  { %v4989_v63 = vadd.f32 %v1111_v53, %v1110_v61  ;;  %v7017_v61 = vld [vmem:[#allocation33_spill] sm:$0xff] }
 0x28b   :  { %3646 = vtanh.f32 %v4989_v63 }
 0x295   :  { %v3647_v15 = vpop.eup %3646 }
 0x296   :  { %v1114_v49 = vmul.f32 %v3647_v15, %v3645_v58  ;;  %v7018_v58 = vld [vmem:[#allocation30_spill] sm:$0xff]  ;;  %v7019_v15 = vld [vmem:[#allocation35_spill] sm:$0xff] }
 0x298   :  { %v4992_v52 = vpack.c.bf16 %v1114_v49, %v1114_v49  ;;  %v7020_v49 = vld [vmem:[#allocation32_spill] sm:$0xff] }
 0x29a   :  { %3279 = vmatmul.mubr.bf16.vlgmr.msra.gmra.mrb[8].mxu0 %v4992_v52 }
 0x29b   :  { %1322 = vmatprep.mubr.bf16.mxu0 %v4895_v1  ;;  %1291 = vmatpush1.bf16.msra.mxu0 %v4996_v11  ;;  %v5011_v1 = vld [vmem:[#allocation5 + $0x6c] ss:$16 sps:$4 sm:$0xff]  }
 0x29c   :  { %1292 = vmatprep.subr.bf16.mxu0 %v4999_v18 }
 0x29f   :  { %1293 = vmatpush1.bf16.msra.mxu0 %v5002_v21 }
 0x2a0   :  { %1294 = vmatprep.subr.bf16.mxu0 %v5005_v25 }
 0x2a3   :  { %1295 = vmatpush1.bf16.msra.mxu0 %v5008_v29 }
 0x2a4   :  { %1296 = vmatprep.subr.bf16.mxu0 %v5011_v1 }
 0x2a7   :  { %1297 = vmatpush1.bf16.msra.mxu0 %v5014_v30 }
 0x2a8   :  { %1298 = vmatprep.subr.bf16.mxu0 %v5017_v33 }
 0x2ab   :  { %1299 = vmatpush1.bf16.msra.mxu0 %v4517_v23  ;;  %v7000_v23 = vld [vmem:[#allocation16_spill] sm:$0xff] }
 0x2ac   :  { %1300 = vmatprep.subr.bf16.mxu0 %v4519_v24  ;;  %v7001_v24 = vld [vmem:[#allocation17_spill] sm:$0xff] }
 0x2ad   :  { %7014 = vst [vmem:[#allocation17_spill] sm:$0xff] %v5055_v47 }
 0x2af   :  { %1301 = vmatpush1.bf16.msra.mxu0 %v4528_v27  ;;  %v7002_v27 = vld [vmem:[#allocation18_spill] sm:$0xff] }
 0x2b0   :  { %1302 = vmatprep.subr.bf16.mxu0 %v4531_v28  ;;  %v7003_v28 = vld [vmem:[#allocation20_spill] sm:$0xff]  ;;  %7015 = vst [vmem:[#allocation18_spill] sm:$0xff] %v5066_v55 }
 0x2b3   :  { %1303 = vmatpush1.bf16.msra.mxu0 %v4540_v31  ;;  %v7004_v31 = vld [vmem:[#allocation21_spill] sm:$0xff] }
 0x2b4   :  { %1304 = vmatprep.subr.bf16.mxu0 %v4543_v32  ;;  %v7005_v32 = vld [vmem:[#allocation23_spill] sm:$0xff] }
 0x2b7   :  { %1305 = vmatpush1.bf16.msra.mxu0 %v4552_v35  ;;  %v7006_v35 = vld [vmem:[#allocation24_spill] sm:$0xff] }
 0x2b8   :  { %1306 = vmatprep.subr.bf16.mxu0 %v4555_v36  ;;  %v7007_v36 = vld [vmem:[#allocation25_spill] sm:$0xff] }
 0x2bb   :  { %1307 = vmatpush1.bf16.msra.mxu0 %v4564_v39  ;;  %v7008_v39 = vld [vmem:[#allocation26_spill] sm:$0xff] }
 0x2bc   :  { %1308 = vmatprep.subr.bf16.mxu0 %v4567_v40  ;;  %v7009_v40 = vld [vmem:[#allocation27_spill] sm:$0xff] }
 0x2bf   :  { %1309 = vmatpush1.bf16.msra.mxu0 %v4576_v43  ;;  %v7010_v43 = vld [vmem:[#allocation29_spill] sm:$0xff] }
 0x2c0   :  { %1310 = vmatprep.subr.bf16.mxu0 %v4579_v44  ;;  %v7011_v44 = vld [vmem:[#allocation31_spill] sm:$0xff] }
 0x2c3   :  { %1311 = vmatpush1.bf16.msra.mxu0 %v7000_v23  ;;  %v7021_v23 = vld [vmem:[#allocation37_spill] sm:$0xff] }
 0x2c4   :  { %1312 = vmatprep.subr.bf16.mxu0 %v7001_v24  ;;  %v7022_v24 = vld [vmem:[#allocation34_spill] sm:$0xff] }
 0x2c7   :  { %1313 = vmatpush1.bf16.msra.mxu0 %v7002_v27  ;;  %v7023_v27 = vld [vmem:[#allocation39_spill] sm:$0xff] }
 0x2c8   :  { %1314 = vmatprep.subr.bf16.mxu0 %v7003_v28  ;;  %v7024_v28 = vld [vmem:[#allocation36_spill] sm:$0xff] }
 0x2cb   :  { %1315 = vmatpush1.bf16.msra.mxu0 %v7004_v31  ;;  %v7025_v31 = vld [vmem:[#allocation41_spill] sm:$0xff] }
 0x2cc   :  { %1316 = vmatprep.subr.bf16.mxu0 %v7005_v32  ;;  %v7027_v32 = vld [vmem:[#allocation42_spill] sm:$0xff] }
 0x2cf   :  { %1317 = vmatpush1.bf16.msra.mxu0 %v7006_v35  ;;  %v7028_v35 = vld [vmem:[#allocation40_spill] sm:$0xff] }
 0x2d0   :  { %1318 = vmatprep.subr.bf16.mxu0 %v7007_v36  ;;  %v7029_v36 = vld [vmem:[#allocation43_spill] sm:$0xff] }
 0x2d3   :  { %1319 = vmatpush1.bf16.msra.mxu0 %v7008_v39  ;;  %v7030_v39 = vld [vmem:[#allocation44_spill] sm:$0xff] }
 0x2d4   :  { %1320 = vmatprep.subr.bf16.mxu0 %v7009_v40  ;;  %v7031_v40 = vld [vmem:[#allocation45_spill] sm:$0xff] }
 0x2d7   :  { %1321 = vmatpush1.bf16.msra.mxu0 %v7010_v43  ;;  %v7032_v43 = vld [vmem:[#allocation46_spill] sm:$0xff] }
 0x2d8   :  { %1397 = vmatprep.subr.bf16.mxu0 %v7011_v44  ;;  %v7033_v44 = vld [vmem:[#allocation47_spill] sm:$0xff] }
 0x36d   :  { %v1215_v37 = vpop.f32.mrb[8].mxu0 }
 0x36e   :  { %v5050_v6 = vadd.f32 %v1215_v37, %v5047_v34  ;;  %v3280_v38 = vpop.f32.mrb[9].mxu0  ;;  %v7034_v37 = vld [vmem:[#allocation48_spill] sm:$0xff] }
 0x36f   :  { %v1218_v41 = vpop.f32.mrb[10].mxu0  ;;  %v7035_v38 = vld [vmem:[#allocation49_spill] sm:$0xff] }
 0x370   :  { %7012 = vst [vmem:[#allocation16_spill] sm:$0xff] %v5050_v6  ;;  %v3281_v42 = vpop.f32.mrb[11].mxu0  ;;  %v1222_v45 = vsel %vm1221_vm3, %v5050_v6, -inf  ;;  %v7036_v41 = vld [vmem:[#allocation50_spill] sm:$0xff] }
 0x371   :  { %1223 = vmax.xlane.f32.xlu0 %v1222_v45  ;;  %v7037_v42 = vld [vmem:[#allocation51_spill] sm:$0xff]  ;;  %v7038_v45 = vld [vmem:[#allocation52_spill] sm:$0xff] }
 0x3fe   :  { %v1224_v48 = vpop.xlane.xlu0 %1223 }
 0x3ff   :  { %vm1225_vm4 = vcmp.eq.f32.partialorder %v5050_v6, %v1224_v48  ;;  %v7039_v48 = vld [vmem:[#allocation53_spill] sm:$0xff] }
 0x400   :  { %v1226_v56 = vsel %vm1225_vm4, %v5055_v47, 128.0 }
 0x401   :  { %v1227_v57 = vsel %vm1221_vm3, %v1226_v56, inf }
 0x402   :  { %1228 = vmin.xlane.f32.xlu0 %v1227_v57  ;;  %v7041_v57 = vld [vmem:[#allocation55_spill] sm:$0xff] }
 0x48f   :  { %v1229_v14 = vpop.xlane.xlu0 %1228 }
 0x490   :  { %vm1230_vm6 = vcmp.eq.f32.partialorder %v1226_v56, %v1229_v14  ;;  %v7040_v56 = vld [vmem:[#allocation54_spill] sm:$0xff]  ;;  %v7045_v14 = vld [vmem:[#allocation59_spill] sm:$0xff] }
 0x491   :  { %v3136_v0 = vsel %vm1230_vm6, 1.0, %v6996_v3 }
 0x492   :  { %v1246_v20 = vmul.f32 %v3136_v0, %v6718_v19  ;;  %v7046_v0 = vld [vmem:[#allocation60_spill] sm:$0xff]  ;;  %v5262_v19 = vld [vmem:[#allocation5 + $0x1e0] ss:$16 sps:$4 sm:$0xff]  }
 0x493   :  { %7095 = vst [vmem:[#allocation37_spill] sm:$0xff] %v5262_v19 }
 0x494   :  { %v1247_v53 = vadd.f32 %v1246_v20, %v5066_v55  ;;  %v7047_v20 = vld [vmem:[#allocation61_spill] sm:$0xff] }
 0x495   :  { %v5265_v55 = vld [vmem:[#allocation8 + $0x4] ss:$16 sps:$4 sm:$0xff]  }
 0x496   :  { %v1248_v16 = vpack.c.bf16 %v1247_v53, %v1247_v53  ;;  %v7048_v53 = vld [vmem:[#allocation62_spill] sm:$0xff]  ;;  %7096 = vst [vmem:[#allocation34_spill] sm:$0xff] %v5265_v55 }
 0x498   :  { %1282 = vmatmul.mubr.bf16.vlgmr.msra.gmra.mrb[8].mxu1 %v1248_v16  ;;  %1323 = vmatmul.mubr.bf16.vlgmr.msra.gmra.mrb[12].mxu0 %v1248_v16  ;;  %v7049_v16 = vld [vmem:[#allocation63_spill] sm:$0xff] }
 0x499   :  { %1388 = vmatprep.mubr.bf16.mxu1 %v4992_v52  ;;  %1429 = vmatprep.mubr.bf16.mxu0 %v4992_v52  ;;  %v7026_v52 = vld [vmem:[#allocation38_spill] sm:$0xff] }
 0x49a   :  { %1357 = vmatpush1.bf16.msra.mxu1 %v7016_v54  ;;  %1398 = vmatpush1.bf16.msra.mxu0 %v7017_v61  ;;  %v7050_v54 = vld [vmem:[#allocation64_spill] sm:$0xff]  ;;  %v7051_v61 = vld [vmem:[#allocation65_spill] sm:$0xff] }
 0x49b   :  { %1358 = vmatprep.subr.bf16.mxu1 %v7018_v58  ;;  %1399 = vmatprep.subr.bf16.mxu0 %v7019_v15  ;;  %v7052_v58 = vld [vmem:[#allocation66_spill] sm:$0xff]  ;;  %v7053_v15 = vld [vmem:[#allocation67_spill] sm:$0xff] }
 0x49e   :  { %1359 = vmatpush1.bf16.msra.mxu1 %v7020_v49  ;;  %1400 = vmatpush1.bf16.msra.mxu0 %v7021_v23  ;;  %v7054_v49 = vld [vmem:[#allocation68_spill] sm:$0xff]  ;;  %v7055_v23 = vld [vmem:[#allocation69_spill] sm:$0xff] }
 0x49f   :  { %1360 = vmatprep.subr.bf16.mxu1 %v7022_v24  ;;  %1401 = vmatprep.subr.bf16.mxu0 %v7023_v27  ;;  %v7056_v24 = vld [vmem:[#allocation70_spill] sm:$0xff]  ;;  %v7057_v27 = vld [vmem:[#allocation71_spill] sm:$0xff] }
 0x4a2   :  { %1361 = vmatpush1.bf16.msra.mxu1 %v7024_v28  ;;  %1402 = vmatpush1.bf16.msra.mxu0 %v7025_v31  ;;  %v7058_v28 = vld [vmem:[#allocation72_spill] sm:$0xff]  ;;  %v7059_v31 = vld [vmem:[#allocation73_spill] sm:$0xff] }
 0x4a3   :  { %1362 = vmatprep.subr.bf16.mxu1 %v7026_v52  ;;  %1403 = vmatprep.subr.bf16.mxu0 %v7027_v32  ;;  %v7060_v52 = vld [vmem:[#allocation74_spill] sm:$0xff]  ;;  %v7061_v32 = vld [vmem:[#allocation75_spill] sm:$0xff] }
 0x4a6   :  { %1363 = vmatpush1.bf16.msra.mxu1 %v7028_v35  ;;  %1404 = vmatpush1.bf16.msra.mxu0 %v7029_v36  ;;  %v7062_v35 = vld [vmem:[#allocation76_spill] sm:$0xff]  ;;  %v7063_v36 = vld [vmem:[#allocation77_spill] sm:$0xff] }
 0x4a7   :  { %1364 = vmatprep.subr.bf16.mxu1 %v7030_v39  ;;  %1405 = vmatprep.subr.bf16.mxu0 %v7031_v40  ;;  %v7064_v39 = vld [vmem:[#allocation78_spill] sm:$0xff]  ;;  %v7065_v40 = vld [vmem:[#allocation79_spill] sm:$0xff] }
 0x4aa   :  { %1365 = vmatpush1.bf16.msra.mxu1 %v7032_v43  ;;  %1406 = vmatpush1.bf16.msra.mxu0 %v7033_v44  ;;  %v7066_v43 = vld [vmem:[#allocation80_spill] sm:$0xff]  ;;  %v7067_v44 = vld [vmem:[#allocation81_spill] sm:$0xff] }
 0x4ab   :  { %1366 = vmatprep.subr.bf16.mxu1 %v7034_v37  ;;  %1407 = vmatprep.subr.bf16.mxu0 %v7035_v38  ;;  %v7068_v37 = vld [vmem:[#allocation82_spill] sm:$0xff]  ;;  %v7069_v38 = vld [vmem:[#allocation83_spill] sm:$0xff] }
 0x4ae   :  { %1367 = vmatpush1.bf16.msra.mxu1 %v7036_v41  ;;  %1408 = vmatpush1.bf16.msra.mxu0 %v7037_v42  ;;  %v7070_v41 = vld [vmem:[#allocation84_spill] sm:$0xff]  ;;  %v7071_v42 = vld [vmem:[#allocation85_spill] sm:$0xff] }
 0x4af   :  { %1368 = vmatprep.subr.bf16.mxu1 %v7038_v45  ;;  %1409 = vmatprep.subr.bf16.mxu0 %v7039_v48  ;;  %v7072_v45 = vld [vmem:[#allocation86_spill] sm:$0xff]  ;;  %v7073_v48 = vld [vmem:[#allocation87_spill] sm:$0xff] }
 0x4b2   :  { %1369 = vmatpush1.bf16.msra.mxu1 %v7040_v56  ;;  %1410 = vmatpush1.bf16.msra.mxu0 %v7041_v57  ;;  %v7074_v56 = vld [vmem:[#allocation88_spill] sm:$0xff]  ;;  %v7075_v57 = vld [vmem:[#allocation89_spill] sm:$0xff] }
 0x4b3   :  { %1370 = vmatprep.subr.bf16.mxu1 %v7042_v60  ;;  %1411 = vmatprep.subr.bf16.mxu0 %v7043_v62  ;;  %v7076_v60 = vld [vmem:[#allocation90_spill] sm:$0xff]  ;;  %v7077_v62 = vld [vmem:[#allocation91_spill] sm:$0xff] }
 0x4b6   :  { %1371 = vmatpush1.bf16.msra.mxu1 %v7044_v10  ;;  %1412 = vmatpush1.bf16.msra.mxu0 %v7045_v14  ;;  %v5136_v10 = vld [vmem:[#allocation5 + $0x4] ss:$16 sps:$4 sm:$0xff]  }
 0x4b7   :  { %1372 = vmatprep.subr.bf16.mxu1 %v7046_v0  ;;  %1413 = vmatprep.subr.bf16.mxu0 %v7047_v20  ;;  %v7078_v20 = vld [vmem:[#allocation92_spill] sm:$0xff] }
 0x4ba   :  { %1373 = vmatpush1.bf16.msra.mxu1 %v7048_v53  ;;  %1414 = vmatpush1.bf16.msra.mxu0 %v7049_v16 }
 0x4bb   :  { %1374 = vmatprep.subr.bf16.mxu1 %v7050_v54  ;;  %1415 = vmatprep.subr.bf16.mxu0 %v7051_v61  ;;  %v7079_v61 = vld [vmem:[#allocation93_spill] sm:$0xff] }
 0x4be   :  { %1375 = vmatpush1.bf16.msra.mxu1 %v7052_v58  ;;  %1416 = vmatpush1.bf16.msra.mxu0 %v7053_v15 }
 0x4bf   :  { %1376 = vmatprep.subr.bf16.mxu1 %v7054_v49  ;;  %1417 = vmatprep.subr.bf16.mxu0 %v7055_v23 }
 0x4c2   :  { %1377 = vmatpush1.bf16.msra.mxu1 %v7056_v24  ;;  %1418 = vmatpush1.bf16.msra.mxu0 %v7057_v27 }
 0x4c3   :  { %1378 = vmatprep.subr.bf16.mxu1 %v7058_v28  ;;  %1419 = vmatprep.subr.bf16.mxu0 %v7059_v31  ;;  %v7080_v31 = vld [vmem:[#allocation94_spill] sm:$0xff] }
 0x4c6   :  { %1379 = vmatpush1.bf16.msra.mxu1 %v7060_v52  ;;  %1420 = vmatpush1.bf16.msra.mxu0 %v7061_v32 }
 0x4c7   :  { %1380 = vmatprep.subr.bf16.mxu1 %v7062_v35  ;;  %1421 = vmatprep.subr.bf16.mxu0 %v7063_v36 }
 0x4ca   :  { %1381 = vmatpush1.bf16.msra.mxu1 %v7064_v39  ;;  %1422 = vmatpush1.bf16.msra.mxu0 %v7065_v40 }
 0x4cb   :  { %1382 = vmatprep.subr.bf16.mxu1 %v7066_v43  ;;  %1423 = vmatprep.subr.bf16.mxu0 %v7067_v44 }
 0x4ce   :  { %1383 = vmatpush1.bf16.msra.mxu1 %v7068_v37  ;;  %1424 = vmatpush1.bf16.msra.mxu0 %v7069_v38 }
 0x4cf   :  { %1384 = vmatprep.subr.bf16.mxu1 %v7070_v41  ;;  %1425 = vmatprep.subr.bf16.mxu0 %v7071_v42 }
 0x4d2   :  { %1385 = vmatpush1.bf16.msra.mxu1 %v7072_v45  ;;  %1426 = vmatpush1.bf16.msra.mxu0 %v7073_v48 }
 0x4d3   :  { %1386 = vmatprep.subr.bf16.mxu1 %v7074_v56  ;;  %1427 = vmatprep.subr.bf16.mxu0 %v7075_v57 }
 0x4d6   :  { %1387 = vmatpush1.bf16.msra.mxu1 %v7076_v60  ;;  %1428 = vmatpush1.bf16.msra.mxu0 %v7077_v62 }
 0x4d7   :  { %3282 = vmatprep.subr.bf16.mxu1 %v6996_v3  ;;  %1530 = vmatprep.subr.bf16.mxu0 %v5136_v10 }
 0x56b   :  { %v1283_v14 = vpop.f32.mrb[8].mxu1  ;;  %v1324_v0 = vpop.f32.mrb[12].mxu0 }
 0x56c   :  { %v1284_v53 = vadd.f32 %v1283_v14, %v7078_v20  ;;  %v1285_v16 = vpop.f32.mrb[9].mxu1  ;;  %v1326_v54 = vpop.f32.mrb[13].mxu0  ;;  %v1325_v52 = vadd.f32 %v1324_v0, %v7080_v31  ;;  %v5159_v0 = vld [vmem:[#allocation5 + $0x24] ss:$16 sps:$4 sm:$0xff]  }
 0x56d   :  { %v1286_v58 = vadd.f32 %v1285_v16, %v7079_v61  ;;  %v1287_v15 = vpop.f32.mrb[10].mxu1  ;;  %v1328_v49 = vpop.f32.mrb[14].mxu0  ;;  %v1327_v32 = vadd.f32 %v1326_v54, %v4889_v59  ;;  %v5167_v16 = vld [vmem:[#allocation5 + $0x44] ss:$16 sps:$4 sm:$0xff]   ;;  %v5172_v54 = vld [vmem:[#allocation5 + $0x40] ss:$16 sps:$4 sm:$0xff]  }
 0x56e   :  { %v3140_v23 = vmul.f32 -1.442695, %v1284_v53  ;;  %v1288_v24 = vpop.f32.mrb[11].mxu1  ;;  %v1329_v27 = vpop.f32.mrb[15].mxu0  ;;  %v3142_v35 = vmul.f32 -1.442695, %v1325_v52 }
 0x56f   :  { %v3141_v28 = vmul.f32 -1.442695, %v1286_v58  ;;  %v5164_v53 = vld [vmem:[#allocation5 + $0x20] ss:$16 sps:$4 sm:$0xff]   ;;  %v5175_v58 = vld [vmem:[#allocation5 + $0x64] ss:$16 sps:$4 sm:$0xff]  }
 0x570   :  { %3648 = vpow2.f32 %v3140_v23  ;;  %v5180_v15 = vld [vmem:[#allocation5 + $0x60] ss:$16 sps:$4 sm:$0xff]   ;;  %v5183_v49 = vld [vmem:[#allocation5 + $0x84] ss:$16 sps:$4 sm:$0xff]  }
 0x571   :  { %3650 = vpow2.f32 %v3141_v28  ;;  %v5188_v23 = vld [vmem:[#allocation5 + $0x80] ss:$16 sps:$4 sm:$0xff]   ;;  %v5191_v24 = vld [vmem:[#allocation5 + $0xa4] ss:$16 sps:$4 sm:$0xff]  }
 0x572   :  { %3652 = vtanh.f32 %v1327_v32  ;;  %v5196_v27 = vld [vmem:[#allocation5 + $0xa0] ss:$16 sps:$4 sm:$0xff]   ;;  %v5199_v28 = vld [vmem:[#allocation5 + $0xc4] ss:$16 sps:$4 sm:$0xff]  }
 0x573   :  { %3654 = vpow2.f32 %v3142_v35  ;;  %v5204_v52 = vld [vmem:[#allocation5 + $0xc0] ss:$16 sps:$4 sm:$0xff]   ;;  %v5207_v32 = vld [vmem:[#allocation5 + $0xe4] ss:$16 sps:$4 sm:$0xff]  }
 0x574   :  { %v5214_v35 = vld [vmem:[#allocation5 + $0xe0] ss:$16 sps:$4 sm:$0xff]  }
 0x57a   :  { %v3649_v36 = vpop.eup %3648 }
 0x57b   :  { %v1340_v39 = vadd.f32 1.0, %v3649_v36  ;;  %v3651_v40 = vpop.eup %3650  ;;  %v5217_v36 = vld [vmem:[#allocation5 + $0x104] ss:$16 sps:$4 sm:$0xff]  }
 0x57c   :  { %v1341_v43 = vadd.f32 1.0, %v3651_v40  ;;  %v3653_v44 = vpop.eup %3652  ;;  %v5223_v40 = vld [vmem:[#allocation5 + $0x124] ss:$16 sps:$4 sm:$0xff]  }
 0x57d   :  { %3656 = vrcp.f32 %v1340_v39  ;;  %v3655_v37 = vpop.eup %3654  ;;  %v5220_v39 = vld [vmem:[#allocation5 + $0x100] ss:$16 sps:$4 sm:$0xff]   ;;  %7082 = vst [vmem:[#allocation21_spill] sm:$0xff] %v5223_v40 }
 0x57e   :  { %3658 = vrcp.f32 %v1341_v43  ;;  %v1342_v45 = vadd.f32 1.0, %v3655_v37  ;;  %7081 = vst [vmem:[#allocation20_spill] sm:$0xff] %v5220_v39  ;;  %v5229_v43 = vld [vmem:[#allocation5 + $0x144] ss:$16 sps:$4 sm:$0xff]  }
 0x57f   :  { %7084 = vst [vmem:[#allocation24_spill] sm:$0xff] %v5229_v43  ;;  %v5235_v37 = vld [vmem:[#allocation5 + $0x164] ss:$16 sps:$4 sm:$0xff]  }
 0x580   :  { %3660 = vrcp.f32 %v1342_v45  ;;  %7086 = vst [vmem:[#allocation26_spill] sm:$0xff] %v5235_v37  ;;  %v5247_v45 = vld [vmem:[#allocation5 + $0x1a4] ss:$16 sps:$4 sm:$0xff]  }
 0x581   :  { %7090 = vst [vmem:[#allocation28_spill] sm:$0xff] %v5247_v45 }
 0x587   :  { %v3657_v38 = vpop.eup %3656 }
 0x588   :  { %v1351_v41 = vmul.f32 %v3657_v38, %v3653_v44  ;;  %v3659_v42 = vpop.eup %3658  ;;  %v5232_v44 = vld [vmem:[#allocation5 + $0x140] ss:$16 sps:$4 sm:$0xff]  }
 0x589   :  { %v1350_v48 = vmul.f32 %v3659_v42, %v4892_v7  ;;  %v5156_v7 = vld [vmem:[#allocation5] ss:$16 sps:$4 sm:$0xff]   ;;  %7085 = vst [vmem:[#allocation25_spill] sm:$0xff] %v5232_v44 }
 0x58a   :  { %v3661_v57 = vpop.eup %3660  ;;  %v5238_v38 = vld [vmem:[#allocation5 + $0x160] ss:$16 sps:$4 sm:$0xff]  }
 0x58b   :  { %v5144_v56 = vadd.f32 %v1351_v41, %v1350_v48  ;;  %7087 = vst [vmem:[#allocation27_spill] sm:$0xff] %v5238_v38  ;;  %v5241_v41 = vld [vmem:[#allocation5 + $0x184] ss:$16 sps:$4 sm:$0xff]   ;;  %v5244_v42 = vld [vmem:[#allocation5 + $0x180] ss:$16 sps:$4 sm:$0xff]  }
 0x58c   :  { %7088 = vst [vmem:[#allocation29_spill] sm:$0xff] %v5241_v41  ;;  %7089 = vst [vmem:[#allocation31_spill] sm:$0xff] %v5244_v42  ;;  %v5250_v48 = vld [vmem:[#allocation5 + $0x1a0] ss:$16 sps:$4 sm:$0xff]  }
 0x58d   :  { %3662 = vtanh.f32 %v5144_v56  ;;  %7091 = vst [vmem:[#allocation33_spill] sm:$0xff] %v5250_v48 }
 0x597   :  { %v3663_v60 = vpop.eup %3662 }
 0x598   :  { %v1354_v62 = vmul.f32 %v3663_v60, %v3661_v57  ;;  %v5253_v57 = vld [vmem:[#allocation5 + $0x1c4] ss:$16 sps:$4 sm:$0xff]   ;;  %v5256_v60 = vld [vmem:[#allocation5 + $0x1c0] ss:$16 sps:$4 sm:$0xff]  }
 0x599   :  { %7092 = vst [vmem:[#allocation30_spill] sm:$0xff] %v5253_v57  ;;  %7093 = vst [vmem:[#allocation35_spill] sm:$0xff] %v5256_v60 }
 0x59a   :  { %v5147_v14 = vpack.c.bf16 %v1354_v62, %v1354_v62  ;;  %v5259_v62 = vld [vmem:[#allocation5 + $0x1e4] ss:$16 sps:$4 sm:$0xff]  }
 0x59b   :  { %7094 = vst [vmem:[#allocation32_spill] sm:$0xff] %v5259_v62 }
 0x59c   :  { %1389 = vmatmul.mubr.bf16.vlgmr.msra.gmra.mrb[12].mxu1 %v5147_v14  ;;  %1430 = vmatmul.mubr.bf16.vlgmr.msra.gmra.mrb[16].mxu0 %v5147_v14 }
 0x59d   :  { %1562 = vmatprep.mubr.bf16.mxu0 %v5147_v14  ;;  %3283 = vmatpush3.bf16.msra.mxu1 %v4932_v2 }
 0x59e   :  { %3284 = vmatprep.subr.bf16.mxu1 %v6996_v3  ;;  %3298 = vmatprep.mubr.msk.bf16.mxu1 %vm4374_vm2, %v6996_v3 }
 0x59f   :  { %1531 = vmatpush1.bf16.msra.mxu0 %v5156_v7 }
 0x5a0   :  { %1532 = vmatprep.subr.bf16.mxu0 %v5159_v0 }
 0x5a1   :  { %3285 = vmatpush3.bf16.msra.mxu1 %v4936_v4 }
 0x5a2   :  { %3286 = vmatprep.subr.bf16.mxu1 %v6996_v3 }
 0x5a3   :  { %1533 = vmatpush1.bf16.msra.mxu0 %v5164_v53 }
 0x5a4   :  { %1534 = vmatprep.subr.bf16.mxu0 %v5167_v16 }
 0x5a5   :  { %3287 = vmatpush3.bf16.msra.mxu1 %v4940_v5 }
 0x5a6   :  { %3288 = vmatprep.subr.bf16.mxu1 %v6996_v3 }
 0x5a7   :  { %1535 = vmatpush1.bf16.msra.mxu0 %v5172_v54 }
 0x5a8   :  { %1536 = vmatprep.subr.bf16.mxu0 %v5175_v58 }
 0x5a9   :  { %3289 = vmatpush3.bf16.msra.mxu1 %v4944_v8 }
 0x5aa   :  { %3290 = vmatprep.subr.bf16.mxu1 %v6996_v3 }
 0x5ab   :  { %1537 = vmatpush1.bf16.msra.mxu0 %v5180_v15 }
 0x5ac   :  { %1538 = vmatprep.subr.bf16.mxu0 %v5183_v49 }
 0x5ad   :  { %3291 = vmatpush3.bf16.msra.mxu1 %v4948_v9 }
 0x5ae   :  { %3292 = vmatprep.subr.bf16.mxu1 %v6996_v3 }
 0x5af   :  { %1539 = vmatpush1.bf16.msra.mxu0 %v5188_v23 }
 0x5b0   :  { %1540 = vmatprep.subr.bf16.mxu0 %v5191_v24 }
 0x5b1   :  { %3293 = vmatpush3.bf16.msra.mxu1 %v4951_v12  ;;  %v5211_v12 = vld [vmem:[#allocation5 + $0xc] ss:$16 sps:$4 sm:$0xff]  }
 0x5b2   :  { %3294 = vmatprep.subr.bf16.mxu1 %v6996_v3 }
 0x5b3   :  { %1541 = vmatpush1.bf16.msra.mxu0 %v5196_v27 }
 0x5b4   :  { %1542 = vmatprep.subr.bf16.mxu0 %v5199_v28 }
 0x5b5   :  { %3295 = vmatpush3.bf16.msra.mxu1 %v4957_v13 }
 0x5b6   :  { %3296 = vmatprep.subr.bf16.mxu1 %v6996_v3 }
 0x5b7   :  { %1543 = vmatpush1.bf16.msra.mxu0 %v5204_v52 }
 0x5b8   :  { %1544 = vmatprep.subr.bf16.mxu0 %v5207_v32 }
 0x5b9   :  { %3297 = vmatpush3.bf16.msra.mxu1 %v4961_v17  ;;  %v5226_v17 = vld [vmem:[#allocation5 + $0x120] ss:$16 sps:$4 sm:$0xff]  }
 0x5ba   :  { %1571 = vmatprep.subr.bf16.mxu1 %v5211_v12  ;;  %7083 = vst [vmem:[#allocation23_spill] sm:$0xff] %v5226_v17 }
 0x5bb   :  { %1545 = vmatpush1.bf16.msra.mxu0 %v5214_v35 }
 0x5bc   :  { %1546 = vmatprep.subr.bf16.mxu0 %v5217_v36 }
 0x5bf   :  { %1547 = vmatpush1.bf16.msra.mxu0 %v5220_v39 }
 0x5c0   :  { %1548 = vmatprep.subr.bf16.mxu0 %v5223_v40 }
 0x5c3   :  { %1549 = vmatpush1.bf16.msra.mxu0 %v5226_v17 }
 0x5c4   :  { %1550 = vmatprep.subr.bf16.mxu0 %v5229_v43 }
 0x5c7   :  { %1551 = vmatpush1.bf16.msra.mxu0 %v5232_v44 }
 0x5c8   :  { %1552 = vmatprep.subr.bf16.mxu0 %v5235_v37 }
 0x5cb   :  { %1553 = vmatpush1.bf16.msra.mxu0 %v5238_v38 }
 0x5cc   :  { %1554 = vmatprep.subr.bf16.mxu0 %v5241_v41 }
 0x5cf   :  { %1555 = vmatpush1.bf16.msra.mxu0 %v5244_v42 }
 0x5d0   :  { %1556 = vmatprep.subr.bf16.mxu0 %v5247_v45 }
 0x5d3   :  { %1557 = vmatpush1.bf16.msra.mxu0 %v5250_v48 }
 0x5d4   :  { %1558 = vmatprep.subr.bf16.mxu0 %v5253_v57 }
 0x5d7   :  { %1559 = vmatpush1.bf16.msra.mxu0 %v5256_v60 }
 0x5d8   :  { %1560 = vmatprep.subr.bf16.mxu0 %v5259_v62 }
 0x5db   :  { %1561 = vmatpush1.bf16.msra.mxu0 %v5262_v19 }
 0x5dc   :  { %1637 = vmatprep.subr.bf16.mxu0 %v5265_v55 }
 0x66f   :  { %v1390_v6 = vpop.f32.mrb[12].mxu1  ;;  %v1431_v48 = vpop.f32.mrb[16].mxu0 }
 0x670   :  { %v1391_v57 = vadd.f32 %v1390_v6, %v4971_v22  ;;  %v1392_v45 = vpop.f32.mrb[13].mxu1  ;;  %v1433_v42 = vpop.f32.mrb[17].mxu0  ;;  %v1432_v19 = vadd.f32 %v1431_v48, %v4981_v50 }
 0x671   :  { %v1393_v60 = vadd.f32 %v1392_v45, %v4975_v26  ;;  %v1394_v41 = vpop.f32.mrb[14].mxu1  ;;  %v1435_v38 = vpop.f32.mrb[18].mxu0  ;;  %v1434_v55 = vadd.f32 %v1433_v42, %v4985_v51  ;;  %v5321_v42 = vld [vmem:[#allocation5 + $0x14c] ss:$16 sps:$4 sm:$0xff]  }
 0x672   :  { %v3143_v37 = vmul.f32 -1.442695, %v1391_v57  ;;  %v1395_v62 = vpop.f32.mrb[15].mxu1  ;;  %v1436_v44 = vpop.f32.mrb[19].mxu0  ;;  %v3145_v17 = vmul.f32 -1.442695, %v1432_v19 }
 0x673   :  { %v3144_v43 = vmul.f32 -1.442695, %v1393_v60  ;;  %v5324_v62 = vld [vmem:[#allocation5 + $0x148] ss:$16 sps:$4 sm:$0xff]  }
 0x674   :  { %3664 = vpow2.f32 %v3143_v37 }
 0x675   :  { %3666 = vpow2.f32 %v3144_v43 }
 0x676   :  { %3668 = vtanh.f32 %v1434_v55 }
 0x677   :  { %3670 = vpow2.f32 %v3145_v17 }
 0x67e   :  { %v3665_v40 = vpop.eup %3664 }
 0x67f   :  { %v1447_v39 = vadd.f32 1.0, %v3665_v40  ;;  %v3667_v6 = vpop.eup %3666 }
 0x680   :  { %v1448_v45 = vadd.f32 1.0, %v3667_v6  ;;  %v3669_v38 = vpop.eup %3668  ;;  %v5327_v6 = vld [vmem:[#allocation5 + $0x16c] ss:$16 sps:$4 sm:$0xff]  }
 0x681   :  { %3672 = vrcp.f32 %v1447_v39  ;;  %v3671_v41 = vpop.eup %3670  ;;  %v5318_v39 = vld [vmem:[#allocation5 + $0x128] ss:$16 sps:$4 sm:$0xff]   ;;  %7097 = vst [vmem:[#allocation39_spill] sm:$0xff] %v5327_v6 }
 0x682   :  { %3674 = vrcp.f32 %v1448_v45  ;;  %v1449_v37 = vadd.f32 1.0, %v3671_v41  ;;  %v5330_v45 = vld [vmem:[#allocation5 + $0x168] ss:$16 sps:$4 sm:$0xff]  }
 0x683   :  { %7098 = vst [vmem:[#allocation36_spill] sm:$0xff] %v5330_v45  ;;  %v5336_v41 = vld [vmem:[#allocation5 + $0x188] ss:$16 sps:$4 sm:$0xff]  }
 0x684   :  { %3676 = vrcp.f32 %v1449_v37  ;;  %7100 = vst [vmem:[#allocation38_spill] sm:$0xff] %v5336_v41  ;;  %v5348_v37 = vld [vmem:[#allocation5 + $0x1c8] ss:$16 sps:$4 sm:$0xff]  }
 0x685   :  { %7104 = vst [vmem:[#allocation44_spill] sm:$0xff] %v5348_v37 }
 0x68b   :  { %v3673_v57 = vpop.eup %3672 }
 0x68c   :  { %v1458_v44 = vmul.f32 %v3673_v57, %v3669_v38  ;;  %v3675_v60 = vpop.eup %3674  ;;  %v5333_v38 = vld [vmem:[#allocation5 + $0x18c] ss:$16 sps:$4 sm:$0xff]  }
 0x68d   :  { %v1457_v43 = vmul.f32 %v3675_v60, %v4989_v63  ;;  %v5288_v63 = vld [vmem:[#allocation5 + $0x88] ss:$16 sps:$4 sm:$0xff]   ;;  %7099 = vst [vmem:[#allocation41_spill] sm:$0xff] %v5333_v38  ;;  %v5339_v57 = vld [vmem:[#allocation5 + $0x1ac] ss:$16 sps:$4 sm:$0xff]  }
 0x68e   :  { %v3677_v19 = vpop.eup %3676  ;;  %7101 = vst [vmem:[#allocation42_spill] sm:$0xff] %v5339_v57  ;;  %v5345_v60 = vld [vmem:[#allocation5 + $0x1cc] ss:$16 sps:$4 sm:$0xff]  }
 0x68f   :  { %v5273_v48 = vadd.f32 %v1458_v44, %v1457_v43  ;;  %v5342_v44 = vld [vmem:[#allocation5 + $0x1a8] ss:$16 sps:$4 sm:$0xff]   ;;  %7103 = vst [vmem:[#allocation43_spill] sm:$0xff] %v5345_v60  ;;  %v5351_v43 = vld [vmem:[#allocation5 + $0x1ec] ss:$16 sps:$4 sm:$0xff]  }
 0x690   :  { %7102 = vst [vmem:[#allocation40_spill] sm:$0xff] %v5342_v44  ;;  %7105 = vst [vmem:[#allocation45_spill] sm:$0xff] %v5351_v43 }
 0x691   :  { %3678 = vtanh.f32 %v5273_v48 }
 0x69b   :  { %v3679_v55 = vpop.eup %3678 }
 0x69c   :  { %v1461_v40 = vmul.f32 %v3679_v55, %v3677_v19  ;;  %v5354_v19 = vld [vmem:[#allocation5 + $0x1e8] ss:$16 sps:$4 sm:$0xff]   ;;  %v5357_v55 = vld [vmem:[#allocation8 + $0xc] ss:$16 sps:$4 sm:$0xff]  }
 0x69d   :  { %7106 = vst [vmem:[#allocation46_spill] sm:$0xff] %v5354_v19  ;;  %7107 = vst [vmem:[#allocation47_spill] sm:$0xff] %v5357_v55 }
 0x69e   :  { %v5276_v17 = vpack.c.bf16 %v1461_v40, %v1461_v40 }
 0x6a0   :  { %3299 = vmatmul.mubr.bf16.vlgmr.msra.gmra.mrb[16].mxu1 %v5276_v17 }
 0x6a1   :  { %1603 = vmatprep.mubr.bf16.mxu1 %v5147_v14  ;;  %1572 = vmatpush1.bf16.msra.mxu1 %v4996_v11  ;;  %v5291_v14 = vld [vmem:[#allocation5 + $0xac] ss:$16 sps:$4 sm:$0xff]   ;;  %v5294_v11 = vld [vmem:[#allocation5 + $0xa8] ss:$16 sps:$4 sm:$0xff]  }
 0x6a2   :  { %1573 = vmatprep.subr.bf16.mxu1 %v4999_v18  ;;  %v5297_v18 = vld [vmem:[#allocation5 + $0xcc] ss:$16 sps:$4 sm:$0xff]  }
 0x6a5   :  { %1574 = vmatpush1.bf16.msra.mxu1 %v5002_v21  ;;  %v5300_v21 = vld [vmem:[#allocation5 + $0xc8] ss:$16 sps:$4 sm:$0xff]  }
 0x6a6   :  { %1575 = vmatprep.subr.bf16.mxu1 %v5005_v25  ;;  %v5303_v25 = vld [vmem:[#allocation5 + $0xec] ss:$16 sps:$4 sm:$0xff]  }
 0x6a9   :  { %1576 = vmatpush1.bf16.msra.mxu1 %v5008_v29  ;;  %v5306_v29 = vld [vmem:[#allocation5 + $0xe8] ss:$16 sps:$4 sm:$0xff]  }
 0x6aa   :  { %1577 = vmatprep.subr.bf16.mxu1 %v5011_v1  ;;  %v5309_v1 = vld [vmem:[#allocation5 + $0x10c] ss:$16 sps:$4 sm:$0xff]  }
 0x6ad   :  { %1578 = vmatpush1.bf16.msra.mxu1 %v5014_v30  ;;  %v5312_v30 = vld [vmem:[#allocation5 + $0x108] ss:$16 sps:$4 sm:$0xff]  }
 0x6ae   :  { %1579 = vmatprep.subr.bf16.mxu1 %v5017_v33  ;;  %v5315_v33 = vld [vmem:[#allocation5 + $0x12c] ss:$16 sps:$4 sm:$0xff]  }
 0x6b1   :  { %1580 = vmatpush1.bf16.msra.mxu1 %v5288_v63 }
 0x6b2   :  { %1581 = vmatprep.subr.bf16.mxu1 %v5291_v14 }
 0x6b5   :  { %1582 = vmatpush1.bf16.msra.mxu1 %v5294_v11 }
 0x6b6   :  { %1583 = vmatprep.subr.bf16.mxu1 %v5297_v18 }
 0x6b9   :  { %1584 = vmatpush1.bf16.msra.mxu1 %v5300_v21 }
 0x6ba   :  { %1585 = vmatprep.subr.bf16.mxu1 %v5303_v25 }
 0x6bd   :  { %1586 = vmatpush1.bf16.msra.mxu1 %v5306_v29 }
 0x6be   :  { %1587 = vmatprep.subr.bf16.mxu1 %v5309_v1 }
 0x6c1   :  { %1588 = vmatpush1.bf16.msra.mxu1 %v5312_v30 }
 0x6c2   :  { %1589 = vmatprep.subr.bf16.mxu1 %v5315_v33 }
 0x6c5   :  { %1590 = vmatpush1.bf16.msra.mxu1 %v5318_v39 }
 0x6c6   :  { %1591 = vmatprep.subr.bf16.mxu1 %v5321_v42 }
 0x6c9   :  { %1592 = vmatpush1.bf16.msra.mxu1 %v5324_v62 }
 0x6ca   :  { %1593 = vmatprep.subr.bf16.mxu1 %v5327_v6 }
 0x6cd   :  { %1594 = vmatpush1.bf16.msra.mxu1 %v5330_v45 }
 0x6ce   :  { %1595 = vmatprep.subr.bf16.mxu1 %v5333_v38 }
 0x6d1   :  { %1596 = vmatpush1.bf16.msra.mxu1 %v5336_v41 }
 0x6d2   :  { %1597 = vmatprep.subr.bf16.mxu1 %v5339_v57 }
 0x6d5   :  { %1598 = vmatpush1.bf16.msra.mxu1 %v5342_v44 }
 0x6d6   :  { %1599 = vmatprep.subr.bf16.mxu1 %v5345_v60 }
 0x6d9   :  { %1600 = vmatpush1.bf16.msra.mxu1 %v5348_v37 }
 0x6da   :  { %1601 = vmatprep.subr.bf16.mxu1 %v5351_v43 }
 0x6dd   :  { %1602 = vmatpush1.bf16.msra.mxu1 %v5354_v19 }
 0x6de   :  { %1678 = vmatprep.subr.bf16.mxu1 %v5357_v55  ;;  %v1515_v55 = vstv %s3147_s1  ;;  %s2914_s1 = scvt.s32.f32 %s3198_s17 }
 0x6df   :  { %vm1516_vm8 = vcmp.eq.s32.totalorder %v7013_v46, %v1515_v55  ;;  %v5381_v55 = vld [vmem:[#allocation8] ss:$16 sps:$4 sm:$0xff]  }
 0x6e0   :  { %7110 = vst [vmem:[#allocation50_spill] sm:$0xff] %v5381_v55 }
 0x773   :  { %v1497_v40 = vpop.f32.mrb[16].mxu1 }
 0x774   :  { %v5361_v44 = vadd.f32 %v1497_v40, %v5047_v34  ;;  %v3300_v60 = vpop.f32.mrb[17].mxu1  ;;  %v3148_v34 = vsel %vm1516_vm8, 1.0, %v6996_v3 }
 0x775   :  { %v1500_v57 = vpop.f32.mrb[18].mxu1  ;;  %v6747_v60 = vstv %s5369_s19 }
 0x776   :  { %7108 = vst [vmem:[#allocation48_spill] sm:$0xff] %v5361_v44  ;;  %v3301_v41 = vpop.f32.mrb[19].mxu1  ;;  %v1503_v37 = vsel %vm1221_vm3, %v5361_v44, -inf }
 0x777   :  { %1504 = vmax.xlane.f32.xlu1 %v1503_v37  ;;  %v1521_v41 = vstv %s1520_s18 }
 0x804   :  { %v1505_v43 = vpop.xlane.xlu1 %1504 }
 0x805   :  { %vm1506_vm7 = vcmp.eq.f32.partialorder %v5361_v44, %v1505_v43  ;;  %v5374_v43 = vmul.f32 %v3148_v34, %v1521_v41  ;;  %v5387_v34 = vld [vmem:[#allocation8 + $0x24] ss:$16 sps:$4 sm:$0xff]   ;;  %v5390_v41 = vld [vmem:[#allocation8 + $0x2c] ss:$16 sps:$4 sm:$0xff]  }
 0x806   :  { %v1507_v19 = vsel %vm1506_vm7, %v5055_v47, 128.0  ;;  %7112 = vst [vmem:[#allocation52_spill] sm:$0xff] %v5387_v34  ;;  %7113 = vst [vmem:[#allocation53_spill] sm:$0xff] %v5390_v41 }
 0x807   :  { %v1508_v38 = vsel %vm1221_vm3, %v1507_v19, inf  ;;  %7109 = vst [vmem:[#allocation49_spill] sm:$0xff] %v5374_v43 }
 0x808   :  { %1509 = vmin.xlane.f32.xlu1 %v1508_v38 }
 0x895   :  { %v1510_v57 = vpop.xlane.xlu1 %1509 }
 0x896   :  { %vm1511_vm9 = vcmp.eq.f32.partialorder %v1507_v19, %v1510_v57  ;;  %v5384_v19 = vld [vmem:[#allocation8 + $0x8] ss:$16 sps:$4 sm:$0xff]   ;;  %v5399_v57 = vld [vmem:[#allocation8 + $0x44] ss:$16 sps:$4 sm:$0xff]  }
 0x897   :  { %v3146_v37 = vsel %vm1511_vm9, 1.0, %v6996_v3  ;;  %7111 = vst [vmem:[#allocation51_spill] sm:$0xff] %v5384_v19  ;;  %7116 = vst [vmem:[#allocation56_spill] sm:$0xff] %v5399_v57  ;;  %vm2945_vm9 = vcmask 1042432  }
 0x898   :  { %v1527_v38 = vmul.f32 %v3146_v37, %v6747_v60  ;;  %v5402_v37 = vld [vmem:[#allocation8 + $0x4c] ss:$16 sps:$4 sm:$0xff]   ;;  %v5411_v60 = vld [vmem:[#allocation8 + $0x64] ss:$16 sps:$4 sm:$0xff]  }
 0x899   :  { %7117 = vst [vmem:[#allocation57_spill] sm:$0xff] %v5402_v37  ;;  %7120 = vst [vmem:[#allocation60_spill] sm:$0xff] %v5411_v60 }
 0x89a   :  { %v1528_v40 = vadd.f32 %v1527_v38, %v5374_v43  ;;  %v5405_v38 = vld [vmem:[#allocation8 + $0x40] ss:$16 sps:$4 sm:$0xff]   ;;  %v5414_v43 = vld [vmem:[#allocation8 + $0x6c] ss:$16 sps:$4 sm:$0xff]  }
 0x89b   :  { %7118 = vst [vmem:[#allocation58_spill] sm:$0xff] %v5405_v38  ;;  %7121 = vst [vmem:[#allocation61_spill] sm:$0xff] %v5414_v43 }
 0x89c   :  { %v1529_v44 = vpack.c.bf16 %v1528_v40, %v1528_v40  ;;  %v5408_v40 = vld [vmem:[#allocation8 + $0x48] ss:$16 sps:$4 sm:$0xff]  }
 0x89d   :  { %7119 = vst [vmem:[#allocation59_spill] sm:$0xff] %v5408_v40 }
 0x89e   :  { %1563 = vmatmul.mubr.bf16.vlgmr.msra.gmra.mrb[20].mxu0 %v1529_v44  ;;  %1604 = vmatmul.mubr.bf16.vlgmr.msra.gmra.mrb[20].mxu1 %v1529_v44  ;;  %v5393_v44 = vld [vmem:[#allocation8 + $0x20] ss:$16 sps:$4 sm:$0xff]  }
 0x89f   :  { %1669 = vmatprep.mubr.bf16.mxu0 %v5276_v17  ;;  %1710 = vmatprep.mubr.bf16.mxu1 %v5276_v17  ;;  %7114 = vst [vmem:[#allocation54_spill] sm:$0xff] %v5393_v44  ;;  %v5396_v17 = vld [vmem:[#allocation8 + $0x28] ss:$16 sps:$4 sm:$0xff]  }
 0x8a0   :  { %1638 = vmatpush1.bf16.msra.mxu0 %v5381_v55  ;;  %1679 = vmatpush1.bf16.msra.mxu1 %v5384_v19  ;;  %7115 = vst [vmem:[#allocation55_spill] sm:$0xff] %v5396_v17 }
 0x8a1   :  { %1639 = vmatprep.subr.bf16.mxu0 %v5387_v34  ;;  %1680 = vmatprep.subr.bf16.mxu1 %v5390_v41 }
 0x8a4   :  { %1640 = vmatpush1.bf16.msra.mxu0 %v5393_v44  ;;  %1681 = vmatpush1.bf16.msra.mxu1 %v5396_v17 }
 0x8a5   :  { %1641 = vmatprep.subr.bf16.mxu0 %v5399_v57  ;;  %1682 = vmatprep.subr.bf16.mxu1 %v5402_v37  ;;  %v5417_v57 = vld [vmem:[#allocation8 + $0x60] ss:$16 sps:$4 sm:$0xff]   ;;  %v5420_v37 = vld [vmem:[#allocation8 + $0x68] ss:$16 sps:$4 sm:$0xff]  }
 0x8a6   :  { %7122 = vst [vmem:[#allocation62_spill] sm:$0xff] %v5417_v57  ;;  %7123 = vst [vmem:[#allocation63_spill] sm:$0xff] %v5420_v37 }
 0x8a8   :  { %1642 = vmatpush1.bf16.msra.mxu0 %v5405_v38  ;;  %1683 = vmatpush1.bf16.msra.mxu1 %v5408_v40  ;;  %v5423_v38 = vld [vmem:[#allocation8 + $0x84] ss:$16 sps:$4 sm:$0xff]   ;;  %v5426_v40 = vld [vmem:[#allocation8 + $0x8c] ss:$16 sps:$4 sm:$0xff]  }
 0x8a9   :  { %1643 = vmatprep.subr.bf16.mxu0 %v5411_v60  ;;  %1684 = vmatprep.subr.bf16.mxu1 %v5414_v43  ;;  %7124 = vst [vmem:[#allocation64_spill] sm:$0xff] %v5423_v38  ;;  %7125 = vst [vmem:[#allocation65_spill] sm:$0xff] %v5426_v40  ;;  %v5429_v60 = vld [vmem:[#allocation8 + $0x80] ss:$16 sps:$4 sm:$0xff]   ;;  %v5432_v43 = vld [vmem:[#allocation8 + $0x88] ss:$16 sps:$4 sm:$0xff]  }
 0x8aa   :  { %7126 = vst [vmem:[#allocation66_spill] sm:$0xff] %v5429_v60  ;;  %7127 = vst [vmem:[#allocation67_spill] sm:$0xff] %v5432_v43 }
 0x8ac   :  { %1644 = vmatpush1.bf16.msra.mxu0 %v5417_v57  ;;  %1685 = vmatpush1.bf16.msra.mxu1 %v5420_v37  ;;  %v5435_v57 = vld [vmem:[#allocation8 + $0xa4] ss:$16 sps:$4 sm:$0xff]   ;;  %v5438_v37 = vld [vmem:[#allocation8 + $0xac] ss:$16 sps:$4 sm:$0xff]  }
 0x8ad   :  { %1645 = vmatprep.subr.bf16.mxu0 %v5423_v38  ;;  %1686 = vmatprep.subr.bf16.mxu1 %v5426_v40  ;;  %7128 = vst [vmem:[#allocation68_spill] sm:$0xff] %v5435_v57  ;;  %7129 = vst [vmem:[#allocation69_spill] sm:$0xff] %v5438_v37  ;;  %v5441_v38 = vld [vmem:[#allocation8 + $0xa0] ss:$16 sps:$4 sm:$0xff]   ;;  %v5444_v40 = vld [vmem:[#allocation8 + $0xa8] ss:$16 sps:$4 sm:$0xff]  }
 0x8ae   :  { %7130 = vst [vmem:[#allocation70_spill] sm:$0xff] %v5441_v38  ;;  %7131 = vst [vmem:[#allocation71_spill] sm:$0xff] %v5444_v40 }
 0x8b0   :  { %1646 = vmatpush1.bf16.msra.mxu0 %v5429_v60  ;;  %1687 = vmatpush1.bf16.msra.mxu1 %v5432_v43  ;;  %v5447_v60 = vld [vmem:[#allocation8 + $0xc4] ss:$16 sps:$4 sm:$0xff]   ;;  %v5450_v43 = vld [vmem:[#allocation8 + $0xcc] ss:$16 sps:$4 sm:$0xff]  }
 0x8b1   :  { %1647 = vmatprep.subr.bf16.mxu0 %v5435_v57  ;;  %1688 = vmatprep.subr.bf16.mxu1 %v5438_v37  ;;  %7132 = vst [vmem:[#allocation72_spill] sm:$0xff] %v5447_v60  ;;  %7133 = vst [vmem:[#allocation73_spill] sm:$0xff] %v5450_v43  ;;  %v5453_v57 = vld [vmem:[#allocation8 + $0xc0] ss:$16 sps:$4 sm:$0xff]   ;;  %v5456_v37 = vld [vmem:[#allocation8 + $0xc8] ss:$16 sps:$4 sm:$0xff]  }
 0x8b2   :  { %7134 = vst [vmem:[#allocation74_spill] sm:$0xff] %v5453_v57  ;;  %7135 = vst [vmem:[#allocation75_spill] sm:$0xff] %v5456_v37 }
 0x8b4   :  { %1648 = vmatpush1.bf16.msra.mxu0 %v5441_v38  ;;  %1689 = vmatpush1.bf16.msra.mxu1 %v5444_v40  ;;  %v5459_v38 = vld [vmem:[#allocation8 + $0xe4] ss:$16 sps:$4 sm:$0xff]   ;;  %v5462_v40 = vld [vmem:[#allocation8 + $0xec] ss:$16 sps:$4 sm:$0xff]  }
 0x8b5   :  { %1649 = vmatprep.subr.bf16.mxu0 %v5447_v60  ;;  %1690 = vmatprep.subr.bf16.mxu1 %v5450_v43  ;;  %7136 = vst [vmem:[#allocation76_spill] sm:$0xff] %v5459_v38  ;;  %7137 = vst [vmem:[#allocation77_spill] sm:$0xff] %v5462_v40  ;;  %v5465_v60 = vld [vmem:[#allocation8 + $0xe0] ss:$16 sps:$4 sm:$0xff]   ;;  %v5468_v43 = vld [vmem:[#allocation8 + $0xe8] ss:$16 sps:$4 sm:$0xff]  }
 0x8b6   :  { %7138 = vst [vmem:[#allocation78_spill] sm:$0xff] %v5465_v60  ;;  %7139 = vst [vmem:[#allocation79_spill] sm:$0xff] %v5468_v43 }
 0x8b8   :  { %1650 = vmatpush1.bf16.msra.mxu0 %v5453_v57  ;;  %1691 = vmatpush1.bf16.msra.mxu1 %v5456_v37  ;;  %v5471_v57 = vld [vmem:[#allocation8 + $0x104] ss:$16 sps:$4 sm:$0xff]   ;;  %v5474_v37 = vld [vmem:[#allocation8 + $0x10c] ss:$16 sps:$4 sm:$0xff]  }
 0x8b9   :  { %1651 = vmatprep.subr.bf16.mxu0 %v5459_v38  ;;  %1692 = vmatprep.subr.bf16.mxu1 %v5462_v40  ;;  %7140 = vst [vmem:[#allocation80_spill] sm:$0xff] %v5471_v57  ;;  %7141 = vst [vmem:[#allocation81_spill] sm:$0xff] %v5474_v37  ;;  %v5477_v38 = vld [vmem:[#allocation8 + $0x100] ss:$16 sps:$4 sm:$0xff]   ;;  %v5480_v40 = vld [vmem:[#allocation8 + $0x108] ss:$16 sps:$4 sm:$0xff]  }
 0x8ba   :  { %7142 = vst [vmem:[#allocation82_spill] sm:$0xff] %v5477_v38  ;;  %7143 = vst [vmem:[#allocation83_spill] sm:$0xff] %v5480_v40 }
 0x8bc   :  { %1652 = vmatpush1.bf16.msra.mxu0 %v5465_v60  ;;  %1693 = vmatpush1.bf16.msra.mxu1 %v5468_v43  ;;  %v5483_v60 = vld [vmem:[#allocation8 + $0x124] ss:$16 sps:$4 sm:$0xff]   ;;  %v5486_v43 = vld [vmem:[#allocation8 + $0x12c] ss:$16 sps:$4 sm:$0xff]  }
 0x8bd   :  { %1653 = vmatprep.subr.bf16.mxu0 %v5471_v57  ;;  %1694 = vmatprep.subr.bf16.mxu1 %v5474_v37  ;;  %7144 = vst [vmem:[#allocation84_spill] sm:$0xff] %v5483_v60  ;;  %7145 = vst [vmem:[#allocation85_spill] sm:$0xff] %v5486_v43  ;;  %v5489_v57 = vld [vmem:[#allocation8 + $0x120] ss:$16 sps:$4 sm:$0xff]   ;;  %v5492_v37 = vld [vmem:[#allocation8 + $0x128] ss:$16 sps:$4 sm:$0xff]  }
 0x8be   :  { %7146 = vst [vmem:[#allocation86_spill] sm:$0xff] %v5489_v57  ;;  %7147 = vst [vmem:[#allocation87_spill] sm:$0xff] %v5492_v37 }
 0x8c0   :  { %1654 = vmatpush1.bf16.msra.mxu0 %v5477_v38  ;;  %1695 = vmatpush1.bf16.msra.mxu1 %v5480_v40  ;;  %v5495_v38 = vld [vmem:[#allocation8 + $0x144] ss:$16 sps:$4 sm:$0xff]   ;;  %v5498_v40 = vld [vmem:[#allocation8 + $0x14c] ss:$16 sps:$4 sm:$0xff]  }
 0x8c1   :  { %1655 = vmatprep.subr.bf16.mxu0 %v5483_v60  ;;  %1696 = vmatprep.subr.bf16.mxu1 %v5486_v43  ;;  %7148 = vst [vmem:[#allocation88_spill] sm:$0xff] %v5495_v38  ;;  %7149 = vst [vmem:[#allocation89_spill] sm:$0xff] %v5498_v40  ;;  %v5501_v60 = vld [vmem:[#allocation8 + $0x140] ss:$16 sps:$4 sm:$0xff]   ;;  %v5504_v43 = vld [vmem:[#allocation8 + $0x148] ss:$16 sps:$4 sm:$0xff]  }
 0x8c2   :  { %7150 = vst [vmem:[#allocation90_spill] sm:$0xff] %v5501_v60  ;;  %7151 = vst [vmem:[#allocation91_spill] sm:$0xff] %v5504_v43 }
 0x8c4   :  { %1656 = vmatpush1.bf16.msra.mxu0 %v5489_v57  ;;  %1697 = vmatpush1.bf16.msra.mxu1 %v5492_v37  ;;  %v5507_v57 = vld [vmem:[#allocation8 + $0x164] ss:$16 sps:$4 sm:$0xff]   ;;  %v5510_v37 = vld [vmem:[#allocation8 + $0x16c] ss:$16 sps:$4 sm:$0xff]  }
 0x8c5   :  { %1657 = vmatprep.subr.bf16.mxu0 %v5495_v38  ;;  %1698 = vmatprep.subr.bf16.mxu1 %v5498_v40  ;;  %7152 = vst [vmem:[#allocation92_spill] sm:$0xff] %v5507_v57  ;;  %7153 = vst [vmem:[#allocation93_spill] sm:$0xff] %v5510_v37  ;;  %v5513_v38 = vld [vmem:[#allocation8 + $0x160] ss:$16 sps:$4 sm:$0xff]   ;;  %v5516_v40 = vld [vmem:[#allocation8 + $0x168] ss:$16 sps:$4 sm:$0xff]  }
 0x8c6   :  { %7154 = vst [vmem:[#allocation94_spill] sm:$0xff] %v5513_v38  ;;  %7155 = vst [vmem:[#allocation95_spill] sm:$0xff] %v5516_v40 }
 0x8c8   :  { %1658 = vmatpush1.bf16.msra.mxu0 %v5501_v60  ;;  %1699 = vmatpush1.bf16.msra.mxu1 %v5504_v43  ;;  %v5519_v60 = vld [vmem:[#allocation8 + $0x184] ss:$16 sps:$4 sm:$0xff]   ;;  %v5522_v43 = vld [vmem:[#allocation8 + $0x18c] ss:$16 sps:$4 sm:$0xff]  }
 0x8c9   :  { %1659 = vmatprep.subr.bf16.mxu0 %v5507_v57  ;;  %1700 = vmatprep.subr.bf16.mxu1 %v5510_v37  ;;  %7156 = vst [vmem:[#allocation96_spill] sm:$0xff] %v5519_v60  ;;  %7157 = vst [vmem:[#allocation97_spill] sm:$0xff] %v5522_v43  ;;  %v5525_v57 = vld [vmem:[#allocation8 + $0x180] ss:$16 sps:$4 sm:$0xff]   ;;  %v5528_v37 = vld [vmem:[#allocation8 + $0x188] ss:$16 sps:$4 sm:$0xff]  }
 0x8ca   :  { %7158 = vst [vmem:[#allocation98_spill] sm:$0xff] %v5525_v57  ;;  %7159 = vst [vmem:[#allocation99_spill] sm:$0xff] %v5528_v37 }
 0x8cc   :  { %1660 = vmatpush1.bf16.msra.mxu0 %v5513_v38  ;;  %1701 = vmatpush1.bf16.msra.mxu1 %v5516_v40  ;;  %v5531_v38 = vld [vmem:[#allocation8 + $0x1a4] ss:$16 sps:$4 sm:$0xff]   ;;  %v5534_v40 = vld [vmem:[#allocation8 + $0x1ac] ss:$16 sps:$4 sm:$0xff]  }
 0x8cd   :  { %1661 = vmatprep.subr.bf16.mxu0 %v5519_v60  ;;  %1702 = vmatprep.subr.bf16.mxu1 %v5522_v43  ;;  %7160 = vst [vmem:[#allocation100_spill] sm:$0xff] %v5531_v38  ;;  %7161 = vst [vmem:[#allocation101_spill] sm:$0xff] %v5534_v40  ;;  %v5537_v60 = vld [vmem:[#allocation8 + $0x1a0] ss:$16 sps:$4 sm:$0xff]   ;;  %v5540_v43 = vld [vmem:[#allocation8 + $0x1a8] ss:$16 sps:$4 sm:$0xff]  }
 0x8ce   :  { %7162 = vst [vmem:[#allocation102_spill] sm:$0xff] %v5537_v60  ;;  %7163 = vst [vmem:[#allocation103_spill] sm:$0xff] %v5540_v43 }
 0x8d0   :  { %1662 = vmatpush1.bf16.msra.mxu0 %v5525_v57  ;;  %1703 = vmatpush1.bf16.msra.mxu1 %v5528_v37  ;;  %v5543_v57 = vld [vmem:[#allocation8 + $0x1c4] ss:$16 sps:$4 sm:$0xff]   ;;  %v5546_v37 = vld [vmem:[#allocation8 + $0x1cc] ss:$16 sps:$4 sm:$0xff]  }
 0x8d1   :  { %1663 = vmatprep.subr.bf16.mxu0 %v5531_v38  ;;  %1704 = vmatprep.subr.bf16.mxu1 %v5534_v40  ;;  %7164 = vst [vmem:[#allocation104_spill] sm:$0xff] %v5543_v57  ;;  %7165 = vst [vmem:[#allocation105_spill] sm:$0xff] %v5546_v37  ;;  %v5549_v38 = vld [vmem:[#allocation8 + $0x1c0] ss:$16 sps:$4 sm:$0xff]   ;;  %v5552_v40 = vld [vmem:[#allocation8 + $0x1c8] ss:$16 sps:$4 sm:$0xff]  }
 0x8d2   :  { %7166 = vst [vmem:[#allocation106_spill] sm:$0xff] %v5549_v38  ;;  %7167 = vst [vmem:[#allocation107_spill] sm:$0xff] %v5552_v40 }
 0x8d4   :  { %1664 = vmatpush1.bf16.msra.mxu0 %v5537_v60  ;;  %1705 = vmatpush1.bf16.msra.mxu1 %v5540_v43  ;;  %v5555_v60 = vld [vmem:[#allocation8 + $0x1e4] ss:$16 sps:$4 sm:$0xff]   ;;  %v5558_v43 = vld [vmem:[#allocation8 + $0x1ec] ss:$16 sps:$4 sm:$0xff]  }
 0x8d5   :  { %1665 = vmatprep.subr.bf16.mxu0 %v5543_v57  ;;  %1706 = vmatprep.subr.bf16.mxu1 %v5546_v37  ;;  %7168 = vst [vmem:[#allocation108_spill] sm:$0xff] %v5555_v60  ;;  %7169 = vst [vmem:[#allocation109_spill] sm:$0xff] %v5558_v43  ;;  %v5561_v57 = vld [vmem:[#allocation8 + $0x1e0] ss:$16 sps:$4 sm:$0xff]   ;;  %v5564_v37 = vld [vmem:[#allocation8 + $0x1e8] ss:$16 sps:$4 sm:$0xff]  }
 0x8d6   :  { %7170 = vst [vmem:[#allocation110_spill] sm:$0xff] %v5561_v57  ;;  %7171 = vst [vmem:[#allocation111_spill] sm:$0xff] %v5564_v37 }
 0x8d8   :  { %1666 = vmatpush1.bf16.msra.mxu0 %v5549_v38  ;;  %1707 = vmatpush1.bf16.msra.mxu1 %v5552_v40 }
 0x8d9   :  { %1667 = vmatprep.subr.bf16.mxu0 %v5555_v60  ;;  %1708 = vmatprep.subr.bf16.mxu1 %v5558_v43 }
 0x8dc   :  { %1668 = vmatpush1.bf16.msra.mxu0 %v5561_v57  ;;  %1709 = vmatpush1.bf16.msra.mxu1 %v5564_v37 }
 0x8dd   :  { %3302 = vmatprep.subr.bf16.mxu0 %v6996_v3  ;;  %1811 = vmatprep.subr.bf16.mxu1 %v5136_v10 }
 0x971   :  { %v1564_v40 = vpop.f32.mrb[20].mxu0  ;;  %v1605_v38 = vpop.f32.mrb[20].mxu1 }
 0x972   :  { %v1565_v60 = vadd.f32 %v1564_v40, %v7078_v20  ;;  %v1566_v17 = vpop.f32.mrb[21].mxu0  ;;  %v1607_v44 = vpop.f32.mrb[21].mxu1  ;;  %v1606_v37 = vadd.f32 %v1605_v38, %v7080_v31 }
 0x973   :  { %v1567_v43 = vadd.f32 %v1566_v17, %v7079_v61  ;;  %v1568_v41 = vpop.f32.mrb[22].mxu0  ;;  %v1609_v34 = vpop.f32.mrb[22].mxu1  ;;  %v1608_v10 = vadd.f32 %v1607_v44, %v4889_v59 }
 0x974   :  { %v3150_v19 = vmul.f32 -1.442695, %v1565_v60  ;;  %v1569_v57 = vpop.f32.mrb[23].mxu0  ;;  %v1610_v55 = vpop.f32.mrb[23].mxu1  ;;  %v3152_v47 = vmul.f32 -1.442695, %v1606_v37 }
 0x975   :  { %v3151_v46 = vmul.f32 -1.442695, %v1567_v43 }
 0x976   :  { %3680 = vpow2.f32 %v3150_v19 }
 0x977   :  { %3682 = vpow2.f32 %v3151_v46 }
 0x978   :  { %3684 = vtanh.f32 %v1608_v10 }
 0x979   :  { %3686 = vpow2.f32 %v3152_v47 }
 0x980   :  { %v3681_v45 = vpop.eup %3680 }
 0x981   :  { %v1621_v6 = vadd.f32 1.0, %v3681_v45  ;;  %v3683_v40 = vpop.eup %3682 }
 0x982   :  { %v1622_v17 = vadd.f32 1.0, %v3683_v40  ;;  %v3685_v34 = vpop.eup %3684 }
 0x983   :  { %3688 = vrcp.f32 %v1621_v6  ;;  %v3687_v60 = vpop.eup %3686 }
 0x984   :  { %3690 = vrcp.f32 %v1622_v17  ;;  %v1623_v19 = vadd.f32 1.0, %v3687_v60 }
 0x986   :  { %3692 = vrcp.f32 %v1623_v19 }
 0x98d   :  { %v3689_v41 = vpop.eup %3688 }
 0x98e   :  { %v1632_v55 = vmul.f32 %v3689_v41, %v3685_v34  ;;  %v3691_v43 = vpop.eup %3690 }
 0x98f   :  { %v1631_v46 = vmul.f32 %v3691_v43, %v5144_v56  ;;  %v7176_v56 = vld [vmem:[#allocation25_spill] sm:$0xff] }
 0x990   :  { %v3693_v45 = vpop.eup %3692 }
 0x991   :  { %v5574_v57 = vadd.f32 %v1632_v55, %v1631_v46 }
 0x993   :  { %3694 = vtanh.f32 %v5574_v57 }
 0x99d   :  { %v3695_v44 = vpop.eup %3694 }
 0x99e   :  { %v1635_v37 = vmul.f32 %v3695_v44, %v3693_v45 }
 0x9a0   :  { %v5577_v47 = vpack.c.bf16 %v1635_v37, %v1635_v37 }
 0x9a2   :  { %1670 = vmatmul.mubr.bf16.vlgmr.msra.gmra.mrb[24].mxu0 %v5577_v47  ;;  %1711 = vmatmul.mubr.bf16.vlgmr.msra.gmra.mrb[24].mxu1 %v5577_v47 }
 0x9a3   :  { %1843 = vmatprep.mubr.bf16.mxu1 %v5577_v47  ;;  %3303 = vmatpush3.bf16.msra.mxu0 %v4932_v2  ;;  %v5604_v2 = vld [vmem:[#allocation10 + $0x28] sm:$0xff]  }
 0x9a4   :  { %3304 = vmatprep.subr.bf16.mxu0 %v6996_v3  ;;  %3318 = vmatprep.mubr.msk.bf16.mxu0 %vm4374_vm2, %v6996_v3 }
 0x9a5   :  { %1812 = vmatpush1.bf16.msra.mxu1 %v5156_v7  ;;  %v7177_v7 = vld [vmem:[#allocation26_spill] sm:$0xff] }
 0x9a6   :  { %1813 = vmatprep.subr.bf16.mxu1 %v5159_v0  ;;  %v7178_v0 = vld [vmem:[#allocation27_spill] sm:$0xff] }
 0x9a7   :  { %3305 = vmatpush3.bf16.msra.mxu0 %v4936_v4  ;;  %v5614_v4 = vld [vmem:[#allocation10 + $0x38] sm:$0xff]  }
 0x9a8   :  { %3306 = vmatprep.subr.bf16.mxu0 %v6996_v3 }
 0x9a9   :  { %1814 = vmatpush1.bf16.msra.mxu1 %v5164_v53  ;;  %v7179_v53 = vld [vmem:[#allocation29_spill] sm:$0xff] }
 0x9aa   :  { %1815 = vmatprep.subr.bf16.mxu1 %v5167_v16  ;;  %v7180_v16 = vld [vmem:[#allocation31_spill] sm:$0xff] }
 0x9ab   :  { %3307 = vmatpush3.bf16.msra.mxu0 %v4940_v5  ;;  %v7172_v5 = vld [vmem:[#allocation20_spill] sm:$0xff] }
 0x9ac   :  { %3308 = vmatprep.subr.bf16.mxu0 %v6996_v3 }
 0x9ad   :  { %1816 = vmatpush1.bf16.msra.mxu1 %v5172_v54  ;;  %v7181_v54 = vld [vmem:[#allocation28_spill] sm:$0xff] }
 0x9ae   :  { %1817 = vmatprep.subr.bf16.mxu1 %v5175_v58  ;;  %v7182_v58 = vld [vmem:[#allocation33_spill] sm:$0xff] }
 0x9af   :  { %3309 = vmatpush3.bf16.msra.mxu0 %v4944_v8  ;;  %v7173_v8 = vld [vmem:[#allocation21_spill] sm:$0xff] }
 0x9b0   :  { %3310 = vmatprep.subr.bf16.mxu0 %v6996_v3 }
 0x9b1   :  { %1818 = vmatpush1.bf16.msra.mxu1 %v5180_v15  ;;  %v7183_v15 = vld [vmem:[#allocation30_spill] sm:$0xff] }
 0x9b2   :  { %1819 = vmatprep.subr.bf16.mxu1 %v5183_v49  ;;  %v7184_v49 = vld [vmem:[#allocation35_spill] sm:$0xff] }
 0x9b3   :  { %3311 = vmatpush3.bf16.msra.mxu0 %v4948_v9  ;;  %v7174_v9 = vld [vmem:[#allocation23_spill] sm:$0xff] }
 0x9b4   :  { %3312 = vmatprep.subr.bf16.mxu0 %v6996_v3 }
 0x9b5   :  { %1820 = vmatpush1.bf16.msra.mxu1 %v5188_v23  ;;  %v7185_v23 = vld [vmem:[#allocation32_spill] sm:$0xff] }
 0x9b6   :  { %1821 = vmatprep.subr.bf16.mxu1 %v5191_v24  ;;  %v7186_v24 = vld [vmem:[#allocation37_spill] sm:$0xff] }
 0x9b7   :  { %3313 = vmatpush3.bf16.msra.mxu0 %v5604_v2 }
 0x9b8   :  { %3314 = vmatprep.subr.bf16.mxu0 %v6996_v3 }
 0x9b9   :  { %1822 = vmatpush1.bf16.msra.mxu1 %v5196_v27  ;;  %v7187_v27 = vld [vmem:[#allocation34_spill] sm:$0xff] }
 0x9ba   :  { %1823 = vmatprep.subr.bf16.mxu1 %v5199_v28 }
 0x9bb   :  { %3315 = vmatpush3.bf16.msra.mxu0 %v4957_v13  ;;  %v7175_v13 = vld [vmem:[#allocation24_spill] sm:$0xff] }
 0x9bc   :  { %3316 = vmatprep.subr.bf16.mxu0 %v6996_v3 }
 0x9bd   :  { %1824 = vmatpush1.bf16.msra.mxu1 %v5204_v52 }
 0x9be   :  { %1825 = vmatprep.subr.bf16.mxu1 %v5207_v32 }
 0x9bf   :  { %3317 = vmatpush3.bf16.msra.mxu0 %v5614_v4 }
 0x9c0   :  { %1852 = vmatprep.subr.bf16.mxu0 %v5211_v12 }
 0x9c1   :  { %1826 = vmatpush1.bf16.msra.mxu1 %v5214_v35 }
 0x9c2   :  { %1827 = vmatprep.subr.bf16.mxu1 %v5217_v36 }
 0x9c5   :  { %1828 = vmatpush1.bf16.msra.mxu1 %v7172_v5 }
 0x9c6   :  { %1829 = vmatprep.subr.bf16.mxu1 %v7173_v8 }
 0x9c9   :  { %1830 = vmatpush1.bf16.msra.mxu1 %v7174_v9 }
 0x9ca   :  { %1831 = vmatprep.subr.bf16.mxu1 %v7175_v13 }
 0x9cd   :  { %1832 = vmatpush1.bf16.msra.mxu1 %v7176_v56 }
 0x9ce   :  { %1833 = vmatprep.subr.bf16.mxu1 %v7177_v7 }
 0x9d1   :  { %1834 = vmatpush1.bf16.msra.mxu1 %v7178_v0 }
 0x9d2   :  { %1835 = vmatprep.subr.bf16.mxu1 %v7179_v53 }
 0x9d5   :  { %1836 = vmatpush1.bf16.msra.mxu1 %v7180_v16 }
 0x9d6   :  { %1837 = vmatprep.subr.bf16.mxu1 %v7181_v54 }
 0x9d9   :  { %1838 = vmatpush1.bf16.msra.mxu1 %v7182_v58  ;;  %v5648_v58 = vld [vmem:[#allocation5 + $0x8] ss:$16 sps:$4 sm:$0xff]  }
 0x9da   :  { %1839 = vmatprep.subr.bf16.mxu1 %v7183_v15  ;;  %v5651_v15 = vld [vmem:[#allocation5 + $0x2c] ss:$16 sps:$4 sm:$0xff]  }
 0x9dd   :  { %1840 = vmatpush1.bf16.msra.mxu1 %v7184_v49  ;;  %v5657_v49 = vld [vmem:[#allocation5 + $0x4c] ss:$16 sps:$4 sm:$0xff]  }
 0x9de   :  { %1841 = vmatprep.subr.bf16.mxu1 %v7185_v23  ;;  %v5660_v23 = vld [vmem:[#allocation5 + $0x48] ss:$16 sps:$4 sm:$0xff]  }
 0x9e1   :  { %1842 = vmatpush1.bf16.msra.mxu1 %v7186_v24  ;;  %v5666_v24 = vld [vmem:[#allocation5 + $0x68] ss:$16 sps:$4 sm:$0xff]  }
 0x9e2   :  { %1918 = vmatprep.subr.bf16.mxu1 %v7187_v27  ;;  %v5669_v27 = vld [vmem:[#allocation5 + $0x8c] ss:$16 sps:$4 sm:$0xff]  }
 0xa75   :  { %v1671_v28 = vpop.f32.mrb[24].mxu0  ;;  %v1712_v52 = vpop.f32.mrb[24].mxu1 }
 0xa76   :  { %v1672_v32 = vadd.f32 %v1671_v28, %v4971_v22  ;;  %v1673_v12 = vpop.f32.mrb[25].mxu0  ;;  %v1714_v35 = vpop.f32.mrb[25].mxu1  ;;  %v1713_v60 = vadd.f32 %v1712_v52, %v4981_v50 }
 0xa77   :  { %v1674_v36 = vadd.f32 %v1673_v12, %v4975_v26  ;;  %v1675_v6 = vpop.f32.mrb[26].mxu0  ;;  %v1716_v38 = vpop.f32.mrb[26].mxu1  ;;  %v1715_v41 = vadd.f32 %v1714_v35, %v4985_v51 }
 0xa78   :  { %v3153_v10 = vmul.f32 -1.442695, %v1672_v32  ;;  %v1676_v40 = vpop.f32.mrb[27].mxu0  ;;  %v1717_v17 = vpop.f32.mrb[27].mxu1  ;;  %v3155_v55 = vmul.f32 -1.442695, %v1713_v60  ;;  %v1802_v60 = vstv %s1801_s25 }
 0xa79   :  { %v3154_v34 = vmul.f32 -1.442695, %v1674_v36  ;;  %v7200_v6 = vld [vmem:[#allocation17_spill] sm:$0xff]  ;;  %v1796_v40 = vstv %s3157_s23  ;;  %v7201_v17 = vld [vmem:[#allocation19_spill] sm:$0xff] }
 0xa7a   :  { %3696 = vpow2.f32 %v3153_v10  ;;  %vm1797_vm11 = vcmp.eq.s32.totalorder %v7201_v17, %v1796_v40  ;;  %v7232_v40 = vld [vmem:[#allocation79_spill] sm:$0xff] }
 0xa7b   :  { %3698 = vpow2.f32 %v3154_v34  ;;  %v3158_v34 = vsel %vm1797_vm11, 1.0, %v6996_v3  ;;  %vm2947_vm11 = vcmask 1043456  }
 0xa7c   :  { %3700 = vtanh.f32 %v1715_v41 }
 0xa7d   :  { %3702 = vpow2.f32 %v3155_v55  ;;  %v6816_v55 = vstv %s5710_s26 }
 0xa84   :  { %v3697_v43 = vpop.eup %3696 }
 0xa85   :  { %v1728_v19 = vadd.f32 1.0, %v3697_v43  ;;  %v3699_v46 = vpop.eup %3698 }
 0xa86   :  { %v1729_v45 = vadd.f32 1.0, %v3699_v46  ;;  %v3701_v44 = vpop.eup %3700 }
 0xa87   :  { %3704 = vrcp.f32 %v1728_v19  ;;  %v3703_v37 = vpop.eup %3702  ;;  %v5715_v19 = vmul.f32 %v3158_v34, %v1802_v60  ;;  %v7233_v34 = vld [vmem:[#allocation80_spill] sm:$0xff]  ;;  %v7234_v60 = vld [vmem:[#allocation81_spill] sm:$0xff] }
 0xa88   :  { %3706 = vrcp.f32 %v1729_v45  ;;  %v1730_v13 = vadd.f32 1.0, %v3703_v37  ;;  %v7203_v37 = vld [vmem:[#allocation50_spill] sm:$0xff] }
 0xa89   :  { %7202 = vst [vmem:[#allocation21_spill] sm:$0xff] %v5715_v19 }
 0xa8a   :  { %3708 = vrcp.f32 %v1730_v13  ;;  %v7207_v13 = vld [vmem:[#allocation54_spill] sm:$0xff] }
 0xa91   :  { %v3705_v5 = vpop.eup %3704 }
 0xa92   :  { %v1739_v8 = vmul.f32 %v3705_v5, %v3701_v44  ;;  %v3707_v9 = vpop.eup %3706  ;;  %v7204_v5 = vld [vmem:[#allocation51_spill] sm:$0xff] }
 0xa93   :  { %v1738_v56 = vmul.f32 %v3707_v9, %v5273_v48  ;;  %v5654_v48 = vld [vmem:[#allocation5 + $0x28] ss:$16 sps:$4 sm:$0xff]   ;;  %v7206_v9 = vld [vmem:[#allocation53_spill] sm:$0xff] }
 0xa94   :  { %v3709_v0 = vpop.eup %3708 }
 0xa95   :  { %v5641_v7 = vadd.f32 %v1739_v8, %v1738_v56  ;;  %v7205_v8 = vld [vmem:[#allocation52_spill] sm:$0xff]  ;;  %v7208_v56 = vld [vmem:[#allocation55_spill] sm:$0xff] }
 0xa97   :  { %3710 = vtanh.f32 %v5641_v7 }
 0xaa1   :  { %v3711_v53 = vpop.eup %3710 }
 0xaa2   :  { %v1742_v16 = vmul.f32 %v3711_v53, %v3709_v0  ;;  %v7209_v0 = vld [vmem:[#allocation56_spill] sm:$0xff]  ;;  %v7210_v53 = vld [vmem:[#allocation57_spill] sm:$0xff] }
 0xaa4   :  { %v5644_v54 = vpack.c.bf16 %v1742_v16, %v1742_v16  ;;  %v7211_v16 = vld [vmem:[#allocation58_spill] sm:$0xff] }
 0xaa6   :  { %3319 = vmatmul.mubr.bf16.vlgmr.msra.gmra.mrb[28].mxu0 %v5644_v54 }
 0xaa7   :  { %1884 = vmatprep.mubr.bf16.mxu0 %v5577_v47  ;;  %1853 = vmatpush1.bf16.msra.mxu0 %v5648_v58  ;;  %v5663_v47 = vld [vmem:[#allocation5 + $0x6c] ss:$16 sps:$4 sm:$0xff]  }
 0xaa8   :  { %1854 = vmatprep.subr.bf16.mxu0 %v5651_v15 }
 0xaab   :  { %1855 = vmatpush1.bf16.msra.mxu0 %v5654_v48 }
 0xaac   :  { %1856 = vmatprep.subr.bf16.mxu0 %v5657_v49 }
 0xaaf   :  { %1857 = vmatpush1.bf16.msra.mxu0 %v5660_v23 }
 0xab0   :  { %1858 = vmatprep.subr.bf16.mxu0 %v5663_v47 }
 0xab3   :  { %1859 = vmatpush1.bf16.msra.mxu0 %v5666_v24 }
 0xab4   :  { %1860 = vmatprep.subr.bf16.mxu0 %v5669_v27 }
 0xab7   :  { %1861 = vmatpush1.bf16.msra.mxu0 %v5288_v63  ;;  %v7188_v63 = vld [vmem:[#allocation39_spill] sm:$0xff] }
 0xab8   :  { %1862 = vmatprep.subr.bf16.mxu0 %v5291_v14  ;;  %v7189_v14 = vld [vmem:[#allocation36_spill] sm:$0xff] }
 0xabb   :  { %1863 = vmatpush1.bf16.msra.mxu0 %v5294_v11  ;;  %v7190_v11 = vld [vmem:[#allocation41_spill] sm:$0xff] }
 0xabc   :  { %1864 = vmatprep.subr.bf16.mxu0 %v5297_v18  ;;  %v7191_v18 = vld [vmem:[#allocation38_spill] sm:$0xff] }
 0xabf   :  { %1865 = vmatpush1.bf16.msra.mxu0 %v5300_v21  ;;  %v7192_v21 = vld [vmem:[#allocation42_spill] sm:$0xff] }
 0xac0   :  { %1866 = vmatprep.subr.bf16.mxu0 %v5303_v25  ;;  %v7193_v25 = vld [vmem:[#allocation40_spill] sm:$0xff] }
 0xac3   :  { %1867 = vmatpush1.bf16.msra.mxu0 %v5306_v29  ;;  %v7194_v29 = vld [vmem:[#allocation43_spill] sm:$0xff] }
 0xac4   :  { %1868 = vmatprep.subr.bf16.mxu0 %v5309_v1  ;;  %v7195_v1 = vld [vmem:[#allocation44_spill] sm:$0xff] }
 0xac7   :  { %1869 = vmatpush1.bf16.msra.mxu0 %v5312_v30  ;;  %v7196_v30 = vld [vmem:[#allocation45_spill] sm:$0xff] }
 0xac8   :  { %1870 = vmatprep.subr.bf16.mxu0 %v5315_v33  ;;  %v7197_v33 = vld [vmem:[#allocation46_spill] sm:$0xff] }
 0xacb   :  { %1871 = vmatpush1.bf16.msra.mxu0 %v5318_v39  ;;  %v7198_v39 = vld [vmem:[#allocation47_spill] sm:$0xff] }
 0xacc   :  { %1872 = vmatprep.subr.bf16.mxu0 %v5321_v42 }
 0xacf   :  { %1873 = vmatpush1.bf16.msra.mxu0 %v5324_v62  ;;  %v5699_v62 = vld [vmem:[%s6623_s7] sm:$0x1] }
 0xad0   :  { %1874 = vmatprep.subr.bf16.mxu0 %v7188_v63  ;;  %v7212_v63 = vld [vmem:[#allocation59_spill] sm:$0xff] }
 0xad3   :  { %1875 = vmatpush1.bf16.msra.mxu0 %v7189_v14  ;;  %v7214_v14 = vld [vmem:[#allocation61_spill] sm:$0xff] }
 0xad4   :  { %1876 = vmatprep.subr.bf16.mxu0 %v7190_v11  ;;  %v7215_v11 = vld [vmem:[#allocation62_spill] sm:$0xff] }
 0xad7   :  { %1877 = vmatpush1.bf16.msra.mxu0 %v7191_v18  ;;  %v7216_v18 = vld [vmem:[#allocation63_spill] sm:$0xff] }
 0xad8   :  { %1878 = vmatprep.subr.bf16.mxu0 %v7192_v21  ;;  %v7217_v21 = vld [vmem:[#allocation64_spill] sm:$0xff] }
 0xadb   :  { %1879 = vmatpush1.bf16.msra.mxu0 %v7193_v25  ;;  %v7218_v25 = vld [vmem:[#allocation65_spill] sm:$0xff] }
 0xadc   :  { %1880 = vmatprep.subr.bf16.mxu0 %v7194_v29  ;;  %v7219_v29 = vld [vmem:[#allocation66_spill] sm:$0xff] }
 0xadf   :  { %1881 = vmatpush1.bf16.msra.mxu0 %v7195_v1  ;;  %v7220_v1 = vld [vmem:[#allocation67_spill] sm:$0xff] }
 0xae0   :  { %1882 = vmatprep.subr.bf16.mxu0 %v7196_v30  ;;  %v7221_v30 = vld [vmem:[#allocation68_spill] sm:$0xff] }
 0xae3   :  { %1883 = vmatpush1.bf16.msra.mxu0 %v7197_v33  ;;  %v7222_v33 = vld [vmem:[#allocation69_spill] sm:$0xff] }
 0xae4   :  { %1959 = vmatprep.subr.bf16.mxu0 %v7198_v39  ;;  %v7223_v39 = vld [vmem:[#allocation70_spill] sm:$0xff] }
 0xb79   :  { %v1778_v42 = vpop.f32.mrb[28].mxu0 }
 0xb7a   :  { %v5702_v28 = vadd.f32 %v5699_v62, %v1778_v42  ;;  %v3320_v52 = vpop.f32.mrb[29].mxu0  ;;  %v7224_v42 = vld [vmem:[#allocation71_spill] sm:$0xff] }
 0xb7b   :  { %v1781_v32 = vpop.f32.mrb[30].mxu0  ;;  %v7225_v52 = vld [vmem:[#allocation72_spill] sm:$0xff] }
 0xb7c   :  { %7199 = vst [vmem:[#allocation20_spill] sm:$0xff] %v5702_v28  ;;  %v3321_v12 = vpop.f32.mrb[31].mxu0  ;;  %v1784_v35 = vsel %vm1221_vm3, %v5702_v28, -inf  ;;  %v7226_v32 = vld [vmem:[#allocation73_spill] sm:$0xff] }
 0xb7d   :  { %1785 = vmax.xlane.f32.xlu0 %v1784_v35  ;;  %v7227_v12 = vld [vmem:[#allocation74_spill] sm:$0xff]  ;;  %v7228_v35 = vld [vmem:[#allocation75_spill] sm:$0xff] }
 0xc0a   :  { %v1786_v36 = vpop.xlane.xlu0 %1785 }
 0xc0b   :  { %vm1787_vm10 = vcmp.eq.f32.partialorder %v5702_v28, %v1786_v36  ;;  %v7229_v36 = vld [vmem:[#allocation76_spill] sm:$0xff] }
 0xc0c   :  { %v1788_v38 = vsel %vm1787_vm10, %v7200_v6, 128.0 }
 0xc0d   :  { %v1789_v10 = vsel %vm1221_vm3, %v1788_v38, inf }
 0xc0e   :  { %1790 = vmin.xlane.f32.xlu1 %v1789_v10  ;;  %v7231_v10 = vld [vmem:[#allocation78_spill] sm:$0xff] }
 0xc9b   :  { %v1791_v41 = vpop.xlane.xlu1 %1790 }
 0xc9c   :  { %vm1792_vm12 = vcmp.eq.f32.partialorder %v1788_v38, %v1791_v41  ;;  %v7230_v38 = vld [vmem:[#allocation77_spill] sm:$0xff]  ;;  %v7235_v41 = vld [vmem:[#allocation82_spill] sm:$0xff] }
 0xc9d   :  { %v3156_v43 = vsel %vm1792_vm12, 1.0, %v6996_v3  ;;  %vm2951_vm12 = vcmask 1045504  }
 0xc9e   :  { %v1808_v46 = vmul.f32 %v3156_v43, %v6816_v55  ;;  %v7236_v43 = vld [vmem:[#allocation83_spill] sm:$0xff] }
 0xc9f   :  { %v5923_v55 = vld [vmem:[#allocation5 + $0x1e0] ss:$16 sps:$4 sm:$0xff]  }
 0xca0   :  { %v1809_v45 = vadd.f32 %v1808_v46, %v5715_v19  ;;  %v7237_v46 = vld [vmem:[#allocation84_spill] sm:$0xff]  ;;  %7279 = vst [vmem:[#allocation39_spill] sm:$0xff] %v5923_v55  ;;  %v5926_v19 = vld [vmem:[#allocation8 + $0x4] ss:$16 sps:$4 sm:$0xff]  }
 0xca1   :  { %7280 = vst [vmem:[#allocation36_spill] sm:$0xff] %v5926_v19 }
 0xca2   :  { %v1810_v44 = vpack.c.bf16 %v1809_v45, %v1809_v45  ;;  %v7238_v45 = vld [vmem:[#allocation85_spill] sm:$0xff] }
 0xca4   :  { %1844 = vmatmul.mubr.bf16.vlgmr.msra.gmra.mrb[28].mxu1 %v1810_v44  ;;  %1885 = vmatmul.mubr.bf16.vlgmr.msra.gmra.mrb[32].mxu0 %v1810_v44  ;;  %v7239_v44 = vld [vmem:[#allocation86_spill] sm:$0xff] }
 0xca5   :  { %1950 = vmatprep.mubr.bf16.mxu1 %v5644_v54  ;;  %1991 = vmatprep.mubr.bf16.mxu0 %v5644_v54  ;;  %v7213_v54 = vld [vmem:[#allocation60_spill] sm:$0xff] }
 0xca6   :  { %1919 = vmatpush1.bf16.msra.mxu1 %v7203_v37  ;;  %1960 = vmatpush1.bf16.msra.mxu0 %v7204_v5  ;;  %v7240_v37 = vld [vmem:[#allocation87_spill] sm:$0xff]  ;;  %v7241_v5 = vld [vmem:[#allocation88_spill] sm:$0xff] }
 0xca7   :  { %1920 = vmatprep.subr.bf16.mxu1 %v7205_v8  ;;  %1961 = vmatprep.subr.bf16.mxu0 %v7206_v9  ;;  %v7242_v8 = vld [vmem:[#allocation89_spill] sm:$0xff]  ;;  %v7243_v9 = vld [vmem:[#allocation90_spill] sm:$0xff] }
 0xcaa   :  { %1921 = vmatpush1.bf16.msra.mxu1 %v7207_v13  ;;  %1962 = vmatpush1.bf16.msra.mxu0 %v7208_v56  ;;  %v7244_v13 = vld [vmem:[#allocation91_spill] sm:$0xff]  ;;  %v7245_v56 = vld [vmem:[#allocation92_spill] sm:$0xff] }
 0xcab   :  { %1922 = vmatprep.subr.bf16.mxu1 %v7209_v0  ;;  %1963 = vmatprep.subr.bf16.mxu0 %v7210_v53  ;;  %v7246_v0 = vld [vmem:[#allocation93_spill] sm:$0xff]  ;;  %v7247_v53 = vld [vmem:[#allocation94_spill] sm:$0xff] }
 0xcae   :  { %1923 = vmatpush1.bf16.msra.mxu1 %v7211_v16  ;;  %1964 = vmatpush1.bf16.msra.mxu0 %v7212_v63  ;;  %v7248_v16 = vld [vmem:[#allocation95_spill] sm:$0xff]  ;;  %v7249_v63 = vld [vmem:[#allocation96_spill] sm:$0xff] }
 0xcaf   :  { %1924 = vmatprep.subr.bf16.mxu1 %v7213_v54  ;;  %1965 = vmatprep.subr.bf16.mxu0 %v7214_v14  ;;  %v7250_v54 = vld [vmem:[#allocation97_spill] sm:$0xff]  ;;  %v7251_v14 = vld [vmem:[#allocation98_spill] sm:$0xff] }
 0xcb2   :  { %1925 = vmatpush1.bf16.msra.mxu1 %v7215_v11  ;;  %1966 = vmatpush1.bf16.msra.mxu0 %v7216_v18  ;;  %v7252_v11 = vld [vmem:[#allocation99_spill] sm:$0xff]  ;;  %v7253_v18 = vld [vmem:[#allocation100_spill] sm:$0xff] }
 0xcb3   :  { %1926 = vmatprep.subr.bf16.mxu1 %v7217_v21  ;;  %1967 = vmatprep.subr.bf16.mxu0 %v7218_v25  ;;  %v7254_v21 = vld [vmem:[#allocation101_spill] sm:$0xff]  ;;  %v7255_v25 = vld [vmem:[#allocation102_spill] sm:$0xff] }
 0xcb6   :  { %1927 = vmatpush1.bf16.msra.mxu1 %v7219_v29  ;;  %1968 = vmatpush1.bf16.msra.mxu0 %v7220_v1  ;;  %v7256_v29 = vld [vmem:[#allocation103_spill] sm:$0xff]  ;;  %v7257_v1 = vld [vmem:[#allocation104_spill] sm:$0xff] }
 0xcb7   :  { %1928 = vmatprep.subr.bf16.mxu1 %v7221_v30  ;;  %1969 = vmatprep.subr.bf16.mxu0 %v7222_v33  ;;  %v7258_v30 = vld [vmem:[#allocation105_spill] sm:$0xff]  ;;  %v7259_v33 = vld [vmem:[#allocation106_spill] sm:$0xff] }
 0xcba   :  { %1929 = vmatpush1.bf16.msra.mxu1 %v7223_v39  ;;  %1970 = vmatpush1.bf16.msra.mxu0 %v7224_v42  ;;  %v7260_v39 = vld [vmem:[#allocation107_spill] sm:$0xff]  ;;  %v7261_v42 = vld [vmem:[#allocation108_spill] sm:$0xff] }
 0xcbb   :  { %1930 = vmatprep.subr.bf16.mxu1 %v7225_v52  ;;  %1971 = vmatprep.subr.bf16.mxu0 %v7226_v32  ;;  %v7262_v52 = vld [vmem:[#allocation109_spill] sm:$0xff]  ;;  %v7263_v32 = vld [vmem:[#allocation110_spill] sm:$0xff] }
 0xcbe   :  { %1931 = vmatpush1.bf16.msra.mxu1 %v7227_v12  ;;  %1972 = vmatpush1.bf16.msra.mxu0 %v7228_v35  ;;  %v7264_v12 = vld [vmem:[#allocation111_spill] sm:$0xff] }
 0xcbf   :  { %1932 = vmatprep.subr.bf16.mxu1 %v7229_v36  ;;  %1973 = vmatprep.subr.bf16.mxu0 %v7230_v38  ;;  %v5785_v35 = vld [vmem:[#allocation5 + $0x4] ss:$16 sps:$4 sm:$0xff]  }
 0xcc2   :  { %1933 = vmatpush1.bf16.msra.mxu1 %v7231_v10  ;;  %1974 = vmatpush1.bf16.msra.mxu0 %v7232_v40 }
 0xcc3   :  { %1934 = vmatprep.subr.bf16.mxu1 %v7233_v34  ;;  %1975 = vmatprep.subr.bf16.mxu0 %v7234_v60 }
 0xcc6   :  { %1935 = vmatpush1.bf16.msra.mxu1 %v7235_v41  ;;  %1976 = vmatpush1.bf16.msra.mxu0 %v7236_v43 }
 0xcc7   :  { %1936 = vmatprep.subr.bf16.mxu1 %v7237_v46  ;;  %1977 = vmatprep.subr.bf16.mxu0 %v7238_v45 }
 0xcca   :  { %1937 = vmatpush1.bf16.msra.mxu1 %v7239_v44  ;;  %1978 = vmatpush1.bf16.msra.mxu0 %v7240_v37 }
 0xccb   :  { %1938 = vmatprep.subr.bf16.mxu1 %v7241_v5  ;;  %1979 = vmatprep.subr.bf16.mxu0 %v7242_v8 }
 0xcce   :  { %1939 = vmatpush1.bf16.msra.mxu1 %v7243_v9  ;;  %1980 = vmatpush1.bf16.msra.mxu0 %v7244_v13 }
 0xccf   :  { %1940 = vmatprep.subr.bf16.mxu1 %v7245_v56  ;;  %1981 = vmatprep.subr.bf16.mxu0 %v7246_v0 }
 0xcd2   :  { %1941 = vmatpush1.bf16.msra.mxu1 %v7247_v53  ;;  %1982 = vmatpush1.bf16.msra.mxu0 %v7248_v16 }
 0xcd3   :  { %1942 = vmatprep.subr.bf16.mxu1 %v7249_v63  ;;  %1983 = vmatprep.subr.bf16.mxu0 %v7250_v54 }
 0xcd6   :  { %1943 = vmatpush1.bf16.msra.mxu1 %v7251_v14  ;;  %1984 = vmatpush1.bf16.msra.mxu0 %v7252_v11 }
 0xcd7   :  { %1944 = vmatprep.subr.bf16.mxu1 %v7253_v18  ;;  %1985 = vmatprep.subr.bf16.mxu0 %v7254_v21 }
 0xcda   :  { %1945 = vmatpush1.bf16.msra.mxu1 %v7255_v25  ;;  %1986 = vmatpush1.bf16.msra.mxu0 %v7256_v29 }
 0xcdb   :  { %1946 = vmatprep.subr.bf16.mxu1 %v7257_v1  ;;  %1987 = vmatprep.subr.bf16.mxu0 %v7258_v30 }
 0xcde   :  { %1947 = vmatpush1.bf16.msra.mxu1 %v7259_v33  ;;  %1988 = vmatpush1.bf16.msra.mxu0 %v7260_v39  ;;  %v5801_v39 = vld [vmem:[#allocation10] sm:$0xff]  }
 0xcdf   :  { %1948 = vmatprep.subr.bf16.mxu1 %v7261_v42  ;;  %1989 = vmatprep.subr.bf16.mxu0 %v7262_v52  ;;  %v5810_v42 = vld [vmem:[#allocation5 + $0x24] ss:$16 sps:$4 sm:$0xff]   ;;  %v5813_v52 = vld [vmem:[#allocation10 + $0x8] sm:$0xff]  }
 0xce2   :  { %1949 = vmatpush1.bf16.msra.mxu1 %v7263_v32  ;;  %1990 = vmatpush1.bf16.msra.mxu0 %v7264_v12  ;;  %v5817_v32 = vld [vmem:[#allocation5 + $0x20] ss:$16 sps:$4 sm:$0xff]   ;;  %v5820_v12 = vld [vmem:[#allocation5 + $0x44] ss:$16 sps:$4 sm:$0xff]  }
 0xce3   :  { %3322 = vmatprep.subr.bf16.mxu1 %v6996_v3  ;;  %2092 = vmatprep.subr.bf16.mxu0 %v5785_v35 }
 0xd77   :  { %v1845_v36 = vpop.f32.mrb[28].mxu1  ;;  %v1886_v38 = vpop.f32.mrb[32].mxu0 }
 0xd78   :  { %v1846_v10 = vadd.f32 %v1845_v36, %v7078_v20  ;;  %v1847_v40 = vpop.f32.mrb[29].mxu1  ;;  %v1888_v34 = vpop.f32.mrb[33].mxu0  ;;  %v1887_v5 = vadd.f32 %v1886_v38, %v7080_v31  ;;  %v5823_v36 = vld [vmem:[#allocation10 + $0x10] sm:$0xff]  }
 0xd79   :  { %v1848_v60 = vadd.f32 %v1847_v40, %v7079_v61  ;;  %v1849_v41 = vpop.f32.mrb[30].mxu1  ;;  %v1890_v43 = vpop.f32.mrb[34].mxu0  ;;  %v1889_v8 = vadd.f32 %v1888_v34, %v4889_v59  ;;  %v5827_v38 = vld [vmem:[#allocation5 + $0x40] ss:$16 sps:$4 sm:$0xff]   ;;  %v5833_v40 = vld [vmem:[#allocation10 + $0x18] sm:$0xff]  }
 0xd7a   :  { %v3160_v46 = vmul.f32 -1.442695, %v1846_v10  ;;  %v1850_v45 = vpop.f32.mrb[31].mxu1  ;;  %v1891_v44 = vpop.f32.mrb[35].mxu0  ;;  %v3162_v9 = vmul.f32 -1.442695, %v1887_v5 }
 0xd7b   :  { %v3161_v37 = vmul.f32 -1.442695, %v1848_v60  ;;  %v5830_v10 = vld [vmem:[#allocation5 + $0x64] ss:$16 sps:$4 sm:$0xff]   ;;  %v5837_v34 = vld [vmem:[#allocation5 + $0x60] ss:$16 sps:$4 sm:$0xff]  }
 0xd7c   :  { %3712 = vpow2.f32 %v3160_v46  ;;  %v5840_v60 = vld [vmem:[#allocation5 + $0x84] ss:$16 sps:$4 sm:$0xff]   ;;  %v5847_v43 = vld [vmem:[#allocation5 + $0x80] ss:$16 sps:$4 sm:$0xff]  }
 0xd7d   :  { %3714 = vpow2.f32 %v3161_v37  ;;  %v5843_v41 = vld [vmem:[#allocation10 + $0x20] sm:$0xff]   ;;  %v5861_v37 = vld [vmem:[#allocation10 + $0x30] sm:$0xff]  }
 0xd7e   :  { %3716 = vtanh.f32 %v1889_v8  ;;  %v5850_v46 = vld [vmem:[#allocation5 + $0xa4] ss:$16 sps:$4 sm:$0xff]   ;;  %v5855_v45 = vld [vmem:[#allocation5 + $0xa0] ss:$16 sps:$4 sm:$0xff]   ;;  %v5872_v8 = vld [vmem:[#allocation5 + $0xc] ss:$16 sps:$4 sm:$0xff]  }
 0xd7f   :  { %3718 = vpow2.f32 %v3162_v9  ;;  %v5858_v44 = vld [vmem:[#allocation5 + $0xc4] ss:$16 sps:$4 sm:$0xff]   ;;  %v5865_v5 = vld [vmem:[#allocation5 + $0xc0] ss:$16 sps:$4 sm:$0xff]  }
 0xd80   :  { %v5875_v9 = vld [vmem:[#allocation5 + $0xe0] ss:$16 sps:$4 sm:$0xff]  }
 0xd86   :  { %v3713_v13 = vpop.eup %3712 }
 0xd87   :  { %v1902_v56 = vadd.f32 1.0, %v3713_v13  ;;  %v3715_v0 = vpop.eup %3714  ;;  %v5878_v13 = vld [vmem:[#allocation5 + $0x104] ss:$16 sps:$4 sm:$0xff]  }
 0xd88   :  { %v1903_v53 = vadd.f32 1.0, %v3715_v0  ;;  %v3717_v16 = vpop.eup %3716  ;;  %v5884_v0 = vld [vmem:[#allocation5 + $0x124] ss:$16 sps:$4 sm:$0xff]  }
 0xd89   :  { %3720 = vrcp.f32 %v1902_v56  ;;  %v3719_v63 = vpop.eup %3718  ;;  %v5881_v56 = vld [vmem:[#allocation5 + $0x100] ss:$16 sps:$4 sm:$0xff]   ;;  %7266 = vst [vmem:[#allocation24_spill] sm:$0xff] %v5884_v0 }
 0xd8a   :  { %3722 = vrcp.f32 %v1903_v53  ;;  %v1904_v18 = vadd.f32 1.0, %v3719_v63  ;;  %7265 = vst [vmem:[#allocation23_spill] sm:$0xff] %v5881_v56  ;;  %v5890_v53 = vld [vmem:[#allocation5 + $0x144] ss:$16 sps:$4 sm:$0xff]  }
 0xd8b   :  { %7268 = vst [vmem:[#allocation26_spill] sm:$0xff] %v5890_v53  ;;  %v5896_v63 = vld [vmem:[#allocation5 + $0x164] ss:$16 sps:$4 sm:$0xff]  }
 0xd8c   :  { %3724 = vrcp.f32 %v1904_v18  ;;  %7270 = vst [vmem:[#allocation29_spill] sm:$0xff] %v5896_v63  ;;  %v5908_v18 = vld [vmem:[#allocation5 + $0x1a4] ss:$16 sps:$4 sm:$0xff]  }
 0xd8d   :  { %7274 = vst [vmem:[#allocation30_spill] sm:$0xff] %v5908_v18 }
 0xd93   :  { %v3721_v54 = vpop.eup %3720 }
 0xd94   :  { %v1913_v14 = vmul.f32 %v3721_v54, %v3717_v16  ;;  %v3723_v11 = vpop.eup %3722  ;;  %v5893_v16 = vld [vmem:[#allocation5 + $0x140] ss:$16 sps:$4 sm:$0xff]  }
 0xd95   :  { %v1912_v21 = vmul.f32 %v3723_v11, %v5574_v57  ;;  %v5807_v57 = vld [vmem:[#allocation5] ss:$16 sps:$4 sm:$0xff]   ;;  %7269 = vst [vmem:[#allocation27_spill] sm:$0xff] %v5893_v16 }
 0xd96   :  { %v3725_v29 = vpop.eup %3724  ;;  %v5899_v54 = vld [vmem:[#allocation5 + $0x160] ss:$16 sps:$4 sm:$0xff]  }
 0xd97   :  { %v5793_v25 = vadd.f32 %v1913_v14, %v1912_v21  ;;  %7271 = vst [vmem:[#allocation31_spill] sm:$0xff] %v5899_v54  ;;  %v5902_v14 = vld [vmem:[#allocation5 + $0x184] ss:$16 sps:$4 sm:$0xff]   ;;  %v5905_v11 = vld [vmem:[#allocation5 + $0x180] ss:$16 sps:$4 sm:$0xff]  }
 0xd98   :  { %7272 = vst [vmem:[#allocation28_spill] sm:$0xff] %v5902_v14  ;;  %7273 = vst [vmem:[#allocation33_spill] sm:$0xff] %v5905_v11  ;;  %v5911_v21 = vld [vmem:[#allocation5 + $0x1a0] ss:$16 sps:$4 sm:$0xff]  }
 0xd99   :  { %3726 = vtanh.f32 %v5793_v25  ;;  %7275 = vst [vmem:[#allocation35_spill] sm:$0xff] %v5911_v21 }
 0xda3   :  { %v3727_v1 = vpop.eup %3726 }
 0xda4   :  { %v1916_v30 = vmul.f32 %v3727_v1, %v3725_v29  ;;  %v5914_v29 = vld [vmem:[#allocation5 + $0x1c4] ss:$16 sps:$4 sm:$0xff]   ;;  %v5917_v1 = vld [vmem:[#allocation5 + $0x1c0] ss:$16 sps:$4 sm:$0xff]  }
 0xda5   :  { %7276 = vst [vmem:[#allocation32_spill] sm:$0xff] %v5914_v29  ;;  %7277 = vst [vmem:[#allocation37_spill] sm:$0xff] %v5917_v1 }
 0xda6   :  { %v5796_v33 = vpack.c.bf16 %v1916_v30, %v1916_v30  ;;  %v5920_v30 = vld [vmem:[#allocation5 + $0x1e4] ss:$16 sps:$4 sm:$0xff]  }
 0xda7   :  { %7278 = vst [vmem:[#allocation34_spill] sm:$0xff] %v5920_v30 }
 0xda8   :  { %1951 = vmatmul.mubr.bf16.vlgmr.msra.gmra.mrb[32].mxu1 %v5796_v33  ;;  %1992 = vmatmul.mubr.bf16.vlgmr.msra.gmra.mrb[36].mxu0 %v5796_v33 }
 0xda9   :  { %2124 = vmatprep.mubr.bf16.mxu0 %v5796_v33  ;;  %3323 = vmatpush3.bf16.msra.mxu1 %v5801_v39 }
 0xdaa   :  { %3324 = vmatprep.subr.bf16.mxu1 %v6996_v3  ;;  %3338 = vmatprep.mubr.msk.bf16.mxu1 %vm4374_vm2, %v6996_v3 }
 0xdab   :  { %2093 = vmatpush1.bf16.msra.mxu0 %v5807_v57 }
 0xdac   :  { %2094 = vmatprep.subr.bf16.mxu0 %v5810_v42 }
 0xdad   :  { %3325 = vmatpush3.bf16.msra.mxu1 %v5813_v52 }
 0xdae   :  { %3326 = vmatprep.subr.bf16.mxu1 %v6996_v3 }
 0xdaf   :  { %2095 = vmatpush1.bf16.msra.mxu0 %v5817_v32 }
 0xdb0   :  { %2096 = vmatprep.subr.bf16.mxu0 %v5820_v12 }
 0xdb1   :  { %3327 = vmatpush3.bf16.msra.mxu1 %v5823_v36 }
 0xdb2   :  { %3328 = vmatprep.subr.bf16.mxu1 %v6996_v3 }
 0xdb3   :  { %2097 = vmatpush1.bf16.msra.mxu0 %v5827_v38 }
 0xdb4   :  { %2098 = vmatprep.subr.bf16.mxu0 %v5830_v10 }
 0xdb5   :  { %3329 = vmatpush3.bf16.msra.mxu1 %v5833_v40 }
 0xdb6   :  { %3330 = vmatprep.subr.bf16.mxu1 %v6996_v3 }
 0xdb7   :  { %2099 = vmatpush1.bf16.msra.mxu0 %v5837_v34 }
 0xdb8   :  { %2100 = vmatprep.subr.bf16.mxu0 %v5840_v60 }
 0xdb9   :  { %3331 = vmatpush3.bf16.msra.mxu1 %v5843_v41 }
 0xdba   :  { %3332 = vmatprep.subr.bf16.mxu1 %v6996_v3 }
 0xdbb   :  { %2101 = vmatpush1.bf16.msra.mxu0 %v5847_v43 }
 0xdbc   :  { %2102 = vmatprep.subr.bf16.mxu0 %v5850_v46 }
 0xdbd   :  { %3333 = vmatpush3.bf16.msra.mxu1 %v5604_v2  ;;  %v5868_v2 = vld [vmem:[#allocation5 + $0xe4] ss:$16 sps:$4 sm:$0xff]  }
 0xdbe   :  { %3334 = vmatprep.subr.bf16.mxu1 %v6996_v3 }
 0xdbf   :  { %2103 = vmatpush1.bf16.msra.mxu0 %v5855_v45 }
 0xdc0   :  { %2104 = vmatprep.subr.bf16.mxu0 %v5858_v44 }
 0xdc1   :  { %3335 = vmatpush3.bf16.msra.mxu1 %v5861_v37 }
 0xdc2   :  { %3336 = vmatprep.subr.bf16.mxu1 %v6996_v3 }
 0xdc3   :  { %2105 = vmatpush1.bf16.msra.mxu0 %v5865_v5 }
 0xdc4   :  { %2106 = vmatprep.subr.bf16.mxu0 %v5868_v2 }
 0xdc5   :  { %3337 = vmatpush3.bf16.msra.mxu1 %v5614_v4  ;;  %v5887_v4 = vld [vmem:[#allocation5 + $0x120] ss:$16 sps:$4 sm:$0xff]  }
 0xdc6   :  { %2133 = vmatprep.subr.bf16.mxu1 %v5872_v8  ;;  %7267 = vst [vmem:[#allocation25_spill] sm:$0xff] %v5887_v4 }
 0xdc7   :  { %2107 = vmatpush1.bf16.msra.mxu0 %v5875_v9 }
 0xdc8   :  { %2108 = vmatprep.subr.bf16.mxu0 %v5878_v13 }
 0xdcb   :  { %2109 = vmatpush1.bf16.msra.mxu0 %v5881_v56 }
 0xdcc   :  { %2110 = vmatprep.subr.bf16.mxu0 %v5884_v0 }
 0xdcf   :  { %2111 = vmatpush1.bf16.msra.mxu0 %v5887_v4 }
 0xdd0   :  { %2112 = vmatprep.subr.bf16.mxu0 %v5890_v53 }
 0xdd3   :  { %2113 = vmatpush1.bf16.msra.mxu0 %v5893_v16 }
 0xdd4   :  { %2114 = vmatprep.subr.bf16.mxu0 %v5896_v63 }
 0xdd7   :  { %2115 = vmatpush1.bf16.msra.mxu0 %v5899_v54 }
 0xdd8   :  { %2116 = vmatprep.subr.bf16.mxu0 %v5902_v14 }
 0xddb   :  { %2117 = vmatpush1.bf16.msra.mxu0 %v5905_v11 }
 0xddc   :  { %2118 = vmatprep.subr.bf16.mxu0 %v5908_v18 }
 0xddf   :  { %2119 = vmatpush1.bf16.msra.mxu0 %v5911_v21 }
 0xde0   :  { %2120 = vmatprep.subr.bf16.mxu0 %v5914_v29 }
 0xde3   :  { %2121 = vmatpush1.bf16.msra.mxu0 %v5917_v1 }
 0xde4   :  { %2122 = vmatprep.subr.bf16.mxu0 %v5920_v30 }
 0xde7   :  { %2123 = vmatpush1.bf16.msra.mxu0 %v5923_v55 }
 0xde8   :  { %2199 = vmatprep.subr.bf16.mxu0 %v5926_v19 }
 0xe7b   :  { %v1952_v28 = vpop.f32.mrb[32].mxu1  ;;  %v1993_v21 = vpop.f32.mrb[36].mxu0 }
 0xe7c   :  { %v1953_v29 = vadd.f32 %v1952_v28, %v4971_v22  ;;  %v1954_v18 = vpop.f32.mrb[33].mxu1  ;;  %v1995_v11 = vpop.f32.mrb[37].mxu0  ;;  %v1994_v55 = vadd.f32 %v1993_v21, %v4981_v50 }
 0xe7d   :  { %v1955_v1 = vadd.f32 %v1954_v18, %v4975_v26  ;;  %v1956_v14 = vpop.f32.mrb[34].mxu1  ;;  %v1997_v54 = vpop.f32.mrb[38].mxu0  ;;  %v1996_v19 = vadd.f32 %v1995_v11, %v4985_v51  ;;  %v5982_v11 = vld [vmem:[#allocation5 + $0x14c] ss:$16 sps:$4 sm:$0xff]  }
 0xe7e   :  { %v3163_v63 = vmul.f32 -1.442695, %v1953_v29  ;;  %v1957_v30 = vpop.f32.mrb[35].mxu1  ;;  %v1998_v16 = vpop.f32.mrb[39].mxu0  ;;  %v3165_v4 = vmul.f32 -1.442695, %v1994_v55 }
 0xe7f   :  { %v3164_v53 = vmul.f32 -1.442695, %v1955_v1  ;;  %v5985_v30 = vld [vmem:[#allocation5 + $0x148] ss:$16 sps:$4 sm:$0xff]  }
 0xe80   :  { %3728 = vpow2.f32 %v3163_v63 }
 0xe81   :  { %3730 = vpow2.f32 %v3164_v53 }
 0xe82   :  { %3732 = vtanh.f32 %v1996_v19 }
 0xe83   :  { %3734 = vpow2.f32 %v3165_v4 }
 0xe8a   :  { %v3729_v0 = vpop.eup %3728 }
 0xe8b   :  { %v2009_v56 = vadd.f32 1.0, %v3729_v0  ;;  %v3731_v28 = vpop.eup %3730 }
 0xe8c   :  { %v2010_v18 = vadd.f32 1.0, %v3731_v28  ;;  %v3733_v54 = vpop.eup %3732  ;;  %v5988_v28 = vld [vmem:[#allocation5 + $0x16c] ss:$16 sps:$4 sm:$0xff]  }
 0xe8d   :  { %3736 = vrcp.f32 %v2009_v56  ;;  %v3735_v14 = vpop.eup %3734  ;;  %v5979_v56 = vld [vmem:[#allocation5 + $0x128] ss:$16 sps:$4 sm:$0xff]   ;;  %7281 = vst [vmem:[#allocation41_spill] sm:$0xff] %v5988_v28 }
 0xe8e   :  { %3738 = vrcp.f32 %v2010_v18  ;;  %v2011_v63 = vadd.f32 1.0, %v3735_v14  ;;  %v5991_v18 = vld [vmem:[#allocation5 + $0x168] ss:$16 sps:$4 sm:$0xff]  }
 0xe8f   :  { %7282 = vst [vmem:[#allocation38_spill] sm:$0xff] %v5991_v18  ;;  %v5997_v14 = vld [vmem:[#allocation5 + $0x188] ss:$16 sps:$4 sm:$0xff]  }
 0xe90   :  { %3740 = vrcp.f32 %v2011_v63  ;;  %7284 = vst [vmem:[#allocation40_spill] sm:$0xff] %v5997_v14  ;;  %v6009_v63 = vld [vmem:[#allocation5 + $0x1c8] ss:$16 sps:$4 sm:$0xff]  }
 0xe91   :  { %7288 = vst [vmem:[#allocation46_spill] sm:$0xff] %v6009_v63 }
 0xe97   :  { %v3737_v29 = vpop.eup %3736 }
 0xe98   :  { %v2020_v16 = vmul.f32 %v3737_v29, %v3733_v54  ;;  %v3739_v1 = vpop.eup %3738  ;;  %v5994_v54 = vld [vmem:[#allocation5 + $0x18c] ss:$16 sps:$4 sm:$0xff]  }
 0xe99   :  { %v2019_v53 = vmul.f32 %v3739_v1, %v5641_v7  ;;  %v5949_v7 = vld [vmem:[#allocation5 + $0x88] ss:$16 sps:$4 sm:$0xff]   ;;  %7283 = vst [vmem:[#allocation42_spill] sm:$0xff] %v5994_v54  ;;  %v6000_v29 = vld [vmem:[#allocation5 + $0x1ac] ss:$16 sps:$4 sm:$0xff]  }
 0xe9a   :  { %v3741_v55 = vpop.eup %3740  ;;  %7285 = vst [vmem:[#allocation43_spill] sm:$0xff] %v6000_v29  ;;  %v6006_v1 = vld [vmem:[#allocation5 + $0x1cc] ss:$16 sps:$4 sm:$0xff]  }
 0xe9b   :  { %v5934_v21 = vadd.f32 %v2020_v16, %v2019_v53  ;;  %v6003_v16 = vld [vmem:[#allocation5 + $0x1a8] ss:$16 sps:$4 sm:$0xff]   ;;  %7287 = vst [vmem:[#allocation45_spill] sm:$0xff] %v6006_v1  ;;  %v6012_v53 = vld [vmem:[#allocation5 + $0x1ec] ss:$16 sps:$4 sm:$0xff]  }
 0xe9c   :  { %7286 = vst [vmem:[#allocation44_spill] sm:$0xff] %v6003_v16  ;;  %7289 = vst [vmem:[#allocation47_spill] sm:$0xff] %v6012_v53 }
 0xe9d   :  { %3742 = vtanh.f32 %v5934_v21 }
 0xea7   :  { %v3743_v19 = vpop.eup %3742 }
 0xea8   :  { %v2023_v0 = vmul.f32 %v3743_v19, %v3741_v55  ;;  %v6015_v55 = vld [vmem:[#allocation5 + $0x1e8] ss:$16 sps:$4 sm:$0xff]   ;;  %v6018_v19 = vld [vmem:[#allocation8 + $0xc] ss:$16 sps:$4 sm:$0xff]  }
 0xea9   :  { %7290 = vst [vmem:[#allocation50_spill] sm:$0xff] %v6015_v55  ;;  %7291 = vst [vmem:[#allocation51_spill] sm:$0xff] %v6018_v19 }
 0xeaa   :  { %v5937_v4 = vpack.c.bf16 %v2023_v0, %v2023_v0 }
 0xeac   :  { %3339 = vmatmul.mubr.bf16.vlgmr.msra.gmra.mrb[36].mxu1 %v5937_v4 }
 0xead   :  { %2165 = vmatprep.mubr.bf16.mxu1 %v5796_v33  ;;  %2134 = vmatpush1.bf16.msra.mxu1 %v5648_v58  ;;  %v5952_v33 = vld [vmem:[#allocation5 + $0xac] ss:$16 sps:$4 sm:$0xff]   ;;  %v5955_v58 = vld [vmem:[#allocation5 + $0xa8] ss:$16 sps:$4 sm:$0xff]  }
 0xeae   :  { %2135 = vmatprep.subr.bf16.mxu1 %v5651_v15  ;;  %v5958_v15 = vld [vmem:[#allocation5 + $0xcc] ss:$16 sps:$4 sm:$0xff]  }
 0xeb1   :  { %2136 = vmatpush1.bf16.msra.mxu1 %v5654_v48  ;;  %v5961_v48 = vld [vmem:[#allocation5 + $0xc8] ss:$16 sps:$4 sm:$0xff]  }
 0xeb2   :  { %2137 = vmatprep.subr.bf16.mxu1 %v5657_v49  ;;  %v5964_v49 = vld [vmem:[#allocation5 + $0xec] ss:$16 sps:$4 sm:$0xff]  }
 0xeb5   :  { %2138 = vmatpush1.bf16.msra.mxu1 %v5660_v23  ;;  %v5967_v23 = vld [vmem:[#allocation5 + $0xe8] ss:$16 sps:$4 sm:$0xff]  }
 0xeb6   :  { %2139 = vmatprep.subr.bf16.mxu1 %v5663_v47  ;;  %v5970_v47 = vld [vmem:[#allocation5 + $0x10c] ss:$16 sps:$4 sm:$0xff]  }
 0xeb9   :  { %2140 = vmatpush1.bf16.msra.mxu1 %v5666_v24  ;;  %v5973_v24 = vld [vmem:[#allocation5 + $0x108] ss:$16 sps:$4 sm:$0xff]  }
 0xeba   :  { %2141 = vmatprep.subr.bf16.mxu1 %v5669_v27  ;;  %v5976_v27 = vld [vmem:[#allocation5 + $0x12c] ss:$16 sps:$4 sm:$0xff]  }
 0xebd   :  { %2142 = vmatpush1.bf16.msra.mxu1 %v5949_v7 }
 0xebe   :  { %2143 = vmatprep.subr.bf16.mxu1 %v5952_v33 }
 0xec1   :  { %2144 = vmatpush1.bf16.msra.mxu1 %v5955_v58 }
 0xec2   :  { %2145 = vmatprep.subr.bf16.mxu1 %v5958_v15 }
 0xec5   :  { %2146 = vmatpush1.bf16.msra.mxu1 %v5961_v48 }
 0xec6   :  { %2147 = vmatprep.subr.bf16.mxu1 %v5964_v49 }
 0xec9   :  { %2148 = vmatpush1.bf16.msra.mxu1 %v5967_v23 }
 0xeca   :  { %2149 = vmatprep.subr.bf16.mxu1 %v5970_v47 }
 0xecd   :  { %2150 = vmatpush1.bf16.msra.mxu1 %v5973_v24 }
 0xece   :  { %2151 = vmatprep.subr.bf16.mxu1 %v5976_v27 }
 0xed1   :  { %2152 = vmatpush1.bf16.msra.mxu1 %v5979_v56 }
 0xed2   :  { %2153 = vmatprep.subr.bf16.mxu1 %v5982_v11 }
 0xed5   :  { %2154 = vmatpush1.bf16.msra.mxu1 %v5985_v30 }
 0xed6   :  { %2155 = vmatprep.subr.bf16.mxu1 %v5988_v28 }
 0xed9   :  { %2156 = vmatpush1.bf16.msra.mxu1 %v5991_v18 }
 0xeda   :  { %2157 = vmatprep.subr.bf16.mxu1 %v5994_v54 }
 0xedd   :  { %2158 = vmatpush1.bf16.msra.mxu1 %v5997_v14 }
 0xede   :  { %2159 = vmatprep.subr.bf16.mxu1 %v6000_v29 }
 0xee1   :  { %2160 = vmatpush1.bf16.msra.mxu1 %v6003_v16 }
 0xee2   :  { %2161 = vmatprep.subr.bf16.mxu1 %v6006_v1 }
 0xee5   :  { %2162 = vmatpush1.bf16.msra.mxu1 %v6009_v63 }
 0xee6   :  { %2163 = vmatprep.subr.bf16.mxu1 %v6012_v53 }
 0xee9   :  { %2164 = vmatpush1.bf16.msra.mxu1 %v6015_v55 }
 0xeea   :  { %2240 = vmatprep.subr.bf16.mxu1 %v6018_v19  ;;  %v2077_v19 = vstv %s3167_s27 }
 0xeeb   :  { %vm2078_vm14 = vcmp.eq.s32.totalorder %v7201_v17, %v2077_v19  ;;  %v6042_v19 = vld [vmem:[#allocation8] ss:$16 sps:$4 sm:$0xff]  }
 0xeec   :  { %7294 = vst [vmem:[#allocation54_spill] sm:$0xff] %v6042_v19 }
 0xf7f   :  { %v2059_v0 = vpop.f32.mrb[36].mxu1 }
 0xf80   :  { %v6022_v16 = vadd.f32 %v5699_v62, %v2059_v0  ;;  %v3340_v1 = vpop.f32.mrb[37].mxu1  ;;  %v3168_v62 = vsel %vm2078_vm14, 1.0, %v6996_v3 }
 0xf81   :  { %v2062_v29 = vpop.f32.mrb[38].mxu1  ;;  %v6845_v1 = vstv %s6030_s2 }
 0xf82   :  { %7292 = vst [vmem:[#allocation52_spill] sm:$0xff] %v6022_v16  ;;  %v3341_v14 = vpop.f32.mrb[39].mxu1  ;;  %v2065_v63 = vsel %vm1221_vm3, %v6022_v16, -inf }
 0xf83   :  { %2066 = vmax.xlane.f32.xlu0 %v2065_v63  ;;  %v2083_v14 = vstv %s2082_s10 }
0x1010   :  { %v2067_v53 = vpop.xlane.xlu0 %2066 }
0x1011   :  { %vm2068_vm13 = vcmp.eq.f32.partialorder %v6022_v16, %v2067_v53  ;;  %v6035_v53 = vmul.f32 %v3168_v62, %v2083_v14  ;;  %v6048_v62 = vld [vmem:[#allocation8 + $0x24] ss:$16 sps:$4 sm:$0xff]   ;;  %v6051_v14 = vld [vmem:[#allocation8 + $0x2c] ss:$16 sps:$4 sm:$0xff]  }
0x1012   :  { %v2069_v55 = vsel %vm2068_vm13, %v7200_v6, 128.0  ;;  %7296 = vst [vmem:[#allocation56_spill] sm:$0xff] %v6048_v62  ;;  %7297 = vst [vmem:[#allocation57_spill] sm:$0xff] %v6051_v14  ;;  %vm2953_vm13 = vcmask 1046528  }
0x1013   :  { %v2070_v54 = vsel %vm1221_vm3, %v2069_v55, inf  ;;  %7293 = vst [vmem:[#allocation53_spill] sm:$0xff] %v6035_v53 }
0x1014   :  { %2071 = vmin.xlane.f32.xlu1 %v2070_v54 }
0x10a1   :  { %v2072_v29 = vpop.xlane.xlu1 %2071 }
0x10a2   :  { %vm2073_vm15 = vcmp.eq.f32.partialorder %v2069_v55, %v2072_v29  ;;  %v6045_v55 = vld [vmem:[#allocation8 + $0x8] ss:$16 sps:$4 sm:$0xff]   ;;  %v6060_v29 = vld [vmem:[#allocation8 + $0x44] ss:$16 sps:$4 sm:$0xff]  }
0x10a3   :  { %v3166_v63 = vsel %vm2073_vm15, 1.0, %v6996_v3  ;;  %7295 = vst [vmem:[#allocation55_spill] sm:$0xff] %v6045_v55  ;;  %7300 = vst [vmem:[#allocation60_spill] sm:$0xff] %v6060_v29 }
0x10a4   :  { %v2089_v54 = vmul.f32 %v3166_v63, %v6845_v1  ;;  %v6063_v63 = vld [vmem:[#allocation8 + $0x4c] ss:$16 sps:$4 sm:$0xff]   ;;  %v6072_v1 = vld [vmem:[#allocation8 + $0x64] ss:$16 sps:$4 sm:$0xff]  }
0x10a5   :  { %7301 = vst [vmem:[#allocation61_spill] sm:$0xff] %v6063_v63  ;;  %7304 = vst [vmem:[#allocation64_spill] sm:$0xff] %v6072_v1 }
0x10a6   :  { %v2090_v0 = vadd.f32 %v2089_v54, %v6035_v53  ;;  %v6066_v54 = vld [vmem:[#allocation8 + $0x40] ss:$16 sps:$4 sm:$0xff]   ;;  %v6075_v53 = vld [vmem:[#allocation8 + $0x6c] ss:$16 sps:$4 sm:$0xff]  }
0x10a7   :  { %7302 = vst [vmem:[#allocation62_spill] sm:$0xff] %v6066_v54  ;;  %7305 = vst [vmem:[#allocation65_spill] sm:$0xff] %v6075_v53 }
0x10a8   :  { %v2091_v16 = vpack.c.bf16 %v2090_v0, %v2090_v0  ;;  %v6069_v0 = vld [vmem:[#allocation8 + $0x48] ss:$16 sps:$4 sm:$0xff]  }
0x10a9   :  { %7303 = vst [vmem:[#allocation63_spill] sm:$0xff] %v6069_v0 }
0x10aa   :  { %2125 = vmatmul.mubr.bf16.vlgmr.msra.gmra.mrb[40].mxu0 %v2091_v16  ;;  %2166 = vmatmul.mubr.bf16.vlgmr.msra.gmra.mrb[40].mxu1 %v2091_v16  ;;  %v6054_v16 = vld [vmem:[#allocation8 + $0x20] ss:$16 sps:$4 sm:$0xff]  }
0x10ab   :  { %2231 = vmatprep.mubr.bf16.mxu0 %v5937_v4  ;;  %2272 = vmatprep.mubr.bf16.mxu1 %v5937_v4  ;;  %7298 = vst [vmem:[#allocation58_spill] sm:$0xff] %v6054_v16  ;;  %v6057_v4 = vld [vmem:[#allocation8 + $0x28] ss:$16 sps:$4 sm:$0xff]  }
0x10ac   :  { %2200 = vmatpush1.bf16.msra.mxu0 %v6042_v19  ;;  %2241 = vmatpush1.bf16.msra.mxu1 %v6045_v55  ;;  %7299 = vst [vmem:[#allocation59_spill] sm:$0xff] %v6057_v4 }
0x10ad   :  { %2201 = vmatprep.subr.bf16.mxu0 %v6048_v62  ;;  %2242 = vmatprep.subr.bf16.mxu1 %v6051_v14 }
0x10b0   :  { %2202 = vmatpush1.bf16.msra.mxu0 %v6054_v16  ;;  %2243 = vmatpush1.bf16.msra.mxu1 %v6057_v4 }
0x10b1   :  { %2203 = vmatprep.subr.bf16.mxu0 %v6060_v29  ;;  %2244 = vmatprep.subr.bf16.mxu1 %v6063_v63  ;;  %v6078_v29 = vld [vmem:[#allocation8 + $0x60] ss:$16 sps:$4 sm:$0xff]   ;;  %v6081_v63 = vld [vmem:[#allocation8 + $0x68] ss:$16 sps:$4 sm:$0xff]  }
0x10b2   :  { %7306 = vst [vmem:[#allocation66_spill] sm:$0xff] %v6078_v29  ;;  %7307 = vst [vmem:[#allocation67_spill] sm:$0xff] %v6081_v63 }
0x10b4   :  { %2204 = vmatpush1.bf16.msra.mxu0 %v6066_v54  ;;  %2245 = vmatpush1.bf16.msra.mxu1 %v6069_v0  ;;  %v6084_v54 = vld [vmem:[#allocation8 + $0x84] ss:$16 sps:$4 sm:$0xff]   ;;  %v6087_v0 = vld [vmem:[#allocation8 + $0x8c] ss:$16 sps:$4 sm:$0xff]  }
0x10b5   :  { %2205 = vmatprep.subr.bf16.mxu0 %v6072_v1  ;;  %2246 = vmatprep.subr.bf16.mxu1 %v6075_v53  ;;  %7308 = vst [vmem:[#allocation68_spill] sm:$0xff] %v6084_v54  ;;  %7309 = vst [vmem:[#allocation69_spill] sm:$0xff] %v6087_v0  ;;  %v6090_v1 = vld [vmem:[#allocation8 + $0x80] ss:$16 sps:$4 sm:$0xff]   ;;  %v6093_v53 = vld [vmem:[#allocation8 + $0x88] ss:$16 sps:$4 sm:$0xff]  }
0x10b6   :  { %7310 = vst [vmem:[#allocation70_spill] sm:$0xff] %v6090_v1  ;;  %7311 = vst [vmem:[#allocation71_spill] sm:$0xff] %v6093_v53 }
0x10b8   :  { %2206 = vmatpush1.bf16.msra.mxu0 %v6078_v29  ;;  %2247 = vmatpush1.bf16.msra.mxu1 %v6081_v63  ;;  %v6096_v29 = vld [vmem:[#allocation8 + $0xa4] ss:$16 sps:$4 sm:$0xff]   ;;  %v6099_v63 = vld [vmem:[#allocation8 + $0xac] ss:$16 sps:$4 sm:$0xff]  }
0x10b9   :  { %2207 = vmatprep.subr.bf16.mxu0 %v6084_v54  ;;  %2248 = vmatprep.subr.bf16.mxu1 %v6087_v0  ;;  %7312 = vst [vmem:[#allocation72_spill] sm:$0xff] %v6096_v29  ;;  %7313 = vst [vmem:[#allocation73_spill] sm:$0xff] %v6099_v63  ;;  %v6102_v54 = vld [vmem:[#allocation8 + $0xa0] ss:$16 sps:$4 sm:$0xff]   ;;  %v6105_v0 = vld [vmem:[#allocation8 + $0xa8] ss:$16 sps:$4 sm:$0xff]  }
0x10ba   :  { %7314 = vst [vmem:[#allocation74_spill] sm:$0xff] %v6102_v54  ;;  %7315 = vst [vmem:[#allocation75_spill] sm:$0xff] %v6105_v0 }
0x10bc   :  { %2208 = vmatpush1.bf16.msra.mxu0 %v6090_v1  ;;  %2249 = vmatpush1.bf16.msra.mxu1 %v6093_v53  ;;  %v6108_v1 = vld [vmem:[#allocation8 + $0xc4] ss:$16 sps:$4 sm:$0xff]   ;;  %v6111_v53 = vld [vmem:[#allocation8 + $0xcc] ss:$16 sps:$4 sm:$0xff]  }
0x10bd   :  { %2209 = vmatprep.subr.bf16.mxu0 %v6096_v29  ;;  %2250 = vmatprep.subr.bf16.mxu1 %v6099_v63  ;;  %7316 = vst [vmem:[#allocation76_spill] sm:$0xff] %v6108_v1  ;;  %7317 = vst [vmem:[#allocation77_spill] sm:$0xff] %v6111_v53  ;;  %v6114_v29 = vld [vmem:[#allocation8 + $0xc0] ss:$16 sps:$4 sm:$0xff]   ;;  %v6117_v63 = vld [vmem:[#allocation8 + $0xc8] ss:$16 sps:$4 sm:$0xff]  }
0x10be   :  { %7318 = vst [vmem:[#allocation78_spill] sm:$0xff] %v6114_v29  ;;  %7319 = vst [vmem:[#allocation79_spill] sm:$0xff] %v6117_v63 }
0x10c0   :  { %2210 = vmatpush1.bf16.msra.mxu0 %v6102_v54  ;;  %2251 = vmatpush1.bf16.msra.mxu1 %v6105_v0  ;;  %v6120_v54 = vld [vmem:[#allocation8 + $0xe4] ss:$16 sps:$4 sm:$0xff]   ;;  %v6123_v0 = vld [vmem:[#allocation8 + $0xec] ss:$16 sps:$4 sm:$0xff]  }
0x10c1   :  { %2211 = vmatprep.subr.bf16.mxu0 %v6108_v1  ;;  %2252 = vmatprep.subr.bf16.mxu1 %v6111_v53  ;;  %7320 = vst [vmem:[#allocation80_spill] sm:$0xff] %v6120_v54  ;;  %7321 = vst [vmem:[#allocation81_spill] sm:$0xff] %v6123_v0  ;;  %v6126_v1 = vld [vmem:[#allocation8 + $0xe0] ss:$16 sps:$4 sm:$0xff]   ;;  %v6129_v53 = vld [vmem:[#allocation8 + $0xe8] ss:$16 sps:$4 sm:$0xff]  }
0x10c2   :  { %7322 = vst [vmem:[#allocation82_spill] sm:$0xff] %v6126_v1  ;;  %7323 = vst [vmem:[#allocation83_spill] sm:$0xff] %v6129_v53 }
0x10c4   :  { %2212 = vmatpush1.bf16.msra.mxu0 %v6114_v29  ;;  %2253 = vmatpush1.bf16.msra.mxu1 %v6117_v63  ;;  %v6132_v29 = vld [vmem:[#allocation8 + $0x104] ss:$16 sps:$4 sm:$0xff]   ;;  %v6135_v63 = vld [vmem:[#allocation8 + $0x10c] ss:$16 sps:$4 sm:$0xff]  }
0x10c5   :  { %2213 = vmatprep.subr.bf16.mxu0 %v6120_v54  ;;  %2254 = vmatprep.subr.bf16.mxu1 %v6123_v0  ;;  %7324 = vst [vmem:[#allocation84_spill] sm:$0xff] %v6132_v29  ;;  %7325 = vst [vmem:[#allocation85_spill] sm:$0xff] %v6135_v63  ;;  %v6138_v54 = vld [vmem:[#allocation8 + $0x100] ss:$16 sps:$4 sm:$0xff]   ;;  %v6141_v0 = vld [vmem:[#allocation8 + $0x108] ss:$16 sps:$4 sm:$0xff]  }
0x10c6   :  { %7326 = vst [vmem:[#allocation86_spill] sm:$0xff] %v6138_v54  ;;  %7327 = vst [vmem:[#allocation87_spill] sm:$0xff] %v6141_v0 }
0x10c8   :  { %2214 = vmatpush1.bf16.msra.mxu0 %v6126_v1  ;;  %2255 = vmatpush1.bf16.msra.mxu1 %v6129_v53  ;;  %v6144_v1 = vld [vmem:[#allocation8 + $0x124] ss:$16 sps:$4 sm:$0xff]   ;;  %v6147_v53 = vld [vmem:[#allocation8 + $0x12c] ss:$16 sps:$4 sm:$0xff]  }
0x10c9   :  { %2215 = vmatprep.subr.bf16.mxu0 %v6132_v29  ;;  %2256 = vmatprep.subr.bf16.mxu1 %v6135_v63  ;;  %7328 = vst [vmem:[#allocation88_spill] sm:$0xff] %v6144_v1  ;;  %7329 = vst [vmem:[#allocation89_spill] sm:$0xff] %v6147_v53  ;;  %v6150_v29 = vld [vmem:[#allocation8 + $0x120] ss:$16 sps:$4 sm:$0xff]   ;;  %v6153_v63 = vld [vmem:[#allocation8 + $0x128] ss:$16 sps:$4 sm:$0xff]  }
0x10ca   :  { %7330 = vst [vmem:[#allocation90_spill] sm:$0xff] %v6150_v29  ;;  %7331 = vst [vmem:[#allocation91_spill] sm:$0xff] %v6153_v63 }
0x10cc   :  { %2216 = vmatpush1.bf16.msra.mxu0 %v6138_v54  ;;  %2257 = vmatpush1.bf16.msra.mxu1 %v6141_v0  ;;  %v6156_v54 = vld [vmem:[#allocation8 + $0x144] ss:$16 sps:$4 sm:$0xff]   ;;  %v6159_v0 = vld [vmem:[#allocation8 + $0x14c] ss:$16 sps:$4 sm:$0xff]  }
0x10cd   :  { %2217 = vmatprep.subr.bf16.mxu0 %v6144_v1  ;;  %2258 = vmatprep.subr.bf16.mxu1 %v6147_v53  ;;  %7332 = vst [vmem:[#allocation92_spill] sm:$0xff] %v6156_v54  ;;  %7333 = vst [vmem:[#allocation93_spill] sm:$0xff] %v6159_v0  ;;  %v6162_v1 = vld [vmem:[#allocation8 + $0x140] ss:$16 sps:$4 sm:$0xff]   ;;  %v6165_v53 = vld [vmem:[#allocation8 + $0x148] ss:$16 sps:$4 sm:$0xff]  }
0x10ce   :  { %7334 = vst [vmem:[#allocation94_spill] sm:$0xff] %v6162_v1  ;;  %7335 = vst [vmem:[#allocation95_spill] sm:$0xff] %v6165_v53 }
0x10d0   :  { %2218 = vmatpush1.bf16.msra.mxu0 %v6150_v29  ;;  %2259 = vmatpush1.bf16.msra.mxu1 %v6153_v63  ;;  %v6168_v29 = vld [vmem:[#allocation8 + $0x164] ss:$16 sps:$4 sm:$0xff]   ;;  %v6171_v63 = vld [vmem:[#allocation8 + $0x16c] ss:$16 sps:$4 sm:$0xff]  }
0x10d1   :  { %2219 = vmatprep.subr.bf16.mxu0 %v6156_v54  ;;  %2260 = vmatprep.subr.bf16.mxu1 %v6159_v0  ;;  %7336 = vst [vmem:[#allocation96_spill] sm:$0xff] %v6168_v29  ;;  %7337 = vst [vmem:[#allocation97_spill] sm:$0xff] %v6171_v63  ;;  %v6174_v54 = vld [vmem:[#allocation8 + $0x160] ss:$16 sps:$4 sm:$0xff]   ;;  %v6177_v0 = vld [vmem:[#allocation8 + $0x168] ss:$16 sps:$4 sm:$0xff]  }
0x10d2   :  { %7338 = vst [vmem:[#allocation98_spill] sm:$0xff] %v6174_v54  ;;  %7339 = vst [vmem:[#allocation99_spill] sm:$0xff] %v6177_v0 }
0x10d4   :  { %2220 = vmatpush1.bf16.msra.mxu0 %v6162_v1  ;;  %2261 = vmatpush1.bf16.msra.mxu1 %v6165_v53  ;;  %v6180_v1 = vld [vmem:[#allocation8 + $0x184] ss:$16 sps:$4 sm:$0xff]   ;;  %v6183_v53 = vld [vmem:[#allocation8 + $0x18c] ss:$16 sps:$4 sm:$0xff]  }
0x10d5   :  { %2221 = vmatprep.subr.bf16.mxu0 %v6168_v29  ;;  %2262 = vmatprep.subr.bf16.mxu1 %v6171_v63  ;;  %7340 = vst [vmem:[#allocation100_spill] sm:$0xff] %v6180_v1  ;;  %7341 = vst [vmem:[#allocation101_spill] sm:$0xff] %v6183_v53  ;;  %v6186_v29 = vld [vmem:[#allocation8 + $0x180] ss:$16 sps:$4 sm:$0xff]   ;;  %v6189_v63 = vld [vmem:[#allocation8 + $0x188] ss:$16 sps:$4 sm:$0xff]  }
0x10d6   :  { %7342 = vst [vmem:[#allocation102_spill] sm:$0xff] %v6186_v29  ;;  %7343 = vst [vmem:[#allocation103_spill] sm:$0xff] %v6189_v63 }
0x10d8   :  { %2222 = vmatpush1.bf16.msra.mxu0 %v6174_v54  ;;  %2263 = vmatpush1.bf16.msra.mxu1 %v6177_v0  ;;  %v6192_v54 = vld [vmem:[#allocation8 + $0x1a4] ss:$16 sps:$4 sm:$0xff]   ;;  %v6195_v0 = vld [vmem:[#allocation8 + $0x1ac] ss:$16 sps:$4 sm:$0xff]  }
0x10d9   :  { %2223 = vmatprep.subr.bf16.mxu0 %v6180_v1  ;;  %2264 = vmatprep.subr.bf16.mxu1 %v6183_v53  ;;  %7344 = vst [vmem:[#allocation104_spill] sm:$0xff] %v6192_v54  ;;  %7345 = vst [vmem:[#allocation105_spill] sm:$0xff] %v6195_v0  ;;  %v6198_v1 = vld [vmem:[#allocation8 + $0x1a0] ss:$16 sps:$4 sm:$0xff]   ;;  %v6201_v53 = vld [vmem:[#allocation8 + $0x1a8] ss:$16 sps:$4 sm:$0xff]  }
0x10da   :  { %7346 = vst [vmem:[#allocation106_spill] sm:$0xff] %v6198_v1  ;;  %7347 = vst [vmem:[#allocation107_spill] sm:$0xff] %v6201_v53 }
0x10dc   :  { %2224 = vmatpush1.bf16.msra.mxu0 %v6186_v29  ;;  %2265 = vmatpush1.bf16.msra.mxu1 %v6189_v63  ;;  %v6204_v29 = vld [vmem:[#allocation8 + $0x1c4] ss:$16 sps:$4 sm:$0xff]   ;;  %v6207_v63 = vld [vmem:[#allocation8 + $0x1cc] ss:$16 sps:$4 sm:$0xff]  }
0x10dd   :  { %2225 = vmatprep.subr.bf16.mxu0 %v6192_v54  ;;  %2266 = vmatprep.subr.bf16.mxu1 %v6195_v0  ;;  %7348 = vst [vmem:[#allocation108_spill] sm:$0xff] %v6204_v29  ;;  %7349 = vst [vmem:[#allocation109_spill] sm:$0xff] %v6207_v63  ;;  %v6210_v54 = vld [vmem:[#allocation8 + $0x1c0] ss:$16 sps:$4 sm:$0xff]   ;;  %v6213_v0 = vld [vmem:[#allocation8 + $0x1c8] ss:$16 sps:$4 sm:$0xff]  }
0x10de   :  { %7350 = vst [vmem:[#allocation110_spill] sm:$0xff] %v6210_v54  ;;  %7351 = vst [vmem:[#allocation111_spill] sm:$0xff] %v6213_v0 }
0x10e0   :  { %2226 = vmatpush1.bf16.msra.mxu0 %v6198_v1  ;;  %2267 = vmatpush1.bf16.msra.mxu1 %v6201_v53  ;;  %v6216_v1 = vld [vmem:[#allocation8 + $0x1e4] ss:$16 sps:$4 sm:$0xff]   ;;  %v6219_v53 = vld [vmem:[#allocation8 + $0x1ec] ss:$16 sps:$4 sm:$0xff]  }
0x10e1   :  { %2227 = vmatprep.subr.bf16.mxu0 %v6204_v29  ;;  %2268 = vmatprep.subr.bf16.mxu1 %v6207_v63  ;;  %7352 = vst [vmem:[#allocation112_spill] sm:$0xff] %v6216_v1  ;;  %7353 = vst [vmem:[#allocation113_spill] sm:$0xff] %v6219_v53  ;;  %v6222_v29 = vld [vmem:[#allocation8 + $0x1e0] ss:$16 sps:$4 sm:$0xff]   ;;  %v6225_v63 = vld [vmem:[#allocation8 + $0x1e8] ss:$16 sps:$4 sm:$0xff]  }
0x10e2   :  { %7354 = vst [vmem:[#allocation114_spill] sm:$0xff] %v6222_v29  ;;  %7355 = vst [vmem:[#allocation115_spill] sm:$0xff] %v6225_v63 }
0x10e4   :  { %2228 = vmatpush1.bf16.msra.mxu0 %v6210_v54  ;;  %2269 = vmatpush1.bf16.msra.mxu1 %v6213_v0 }
0x10e5   :  { %2229 = vmatprep.subr.bf16.mxu0 %v6216_v1  ;;  %2270 = vmatprep.subr.bf16.mxu1 %v6219_v53 }
0x10e8   :  { %2230 = vmatpush1.bf16.msra.mxu0 %v6222_v29  ;;  %2271 = vmatpush1.bf16.msra.mxu1 %v6225_v63 }
0x10e9   :  { %3342 = vmatprep.subr.bf16.mxu0 %v6996_v3  ;;  %2373 = vmatprep.subr.bf16.mxu1 %v5785_v35 }
0x117d   :  { %v2126_v0 = vpop.f32.mrb[40].mxu0  ;;  %v2167_v54 = vpop.f32.mrb[40].mxu1 }
0x117e   :  { %v2127_v1 = vadd.f32 %v2126_v0, %v7078_v20  ;;  %v2128_v4 = vpop.f32.mrb[41].mxu0  ;;  %v2169_v16 = vpop.f32.mrb[41].mxu1  ;;  %v2168_v63 = vadd.f32 %v2167_v54, %v7080_v31 }
0x117f   :  { %v2129_v53 = vadd.f32 %v2128_v4, %v7079_v61  ;;  %v2130_v14 = vpop.f32.mrb[42].mxu0  ;;  %v2171_v62 = vpop.f32.mrb[42].mxu1  ;;  %v2170_v35 = vadd.f32 %v2169_v16, %v4889_v59 }
0x1180   :  { %v3170_v55 = vmul.f32 -1.442695, %v2127_v1  ;;  %v2131_v29 = vpop.f32.mrb[43].mxu0  ;;  %v2172_v19 = vpop.f32.mrb[43].mxu1  ;;  %v3172_v6 = vmul.f32 -1.442695, %v2168_v63 }
0x1181   :  { %v3171_v17 = vmul.f32 -1.442695, %v2129_v53 }
0x1182   :  { %3744 = vpow2.f32 %v3170_v55 }
0x1183   :  { %3746 = vpow2.f32 %v3171_v17 }
0x1184   :  { %3748 = vtanh.f32 %v2170_v35 }
0x1185   :  { %3750 = vpow2.f32 %v3172_v6 }
0x118c   :  { %v3745_v18 = vpop.eup %3744 }
0x118d   :  { %v2183_v28 = vadd.f32 1.0, %v3745_v18  ;;  %v3747_v0 = vpop.eup %3746 }
0x118e   :  { %v2184_v4 = vadd.f32 1.0, %v3747_v0  ;;  %v3749_v62 = vpop.eup %3748 }
0x118f   :  { %3752 = vrcp.f32 %v2183_v28  ;;  %v3751_v1 = vpop.eup %3750 }
0x1190   :  { %3754 = vrcp.f32 %v2184_v4  ;;  %v2185_v55 = vadd.f32 1.0, %v3751_v1 }
0x1192   :  { %3756 = vrcp.f32 %v2185_v55 }
0x1199   :  { %v3753_v14 = vpop.eup %3752 }
0x119a   :  { %v2194_v19 = vmul.f32 %v3753_v14, %v3749_v62  ;;  %v3755_v53 = vpop.eup %3754 }
0x119b   :  { %v2193_v17 = vmul.f32 %v3755_v53, %v5793_v25  ;;  %v6265_v25 = vld [vmem:[#allocation10 + $0x28] sm:$0xff]  }
0x119c   :  { %v3757_v18 = vpop.eup %3756 }
0x119d   :  { %v6235_v29 = vadd.f32 %v2194_v19, %v2193_v17 }
0x119f   :  { %3758 = vtanh.f32 %v6235_v29 }
0x11a9   :  { %v3759_v16 = vpop.eup %3758 }
0x11aa   :  { %v2197_v63 = vmul.f32 %v3759_v16, %v3757_v18 }
0x11ac   :  { %v6238_v6 = vpack.c.bf16 %v2197_v63, %v2197_v63 }
0x11ae   :  { %2232 = vmatmul.mubr.bf16.vlgmr.msra.gmra.mrb[44].mxu0 %v6238_v6  ;;  %2273 = vmatmul.mubr.bf16.vlgmr.msra.gmra.mrb[44].mxu1 %v6238_v6 }
0x11af   :  { %2405 = vmatprep.mubr.bf16.mxu1 %v6238_v6  ;;  %3343 = vmatpush3.bf16.msra.mxu0 %v5801_v39  ;;  %v6275_v39 = vld [vmem:[#allocation10 + $0x38] sm:$0xff]  }
0x11b0   :  { %3344 = vmatprep.subr.bf16.mxu0 %v6996_v3  ;;  %3358 = vmatprep.mubr.msk.bf16.mxu0 %vm4374_vm2, %v6996_v3 }
0x11b1   :  { %2374 = vmatpush1.bf16.msra.mxu1 %v5807_v57  ;;  %v7356_v57 = vld [vmem:[#allocation23_spill] sm:$0xff] }
0x11b2   :  { %2375 = vmatprep.subr.bf16.mxu1 %v5810_v42  ;;  %v7357_v42 = vld [vmem:[#allocation24_spill] sm:$0xff] }
0x11b3   :  { %3345 = vmatpush3.bf16.msra.mxu0 %v5813_v52  ;;  %v7358_v52 = vld [vmem:[#allocation25_spill] sm:$0xff] }
0x11b4   :  { %3346 = vmatprep.subr.bf16.mxu0 %v6996_v3 }
0x11b5   :  { %2376 = vmatpush1.bf16.msra.mxu1 %v5817_v32  ;;  %v7359_v32 = vld [vmem:[#allocation26_spill] sm:$0xff] }
0x11b6   :  { %2377 = vmatprep.subr.bf16.mxu1 %v5820_v12  ;;  %v7360_v12 = vld [vmem:[#allocation27_spill] sm:$0xff] }
0x11b7   :  { %3347 = vmatpush3.bf16.msra.mxu0 %v5823_v36  ;;  %v7361_v36 = vld [vmem:[#allocation29_spill] sm:$0xff] }
0x11b8   :  { %3348 = vmatprep.subr.bf16.mxu0 %v6996_v3 }
0x11b9   :  { %2378 = vmatpush1.bf16.msra.mxu1 %v5827_v38  ;;  %v7362_v38 = vld [vmem:[#allocation31_spill] sm:$0xff] }
0x11ba   :  { %2379 = vmatprep.subr.bf16.mxu1 %v5830_v10  ;;  %v7363_v10 = vld [vmem:[#allocation28_spill] sm:$0xff] }
0x11bb   :  { %3349 = vmatpush3.bf16.msra.mxu0 %v5833_v40  ;;  %v7364_v40 = vld [vmem:[#allocation33_spill] sm:$0xff] }
0x11bc   :  { %3350 = vmatprep.subr.bf16.mxu0 %v6996_v3 }
0x11bd   :  { %2380 = vmatpush1.bf16.msra.mxu1 %v5837_v34  ;;  %v7365_v34 = vld [vmem:[#allocation30_spill] sm:$0xff] }
0x11be   :  { %2381 = vmatprep.subr.bf16.mxu1 %v5840_v60  ;;  %v7366_v60 = vld [vmem:[#allocation35_spill] sm:$0xff] }
0x11bf   :  { %3351 = vmatpush3.bf16.msra.mxu0 %v5843_v41  ;;  %v7367_v41 = vld [vmem:[#allocation32_spill] sm:$0xff] }
0x11c0   :  { %3352 = vmatprep.subr.bf16.mxu0 %v6996_v3 }
0x11c1   :  { %2382 = vmatpush1.bf16.msra.mxu1 %v5847_v43  ;;  %v7368_v43 = vld [vmem:[#allocation37_spill] sm:$0xff] }
0x11c2   :  { %2383 = vmatprep.subr.bf16.mxu1 %v5850_v46  ;;  %v7369_v46 = vld [vmem:[#allocation34_spill] sm:$0xff] }
0x11c3   :  { %3353 = vmatpush3.bf16.msra.mxu0 %v6265_v25 }
0x11c4   :  { %3354 = vmatprep.subr.bf16.mxu0 %v6996_v3 }
0x11c5   :  { %2384 = vmatpush1.bf16.msra.mxu1 %v5855_v45  ;;  %v7370_v45 = vld [vmem:[#allocation39_spill] sm:$0xff] }
0x11c6   :  { %2385 = vmatprep.subr.bf16.mxu1 %v5858_v44  ;;  %v7371_v44 = vld [vmem:[#allocation36_spill] sm:$0xff] }
0x11c7   :  { %3355 = vmatpush3.bf16.msra.mxu0 %v5861_v37 }
0x11c8   :  { %3356 = vmatprep.subr.bf16.mxu0 %v6996_v3 }
0x11c9   :  { %2386 = vmatpush1.bf16.msra.mxu1 %v5865_v5 }
0x11ca   :  { %2387 = vmatprep.subr.bf16.mxu1 %v5868_v2 }
0x11cb   :  { %3357 = vmatpush3.bf16.msra.mxu0 %v6275_v39 }
0x11cc   :  { %2414 = vmatprep.subr.bf16.mxu0 %v5872_v8 }
0x11cd   :  { %2388 = vmatpush1.bf16.msra.mxu1 %v5875_v9 }
0x11ce   :  { %2389 = vmatprep.subr.bf16.mxu1 %v5878_v13 }
0x11d1   :  { %2390 = vmatpush1.bf16.msra.mxu1 %v7356_v57 }
0x11d2   :  { %2391 = vmatprep.subr.bf16.mxu1 %v7357_v42 }
0x11d5   :  { %2392 = vmatpush1.bf16.msra.mxu1 %v7358_v52 }
0x11d6   :  { %2393 = vmatprep.subr.bf16.mxu1 %v7359_v32 }
0x11d9   :  { %2394 = vmatpush1.bf16.msra.mxu1 %v7360_v12 }
0x11da   :  { %2395 = vmatprep.subr.bf16.mxu1 %v7361_v36 }
0x11dd   :  { %2396 = vmatpush1.bf16.msra.mxu1 %v7362_v38 }
0x11de   :  { %2397 = vmatprep.subr.bf16.mxu1 %v7363_v10 }
0x11e1   :  { %2398 = vmatpush1.bf16.msra.mxu1 %v7364_v40 }
0x11e2   :  { %2399 = vmatprep.subr.bf16.mxu1 %v7365_v34 }
0x11e5   :  { %2400 = vmatpush1.bf16.msra.mxu1 %v7366_v60  ;;  %v6309_v60 = vld [vmem:[#allocation5 + $0x8] ss:$16 sps:$4 sm:$0xff]  }
0x11e6   :  { %2401 = vmatprep.subr.bf16.mxu1 %v7367_v41  ;;  %v6312_v41 = vld [vmem:[#allocation5 + $0x2c] ss:$16 sps:$4 sm:$0xff]  }
0x11e9   :  { %2402 = vmatpush1.bf16.msra.mxu1 %v7368_v43  ;;  %v6318_v43 = vld [vmem:[#allocation5 + $0x4c] ss:$16 sps:$4 sm:$0xff]  }
0x11ea   :  { %2403 = vmatprep.subr.bf16.mxu1 %v7369_v46  ;;  %v6321_v46 = vld [vmem:[#allocation5 + $0x48] ss:$16 sps:$4 sm:$0xff]  }
0x11ed   :  { %2404 = vmatpush1.bf16.msra.mxu1 %v7370_v45  ;;  %v6327_v45 = vld [vmem:[#allocation5 + $0x68] ss:$16 sps:$4 sm:$0xff]  }
0x11ee   :  { %2480 = vmatprep.subr.bf16.mxu1 %v7371_v44  ;;  %v6330_v44 = vld [vmem:[#allocation5 + $0x8c] ss:$16 sps:$4 sm:$0xff]  }
0x1281   :  { %v2233_v37 = vpop.f32.mrb[44].mxu0  ;;  %v2274_v5 = vpop.f32.mrb[44].mxu1 }
0x1282   :  { %v2234_v2 = vadd.f32 %v2233_v37, %v4971_v22  ;;  %v2235_v8 = vpop.f32.mrb[45].mxu0  ;;  %v2276_v9 = vpop.f32.mrb[45].mxu1  ;;  %v2275_v1 = vadd.f32 %v2274_v5, %v4981_v50 }
0x1283   :  { %v2236_v13 = vadd.f32 %v2235_v8, %v4975_v26  ;;  %v2237_v28 = vpop.f32.mrb[46].mxu0  ;;  %v2278_v54 = vpop.f32.mrb[46].mxu1  ;;  %v2277_v14 = vadd.f32 %v2276_v9, %v4985_v51 }
0x1284   :  { %v3173_v35 = vmul.f32 -1.442695, %v2234_v2  ;;  %v2238_v0 = vpop.f32.mrb[47].mxu0  ;;  %v2279_v4 = vpop.f32.mrb[47].mxu1  ;;  %v3175_v19 = vmul.f32 -1.442695, %v2275_v1  ;;  %v2364_v1 = vstv %s2363_s6 }
0x1285   :  { %v3174_v62 = vmul.f32 -1.442695, %v2236_v13  ;;  %v7383_v28 = vld [vmem:[#allocation17_spill] sm:$0xff]  ;;  %v7384_v4 = vld [vmem:[#allocation19_spill] sm:$0xff] }
0x1286   :  { %3760 = vpow2.f32 %v3173_v35 }
0x1287   :  { %3762 = vpow2.f32 %v3174_v62 }
0x1288   :  { %3764 = vtanh.f32 %v2277_v14 }
0x1289   :  { %3766 = vpow2.f32 %v3175_v19  ;;  %v2367_v19 = vstv %s6371_s11 }
0x1290   :  { %v3761_v53 = vpop.eup %3760 }
0x1291   :  { %v2290_v55 = vadd.f32 1.0, %v3761_v53  ;;  %v3763_v17 = vpop.eup %3762 }
0x1292   :  { %v2291_v18 = vadd.f32 1.0, %v3763_v17  ;;  %v3765_v16 = vpop.eup %3764 }
0x1293   :  { %3768 = vrcp.f32 %v2290_v55  ;;  %v3767_v63 = vpop.eup %3766 }
0x1294   :  { %3770 = vrcp.f32 %v2291_v18  ;;  %v2292_v32 = vadd.f32 1.0, %v3767_v63  ;;  %v7385_v63 = vld [vmem:[#allocation54_spill] sm:$0xff] }
0x1296   :  { %3772 = vrcp.f32 %v2292_v32  ;;  %v7389_v32 = vld [vmem:[#allocation58_spill] sm:$0xff] }
0x129d   :  { %v3769_v57 = vpop.eup %3768 }
0x129e   :  { %v2301_v42 = vmul.f32 %v3769_v57, %v3765_v16  ;;  %v3771_v52 = vpop.eup %3770  ;;  %v7386_v57 = vld [vmem:[#allocation55_spill] sm:$0xff] }
0x129f   :  { %v2300_v12 = vmul.f32 %v3771_v52, %v5934_v21  ;;  %v6315_v21 = vld [vmem:[#allocation5 + $0x28] ss:$16 sps:$4 sm:$0xff]   ;;  %v7388_v52 = vld [vmem:[#allocation57_spill] sm:$0xff] }
0x12a0   :  { %v3773_v38 = vpop.eup %3772 }
0x12a1   :  { %v6302_v36 = vadd.f32 %v2301_v42, %v2300_v12  ;;  %v7387_v42 = vld [vmem:[#allocation56_spill] sm:$0xff]  ;;  %v7390_v12 = vld [vmem:[#allocation59_spill] sm:$0xff] }
0x12a3   :  { %3774 = vtanh.f32 %v6302_v36 }
0x12ad   :  { %v3775_v10 = vpop.eup %3774 }
0x12ae   :  { %v2304_v40 = vmul.f32 %v3775_v10, %v3773_v38  ;;  %v7391_v38 = vld [vmem:[#allocation60_spill] sm:$0xff]  ;;  %v7392_v10 = vld [vmem:[#allocation61_spill] sm:$0xff] }
0x12b0   :  { %v6305_v34 = vpack.c.bf16 %v2304_v40, %v2304_v40  ;;  %v7393_v40 = vld [vmem:[#allocation62_spill] sm:$0xff] }
0x12b2   :  { %3359 = vmatmul.mubr.bf16.vlgmr.msra.gmra.mrb[48].mxu0 %v6305_v34 }
0x12b3   :  { %2446 = vmatprep.mubr.bf16.mxu0 %v6238_v6  ;;  %2415 = vmatpush1.bf16.msra.mxu0 %v6309_v60  ;;  %v6324_v6 = vld [vmem:[#allocation5 + $0x6c] ss:$16 sps:$4 sm:$0xff]  }
0x12b4   :  { %2416 = vmatprep.subr.bf16.mxu0 %v6312_v41 }
0x12b7   :  { %2417 = vmatpush1.bf16.msra.mxu0 %v6315_v21 }
0x12b8   :  { %2418 = vmatprep.subr.bf16.mxu0 %v6318_v43 }
0x12bb   :  { %2419 = vmatpush1.bf16.msra.mxu0 %v6321_v46 }
0x12bc   :  { %2420 = vmatprep.subr.bf16.mxu0 %v6324_v6 }
0x12bf   :  { %2421 = vmatpush1.bf16.msra.mxu0 %v6327_v45 }
0x12c0   :  { %2422 = vmatprep.subr.bf16.mxu0 %v6330_v44 }
0x12c3   :  { %2423 = vmatpush1.bf16.msra.mxu0 %v5949_v7  ;;  %v7372_v7 = vld [vmem:[#allocation41_spill] sm:$0xff] }
0x12c4   :  { %2424 = vmatprep.subr.bf16.mxu0 %v5952_v33  ;;  %v7373_v33 = vld [vmem:[#allocation38_spill] sm:$0xff] }
0x12c7   :  { %2425 = vmatpush1.bf16.msra.mxu0 %v5955_v58  ;;  %v7374_v58 = vld [vmem:[#allocation42_spill] sm:$0xff] }
0x12c8   :  { %2426 = vmatprep.subr.bf16.mxu0 %v5958_v15  ;;  %v7375_v15 = vld [vmem:[#allocation40_spill] sm:$0xff] }
0x12cb   :  { %2427 = vmatpush1.bf16.msra.mxu0 %v5961_v48  ;;  %v7376_v48 = vld [vmem:[#allocation43_spill] sm:$0xff] }
0x12cc   :  { %2428 = vmatprep.subr.bf16.mxu0 %v5964_v49  ;;  %v7377_v49 = vld [vmem:[#allocation44_spill] sm:$0xff] }
0x12cf   :  { %2429 = vmatpush1.bf16.msra.mxu0 %v5967_v23  ;;  %v7378_v23 = vld [vmem:[#allocation45_spill] sm:$0xff] }
0x12d0   :  { %2430 = vmatprep.subr.bf16.mxu0 %v5970_v47  ;;  %v7379_v47 = vld [vmem:[#allocation46_spill] sm:$0xff] }
0x12d3   :  { %2431 = vmatpush1.bf16.msra.mxu0 %v5973_v24  ;;  %v7380_v24 = vld [vmem:[#allocation47_spill] sm:$0xff] }
0x12d4   :  { %2432 = vmatprep.subr.bf16.mxu0 %v5976_v27  ;;  %v7381_v27 = vld [vmem:[#allocation50_spill] sm:$0xff] }
0x12d7   :  { %2433 = vmatpush1.bf16.msra.mxu0 %v5979_v56  ;;  %v7382_v56 = vld [vmem:[#allocation51_spill] sm:$0xff] }
0x12d8   :  { %2434 = vmatprep.subr.bf16.mxu0 %v5982_v11 }
0x12db   :  { %2435 = vmatpush1.bf16.msra.mxu0 %v5985_v30  ;;  %v6360_v30 = vld [vmem:[%s6623_s7] sm:$0x1]  ;;  %s3177_s7 = sld [smem:[#allocation3 + $0x5]] }
0x12dc   :  { %2436 = vmatprep.subr.bf16.mxu0 %v7372_v7  ;;  %v7394_v7 = vld [vmem:[#allocation63_spill] sm:$0xff] }
0x12df   :  { %2437 = vmatpush1.bf16.msra.mxu0 %v7373_v33  ;;  %v7396_v33 = vld [vmem:[#allocation65_spill] sm:$0xff] }
0x12e0   :  { %2438 = vmatprep.subr.bf16.mxu0 %v7374_v58  ;;  %v7397_v58 = vld [vmem:[#allocation66_spill] sm:$0xff] }
0x12e1   :  { %v2358_v0 = vstv %s3177_s7 }
0x12e2   :  { %vm2359_vm4 = vcmp.eq.s32.totalorder %v7384_v4, %v2358_v0  ;;  %v7414_v0 = vld [vmem:[#allocation83_spill] sm:$0xff] }
0x12e3   :  { %2439 = vmatpush1.bf16.msra.mxu0 %v7375_v15  ;;  %v3178_v62 = vsel %vm2359_vm4, 1.0, %v6996_v3  ;;  %v7398_v15 = vld [vmem:[#allocation67_spill] sm:$0xff] }
0x12e4   :  { %2440 = vmatprep.subr.bf16.mxu0 %v7376_v48  ;;  %v6376_v55 = vmul.f32 %v3178_v62, %v2364_v1  ;;  %v7399_v48 = vld [vmem:[#allocation68_spill] sm:$0xff]  ;;  %v7416_v1 = vld [vmem:[#allocation85_spill] sm:$0xff] }
0x12e5   :  { %v7415_v62 = vld [vmem:[#allocation84_spill] sm:$0xff] }
0x12e7   :  { %2441 = vmatpush1.bf16.msra.mxu0 %v7377_v49  ;;  %v7400_v49 = vld [vmem:[#allocation69_spill] sm:$0xff] }
0x12e8   :  { %2442 = vmatprep.subr.bf16.mxu0 %v7378_v23  ;;  %v7401_v23 = vld [vmem:[#allocation70_spill] sm:$0xff] }
0x12eb   :  { %2443 = vmatpush1.bf16.msra.mxu0 %v7379_v47  ;;  %v7402_v47 = vld [vmem:[#allocation71_spill] sm:$0xff] }
0x12ec   :  { %2444 = vmatprep.subr.bf16.mxu0 %v7380_v24  ;;  %v7403_v24 = vld [vmem:[#allocation72_spill] sm:$0xff] }
0x12ef   :  { %2445 = vmatpush1.bf16.msra.mxu0 %v7381_v27  ;;  %v7404_v27 = vld [vmem:[#allocation73_spill] sm:$0xff] }
0x12f0   :  { %2521 = vmatprep.subr.bf16.mxu0 %v7382_v56  ;;  %v7405_v56 = vld [vmem:[#allocation74_spill] sm:$0xff] }
0x1385   :  { %v2340_v11 = vpop.f32.mrb[48].mxu0 }
0x1386   :  { %v6363_v37 = vadd.f32 %v6360_v30, %v2340_v11  ;;  %v3360_v5 = vpop.f32.mrb[49].mxu0  ;;  %v7406_v11 = vld [vmem:[#allocation75_spill] sm:$0xff] }
0x1387   :  { %v2343_v2 = vpop.f32.mrb[50].mxu0  ;;  %v7407_v5 = vld [vmem:[#allocation76_spill] sm:$0xff] }
0x1388   :  { %v3361_v8 = vpop.f32.mrb[51].mxu0  ;;  %v2346_v9 = vsel %vm1221_vm3, %v6363_v37, -inf  ;;  %v7408_v2 = vld [vmem:[#allocation77_spill] sm:$0xff] }
0x1389   :  { %2347 = vmax.xlane.f32.xlu0 %v2346_v9  ;;  %v7409_v8 = vld [vmem:[#allocation78_spill] sm:$0xff]  ;;  %v7410_v9 = vld [vmem:[#allocation79_spill] sm:$0xff] }
0x1416   :  { %v2348_v13 = vpop.xlane.xlu0 %2347 }
0x1417   :  { %vm2349_vm1 = vcmp.eq.f32.partialorder %v6363_v37, %v2348_v13  ;;  %v7411_v13 = vld [vmem:[#allocation80_spill] sm:$0xff] }
0x1418   :  { %v2350_v54 = vsel %vm2349_vm1, %v7383_v28, 128.0 }
0x1419   :  { %v2351_v35 = vsel %vm1221_vm3, %v2350_v54, inf }
0x141a   :  { %2352 = vmin.xlane.f32.xlu1 %v2351_v35  ;;  %v7413_v35 = vld [vmem:[#allocation82_spill] sm:$0xff] }
0x14a7   :  { %v2353_v14 = vpop.xlane.xlu1 %2352 }
0x14a8   :  { %vm2354_vm5 = vcmp.eq.f32.partialorder %v2350_v54, %v2353_v14  ;;  %v7412_v54 = vld [vmem:[#allocation81_spill] sm:$0xff]  ;;  %v7417_v14 = vld [vmem:[#allocation86_spill] sm:$0xff] }
0x14a9   :  { %v3176_v53 = vsel %vm2354_vm5, 1.0, %v6996_v3 }
0x14aa   :  { %v2370_v17 = vmul.f32 %v3176_v53, %v2367_v19  ;;  %v7418_v53 = vld [vmem:[#allocation87_spill] sm:$0xff] }
0x14ac   :  { %v2371_v18 = vadd.f32 %v2370_v17, %v6376_v55  ;;  %v7419_v17 = vld [vmem:[#allocation88_spill] sm:$0xff] }
0x14ae   :  { %v2372_v16 = vpack.c.bf16 %v2371_v18, %v2371_v18  ;;  %v7420_v18 = vld [vmem:[#allocation89_spill] sm:$0xff] }
0x14b0   :  { %2406 = vmatmul.mubr.bf16.vlgmr.msra.gmra.mrb[48].mxu1 %v2372_v16  ;;  %2447 = vmatmul.mubr.bf16.vlgmr.msra.gmra.mrb[52].mxu0 %v2372_v16  ;;  %v7421_v16 = vld [vmem:[#allocation90_spill] sm:$0xff] }
0x14b1   :  { %2512 = vmatprep.mubr.bf16.mxu1 %v6305_v34  ;;  %2553 = vmatprep.mubr.bf16.mxu0 %v6305_v34  ;;  %v7395_v34 = vld [vmem:[#allocation64_spill] sm:$0xff] }
0x14b2   :  { %2481 = vmatpush1.bf16.msra.mxu1 %v7385_v63  ;;  %2522 = vmatpush1.bf16.msra.mxu0 %v7386_v57  ;;  %v7422_v63 = vld [vmem:[#allocation91_spill] sm:$0xff]  ;;  %v7423_v57 = vld [vmem:[#allocation92_spill] sm:$0xff] }
0x14b3   :  { %2482 = vmatprep.subr.bf16.mxu1 %v7387_v42  ;;  %2523 = vmatprep.subr.bf16.mxu0 %v7388_v52  ;;  %v7424_v42 = vld [vmem:[#allocation93_spill] sm:$0xff]  ;;  %v7425_v52 = vld [vmem:[#allocation94_spill] sm:$0xff] }
0x14b6   :  { %2483 = vmatpush1.bf16.msra.mxu1 %v7389_v32  ;;  %2524 = vmatpush1.bf16.msra.mxu0 %v7390_v12  ;;  %v7426_v32 = vld [vmem:[#allocation95_spill] sm:$0xff]  ;;  %v7427_v12 = vld [vmem:[#allocation96_spill] sm:$0xff] }
0x14b7   :  { %2484 = vmatprep.subr.bf16.mxu1 %v7391_v38  ;;  %2525 = vmatprep.subr.bf16.mxu0 %v7392_v10  ;;  %v7428_v38 = vld [vmem:[#allocation97_spill] sm:$0xff]  ;;  %v7429_v10 = vld [vmem:[#allocation98_spill] sm:$0xff] }
0x14ba   :  { %2485 = vmatpush1.bf16.msra.mxu1 %v7393_v40  ;;  %2526 = vmatpush1.bf16.msra.mxu0 %v7394_v7  ;;  %v7430_v40 = vld [vmem:[#allocation99_spill] sm:$0xff]  ;;  %v7431_v7 = vld [vmem:[#allocation100_spill] sm:$0xff] }
0x14bb   :  { %2486 = vmatprep.subr.bf16.mxu1 %v7395_v34  ;;  %2527 = vmatprep.subr.bf16.mxu0 %v7396_v33  ;;  %v7432_v34 = vld [vmem:[#allocation101_spill] sm:$0xff]  ;;  %v7433_v33 = vld [vmem:[#allocation102_spill] sm:$0xff] }
0x14be   :  { %2487 = vmatpush1.bf16.msra.mxu1 %v7397_v58  ;;  %2528 = vmatpush1.bf16.msra.mxu0 %v7398_v15  ;;  %v7434_v58 = vld [vmem:[#allocation103_spill] sm:$0xff]  ;;  %v7435_v15 = vld [vmem:[#allocation104_spill] sm:$0xff] }
0x14bf   :  { %2488 = vmatprep.subr.bf16.mxu1 %v7399_v48  ;;  %2529 = vmatprep.subr.bf16.mxu0 %v7400_v49  ;;  %v7436_v48 = vld [vmem:[#allocation105_spill] sm:$0xff]  ;;  %v7437_v49 = vld [vmem:[#allocation106_spill] sm:$0xff] }
0x14c2   :  { %2489 = vmatpush1.bf16.msra.mxu1 %v7401_v23  ;;  %2530 = vmatpush1.bf16.msra.mxu0 %v7402_v47  ;;  %v7438_v23 = vld [vmem:[#allocation107_spill] sm:$0xff]  ;;  %v7439_v47 = vld [vmem:[#allocation108_spill] sm:$0xff] }
0x14c3   :  { %2490 = vmatprep.subr.bf16.mxu1 %v7403_v24  ;;  %2531 = vmatprep.subr.bf16.mxu0 %v7404_v27  ;;  %v7440_v24 = vld [vmem:[#allocation109_spill] sm:$0xff]  ;;  %v7441_v27 = vld [vmem:[#allocation110_spill] sm:$0xff] }
0x14c6   :  { %2491 = vmatpush1.bf16.msra.mxu1 %v7405_v56  ;;  %2532 = vmatpush1.bf16.msra.mxu0 %v7406_v11  ;;  %v7442_v56 = vld [vmem:[#allocation111_spill] sm:$0xff]  ;;  %v7443_v11 = vld [vmem:[#allocation112_spill] sm:$0xff] }
0x14c7   :  { %2492 = vmatprep.subr.bf16.mxu1 %v7407_v5  ;;  %2533 = vmatprep.subr.bf16.mxu0 %v7408_v2  ;;  %v7444_v5 = vld [vmem:[#allocation113_spill] sm:$0xff]  ;;  %v7445_v2 = vld [vmem:[#allocation114_spill] sm:$0xff] }
0x14ca   :  { %2493 = vmatpush1.bf16.msra.mxu1 %v7409_v8  ;;  %2534 = vmatpush1.bf16.msra.mxu0 %v7410_v9  ;;  %v7446_v8 = vld [vmem:[#allocation115_spill] sm:$0xff] }
0x14cb   :  { %2494 = vmatprep.subr.bf16.mxu1 %v7411_v13  ;;  %2535 = vmatprep.subr.bf16.mxu0 %v7412_v54  ;;  %v4116_v9 = vld [vmem:[#allocation5 + $0x4] ss:$16 sps:$4 sm:$0xff]  }
0x14ce   :  { %2495 = vmatpush1.bf16.msra.mxu1 %v7413_v35  ;;  %2536 = vmatpush1.bf16.msra.mxu0 %v7414_v0 }
0x14cf   :  { %2496 = vmatprep.subr.bf16.mxu1 %v7415_v62  ;;  %2537 = vmatprep.subr.bf16.mxu0 %v7416_v1 }
0x14d2   :  { %2497 = vmatpush1.bf16.msra.mxu1 %v7417_v14  ;;  %2538 = vmatpush1.bf16.msra.mxu0 %v7418_v53 }
0x14d3   :  { %2498 = vmatprep.subr.bf16.mxu1 %v7419_v17  ;;  %2539 = vmatprep.subr.bf16.mxu0 %v7420_v18 }
0x14d6   :  { %2499 = vmatpush1.bf16.msra.mxu1 %v7421_v16  ;;  %2540 = vmatpush1.bf16.msra.mxu0 %v7422_v63 }
0x14d7   :  { %2500 = vmatprep.subr.bf16.mxu1 %v7423_v57  ;;  %2541 = vmatprep.subr.bf16.mxu0 %v7424_v42 }
0x14da   :  { %2501 = vmatpush1.bf16.msra.mxu1 %v7425_v52  ;;  %2542 = vmatpush1.bf16.msra.mxu0 %v7426_v32 }
0x14db   :  { %2502 = vmatprep.subr.bf16.mxu1 %v7427_v12  ;;  %2543 = vmatprep.subr.bf16.mxu0 %v7428_v38 }
0x14de   :  { %2503 = vmatpush1.bf16.msra.mxu1 %v7429_v10  ;;  %2544 = vmatpush1.bf16.msra.mxu0 %v7430_v40 }
0x14df   :  { %2504 = vmatprep.subr.bf16.mxu1 %v7431_v7  ;;  %2545 = vmatprep.subr.bf16.mxu0 %v7432_v34 }
0x14e2   :  { %2505 = vmatpush1.bf16.msra.mxu1 %v7433_v33  ;;  %2546 = vmatpush1.bf16.msra.mxu0 %v7434_v58 }
0x14e3   :  { %2506 = vmatprep.subr.bf16.mxu1 %v7435_v15  ;;  %2547 = vmatprep.subr.bf16.mxu0 %v7436_v48 }
0x14e6   :  { %2507 = vmatpush1.bf16.msra.mxu1 %v7437_v49  ;;  %2548 = vmatpush1.bf16.msra.mxu0 %v7438_v23 }
0x14e7   :  { %2508 = vmatprep.subr.bf16.mxu1 %v7439_v47  ;;  %2549 = vmatprep.subr.bf16.mxu0 %v7440_v24 }
0x14ea   :  { %2509 = vmatpush1.bf16.msra.mxu1 %v7441_v27  ;;  %2550 = vmatpush1.bf16.msra.mxu0 %v7442_v56  ;;  %v6459_v56 = vld [vmem:[#allocation10] sm:$0xff]  }
0x14eb   :  { %2510 = vmatprep.subr.bf16.mxu1 %v7443_v11  ;;  %2551 = vmatprep.subr.bf16.mxu0 %v7444_v5  ;;  %v4119_v11 = vld [vmem:[#allocation5 + $0x24] ss:$16 sps:$4 sm:$0xff]   ;;  %v6465_v5 = vld [vmem:[#allocation10 + $0x8] sm:$0xff]  }
0x14ee   :  { %2511 = vmatpush1.bf16.msra.mxu1 %v7445_v2  ;;  %2552 = vmatpush1.bf16.msra.mxu0 %v7446_v8  ;;  %v4121_v2 = vld [vmem:[#allocation5 + $0x20] ss:$16 sps:$4 sm:$0xff]   ;;  %v4122_v8 = vld [vmem:[#allocation5 + $0x44] ss:$16 sps:$4 sm:$0xff]  }
0x14ef   :  { %3362 = vmatprep.subr.bf16.mxu1 %v6996_v3  ;;  %2654 = vmatprep.subr.bf16.mxu0 %v4116_v9  ;;  %v6469_v9 = vld [vmem:[#allocation10 + $0x10] sm:$0xff]  }
0x1583   :  { %v2407_v13 = vpop.f32.mrb[48].mxu1  ;;  %v2448_v54 = vpop.f32.mrb[52].mxu0 }
0x1584   :  { %v2408_v35 = vadd.f32 %v2407_v13, %v7078_v20  ;;  %v2409_v0 = vpop.f32.mrb[49].mxu1  ;;  %v2450_v62 = vpop.f32.mrb[53].mxu0  ;;  %v2449_v57 = vadd.f32 %v2448_v54, %v7080_v31  ;;  %v4124_v13 = vld [vmem:[#allocation5 + $0x40] ss:$16 sps:$4 sm:$0xff]   ;;  %v4125_v54 = vld [vmem:[#allocation5 + $0x64] ss:$16 sps:$4 sm:$0xff]  }
0x1585   :  { %v2410_v1 = vadd.f32 %v2409_v0, %v7079_v61  ;;  %v2411_v14 = vpop.f32.mrb[50].mxu1  ;;  %v2452_v53 = vpop.f32.mrb[54].mxu0  ;;  %v2451_v42 = vadd.f32 %v2450_v62, %v4889_v59  ;;  %v4127_v0 = vld [vmem:[#allocation5 + $0x60] ss:$16 sps:$4 sm:$0xff]   ;;  %v4128_v62 = vld [vmem:[#allocation5 + $0x84] ss:$16 sps:$4 sm:$0xff]  }
0x1586   :  { %v3180_v17 = vmul.f32 -1.442695, %v2408_v35  ;;  %v2412_v18 = vpop.f32.mrb[51].mxu1  ;;  %v2453_v16 = vpop.f32.mrb[55].mxu0  ;;  %v3182_v52 = vmul.f32 -1.442695, %v2449_v57 }
0x1587   :  { %v3181_v63 = vmul.f32 -1.442695, %v2410_v1  ;;  %v6473_v35 = vld [vmem:[#allocation10 + $0x18] sm:$0xff]   ;;  %v6477_v1 = vld [vmem:[#allocation10 + $0x20] sm:$0xff]   ;;  %v6483_v16 = vld [vmem:[#allocation10 + $0x30] sm:$0xff]  }
0x1588   :  { %3776 = vpow2.f32 %v3180_v17  ;;  %v4130_v14 = vld [vmem:[#allocation5 + $0x80] ss:$16 sps:$4 sm:$0xff]   ;;  %v4131_v53 = vld [vmem:[#allocation5 + $0xa4] ss:$16 sps:$4 sm:$0xff]  }
0x1589   :  { %3778 = vpow2.f32 %v3181_v63  ;;  %v4132_v17 = vld [vmem:[#allocation5 + $0xa0] ss:$16 sps:$4 sm:$0xff]   ;;  %v4133_v18 = vld [vmem:[#allocation5 + $0xc4] ss:$16 sps:$4 sm:$0xff]  }
0x158a   :  { %3780 = vtanh.f32 %v2451_v42  ;;  %v4135_v63 = vld [vmem:[#allocation5 + $0xc0] ss:$16 sps:$4 sm:$0xff]   ;;  %v4136_v57 = vld [vmem:[#allocation5 + $0xe4] ss:$16 sps:$4 sm:$0xff]   ;;  %v4137_v42 = vld [vmem:[#allocation5 + $0xc] ss:$16 sps:$4 sm:$0xff]  }
0x158b   :  { %3782 = vpow2.f32 %v3182_v52  ;;  %v4138_v52 = vld [vmem:[#allocation5 + $0xe0] ss:$16 sps:$4 sm:$0xff]  }
0x1592   :  { %v3777_v32 = vpop.eup %3776 }
0x1593   :  { %v2464_v12 = vadd.f32 1.0, %v3777_v32  ;;  %v3779_v38 = vpop.eup %3778  ;;  %v4139_v32 = vld [vmem:[#allocation5 + $0x104] ss:$16 sps:$4 sm:$0xff]  }
0x1594   :  { %v2465_v10 = vadd.f32 1.0, %v3779_v38  ;;  %v3781_v40 = vpop.eup %3780  ;;  %v4141_v38 = vld [vmem:[#allocation5 + $0x124] ss:$16 sps:$4 sm:$0xff]  }
0x1595   :  { %3784 = vrcp.f32 %v2464_v12  ;;  %v3783_v7 = vpop.eup %3782  ;;  %v4140_v12 = vld [vmem:[#allocation5 + $0x100] ss:$16 sps:$4 sm:$0xff]  }
0x1596   :  { %3786 = vrcp.f32 %v2465_v10  ;;  %v2466_v15 = vadd.f32 1.0, %v3783_v7  ;;  %v4142_v10 = vld [vmem:[#allocation5 + $0x120] ss:$16 sps:$4 sm:$0xff]  }
0x1597   :  { %v4144_v7 = vld [vmem:[#allocation5 + $0x140] ss:$16 sps:$4 sm:$0xff]  }
0x1598   :  { %3788 = vrcp.f32 %v2466_v15  ;;  %v4148_v15 = vld [vmem:[#allocation5 + $0x180] ss:$16 sps:$4 sm:$0xff]  }
0x159f   :  { %v3785_v34 = vpop.eup %3784 }
0x15a0   :  { %v2475_v33 = vmul.f32 %v3785_v34, %v3781_v40  ;;  %v3787_v58 = vpop.eup %3786  ;;  %v4143_v40 = vld [vmem:[#allocation5 + $0x144] ss:$16 sps:$4 sm:$0xff]  }
0x15a1   :  { %v2474_v48 = vmul.f32 %v3787_v58, %v6235_v29  ;;  %v4118_v29 = vld [vmem:[#allocation5] ss:$16 sps:$4 sm:$0xff]   ;;  %v4145_v34 = vld [vmem:[#allocation5 + $0x164] ss:$16 sps:$4 sm:$0xff]  }
0x15a2   :  { %v3789_v23 = vpop.eup %3788  ;;  %v4147_v58 = vld [vmem:[#allocation5 + $0x184] ss:$16 sps:$4 sm:$0xff]  }
0x15a3   :  { %v6451_v49 = vadd.f32 %v2475_v33, %v2474_v48  ;;  %v4146_v33 = vld [vmem:[#allocation5 + $0x160] ss:$16 sps:$4 sm:$0xff]   ;;  %v4149_v48 = vld [vmem:[#allocation5 + $0x1a4] ss:$16 sps:$4 sm:$0xff]  }
0x15a5   :  { %3790 = vtanh.f32 %v6451_v49 }
0x15af   :  { %v3791_v47 = vpop.eup %3790 }
0x15b0   :  { %v2478_v24 = vmul.f32 %v3791_v47, %v3789_v23  ;;  %v4150_v23 = vld [vmem:[#allocation5 + $0x1a0] ss:$16 sps:$4 sm:$0xff]   ;;  %v4151_v47 = vld [vmem:[#allocation5 + $0x1c4] ss:$16 sps:$4 sm:$0xff]  }
0x15b2   :  { %v6454_v27 = vpack.c.bf16 %v2478_v24, %v2478_v24  ;;  %v4152_v24 = vld [vmem:[#allocation5 + $0x1c0] ss:$16 sps:$4 sm:$0xff]  }
0x15b4   :  { %2513 = vmatmul.mubr.bf16.vlgmr.msra.gmra.mrb[52].mxu1 %v6454_v27  ;;  %2554 = vmatmul.mubr.bf16.vlgmr.msra.gmra.mrb[56].mxu0 %v6454_v27 }
0x15b5   :  { %2686 = vmatprep.mubr.bf16.mxu0 %v6454_v27  ;;  %3363 = vmatpush3.bf16.msra.mxu1 %v6459_v56 }
0x15b6   :  { %3364 = vmatprep.subr.bf16.mxu1 %v6996_v3  ;;  %3378 = vmatprep.mubr.msk.bf16.mxu1 %vm4374_vm2, %v6996_v3 }
0x15b7   :  { %2655 = vmatpush1.bf16.msra.mxu0 %v4118_v29  ;;  %v4153_v29 = vld [vmem:[#allocation5 + $0x1e4] ss:$16 sps:$4 sm:$0xff]  }
0x15b8   :  { %2656 = vmatprep.subr.bf16.mxu0 %v4119_v11  ;;  %v4154_v11 = vld [vmem:[#allocation5 + $0x1e0] ss:$16 sps:$4 sm:$0xff]  }
0x15b9   :  { %3365 = vmatpush3.bf16.msra.mxu1 %v6465_v5 }
0x15ba   :  { %3366 = vmatprep.subr.bf16.mxu1 %v6996_v3 }
0x15bb   :  { %2657 = vmatpush1.bf16.msra.mxu0 %v4121_v2  ;;  %v4155_v2 = vld [vmem:[#allocation8 + $0x4] ss:$16 sps:$4 sm:$0xff]  }
0x15bc   :  { %2658 = vmatprep.subr.bf16.mxu0 %v4122_v8 }
0x15bd   :  { %3367 = vmatpush3.bf16.msra.mxu1 %v6469_v9 }
0x15be   :  { %3368 = vmatprep.subr.bf16.mxu1 %v6996_v3 }
0x15bf   :  { %2659 = vmatpush1.bf16.msra.mxu0 %v4124_v13 }
0x15c0   :  { %2660 = vmatprep.subr.bf16.mxu0 %v4125_v54 }
0x15c1   :  { %3369 = vmatpush3.bf16.msra.mxu1 %v6473_v35 }
0x15c2   :  { %3370 = vmatprep.subr.bf16.mxu1 %v6996_v3 }
0x15c3   :  { %2661 = vmatpush1.bf16.msra.mxu0 %v4127_v0 }
0x15c4   :  { %2662 = vmatprep.subr.bf16.mxu0 %v4128_v62 }
0x15c5   :  { %3371 = vmatpush3.bf16.msra.mxu1 %v6477_v1 }
0x15c6   :  { %3372 = vmatprep.subr.bf16.mxu1 %v6996_v3 }
0x15c7   :  { %2663 = vmatpush1.bf16.msra.mxu0 %v4130_v14 }
0x15c8   :  { %2664 = vmatprep.subr.bf16.mxu0 %v4131_v53 }
0x15c9   :  { %3373 = vmatpush3.bf16.msra.mxu1 %v6265_v25 }
0x15ca   :  { %3374 = vmatprep.subr.bf16.mxu1 %v6996_v3 }
0x15cb   :  { %2665 = vmatpush1.bf16.msra.mxu0 %v4132_v17 }
0x15cc   :  { %2666 = vmatprep.subr.bf16.mxu0 %v4133_v18 }
0x15cd   :  { %3375 = vmatpush3.bf16.msra.mxu1 %v6483_v16 }
0x15ce   :  { %3376 = vmatprep.subr.bf16.mxu1 %v6996_v3 }
0x15cf   :  { %2667 = vmatpush1.bf16.msra.mxu0 %v4135_v63 }
0x15d0   :  { %2668 = vmatprep.subr.bf16.mxu0 %v4136_v57 }
0x15d1   :  { %3377 = vmatpush3.bf16.msra.mxu1 %v6275_v39 }
0x15d2   :  { %2695 = vmatprep.subr.bf16.mxu1 %v4137_v42 }
0x15d3   :  { %2669 = vmatpush1.bf16.msra.mxu0 %v4138_v52 }
0x15d4   :  { %2670 = vmatprep.subr.bf16.mxu0 %v4139_v32 }
0x15d7   :  { %2671 = vmatpush1.bf16.msra.mxu0 %v4140_v12 }
0x15d8   :  { %2672 = vmatprep.subr.bf16.mxu0 %v4141_v38 }
0x15db   :  { %2673 = vmatpush1.bf16.msra.mxu0 %v4142_v10 }
0x15dc   :  { %2674 = vmatprep.subr.bf16.mxu0 %v4143_v40 }
0x15df   :  { %2675 = vmatpush1.bf16.msra.mxu0 %v4144_v7 }
0x15e0   :  { %2676 = vmatprep.subr.bf16.mxu0 %v4145_v34 }
0x15e3   :  { %2677 = vmatpush1.bf16.msra.mxu0 %v4146_v33 }
0x15e4   :  { %2678 = vmatprep.subr.bf16.mxu0 %v4147_v58 }
0x15e7   :  { %2679 = vmatpush1.bf16.msra.mxu0 %v4148_v15 }
0x15e8   :  { %2680 = vmatprep.subr.bf16.mxu0 %v4149_v48 }
0x15eb   :  { %2681 = vmatpush1.bf16.msra.mxu0 %v4150_v23 }
0x15ec   :  { %2682 = vmatprep.subr.bf16.mxu0 %v4151_v47 }
0x15ef   :  { %2683 = vmatpush1.bf16.msra.mxu0 %v4152_v24 }
0x15f0   :  { %2684 = vmatprep.subr.bf16.mxu0 %v4153_v29 }
0x15f3   :  { %2685 = vmatpush1.bf16.msra.mxu0 %v4154_v11 }
0x15f4   :  { %2761 = vmatprep.subr.bf16.mxu0 %v4155_v2 }
0x1687   :  { %v2514_v8 = vpop.f32.mrb[52].mxu1  ;;  %v2555_v13 = vpop.f32.mrb[56].mxu0 }
0x1688   :  { %v2515_v54 = vadd.f32 %v2514_v8, %v4971_v22  ;;  %v2516_v0 = vpop.f32.mrb[53].mxu1  ;;  %v2557_v62 = vpop.f32.mrb[57].mxu0  ;;  %v2556_v52 = vadd.f32 %v2555_v13, %v4981_v50  ;;  %v4157_v13 = vld [vmem:[#allocation5 + $0xac] ss:$16 sps:$4 sm:$0xff]  }
0x1689   :  { %v2517_v14 = vadd.f32 %v2516_v0, %v4975_v26  ;;  %v2518_v53 = vpop.f32.mrb[54].mxu1  ;;  %v2559_v17 = vpop.f32.mrb[58].mxu0  ;;  %v2558_v32 = vadd.f32 %v2557_v62, %v4985_v51  ;;  %v4168_v0 = vld [vmem:[#allocation5 + $0x148] ss:$16 sps:$4 sm:$0xff]   ;;  %v4169_v62 = vld [vmem:[#allocation5 + $0x16c] ss:$16 sps:$4 sm:$0xff]  }
0x168a   :  { %v3183_v18 = vmul.f32 -1.442695, %v2515_v54  ;;  %v2519_v63 = vpop.f32.mrb[55].mxu1  ;;  %v2560_v57 = vpop.f32.mrb[59].mxu0  ;;  %v3185_v12 = vmul.f32 -1.442695, %v2556_v52 }
0x168b   :  { %v3184_v42 = vmul.f32 -1.442695, %v2517_v14  ;;  %v4167_v54 = vld [vmem:[#allocation5 + $0x14c] ss:$16 sps:$4 sm:$0xff]   ;;  %v4170_v14 = vld [vmem:[#allocation5 + $0x168] ss:$16 sps:$4 sm:$0xff]  }
0x168c   :  { %3792 = vpow2.f32 %v3183_v18  ;;  %v4171_v53 = vld [vmem:[#allocation5 + $0x18c] ss:$16 sps:$4 sm:$0xff]   ;;  %v4172_v17 = vld [vmem:[#allocation5 + $0x188] ss:$16 sps:$4 sm:$0xff]  }
0x168d   :  { %3794 = vpow2.f32 %v3184_v42  ;;  %v4173_v18 = vld [vmem:[#allocation5 + $0x1ac] ss:$16 sps:$4 sm:$0xff]   ;;  %v4174_v63 = vld [vmem:[#allocation5 + $0x1a8] ss:$16 sps:$4 sm:$0xff]  }
0x168e   :  { %3796 = vtanh.f32 %v2558_v32  ;;  %v4175_v57 = vld [vmem:[#allocation5 + $0x1cc] ss:$16 sps:$4 sm:$0xff]   ;;  %v4176_v42 = vld [vmem:[#allocation5 + $0x1c8] ss:$16 sps:$4 sm:$0xff]  }
0x168f   :  { %3798 = vpow2.f32 %v3185_v12  ;;  %v4177_v52 = vld [vmem:[#allocation5 + $0x1ec] ss:$16 sps:$4 sm:$0xff]   ;;  %v4178_v32 = vld [vmem:[#allocation5 + $0x1e8] ss:$16 sps:$4 sm:$0xff]  }
0x1690   :  { %v4179_v12 = vld [vmem:[#allocation8 + $0xc] ss:$16 sps:$4 sm:$0xff]  }
0x1696   :  { %v3793_v38 = vpop.eup %3792 }
0x1697   :  { %v2571_v10 = vadd.f32 1.0, %v3793_v38  ;;  %v3795_v40 = vpop.eup %3794 }
0x1698   :  { %v2572_v7 = vadd.f32 1.0, %v3795_v40  ;;  %v3797_v34 = vpop.eup %3796 }
0x1699   :  { %3800 = vrcp.f32 %v2571_v10  ;;  %v3799_v33 = vpop.eup %3798 }
0x169a   :  { %3802 = vrcp.f32 %v2572_v7  ;;  %v2573_v23 = vadd.f32 1.0, %v3799_v33 }
0x169c   :  { %3804 = vrcp.f32 %v2573_v23  ;;  %v2639_v23 = vstv %s3187_s12 }
0x169d   :  { %vm2640_vm7 = vcmp.eq.s32.totalorder %v7384_v4, %v2639_v23  ;;  %v4209_v23 = vld [vmem:[#allocation8 + $0xe8] ss:$16 sps:$4 sm:$0xff]  }
0x16a3   :  { %v3801_v58 = vpop.eup %3800 }
0x16a4   :  { %v2582_v15 = vmul.f32 %v3801_v58, %v3797_v34  ;;  %v3803_v48 = vpop.eup %3802 }
0x16a5   :  { %v2581_v47 = vmul.f32 %v3803_v48, %v6302_v36  ;;  %v4156_v36 = vld [vmem:[#allocation5 + $0x88] ss:$16 sps:$4 sm:$0xff]  }
0x16a6   :  { %v3805_v29 = vpop.eup %3804 }
0x16a7   :  { %v6493_v24 = vadd.f32 %v2582_v15, %v2581_v47  ;;  %v3188_v47 = vsel %vm2640_vm7, 1.0, %v6996_v3 }
0x16a9   :  { %3806 = vtanh.f32 %v6493_v24 }
0x16b3   :  { %v3807_v11 = vpop.eup %3806 }
0x16b4   :  { %v2585_v2 = vmul.f32 %v3807_v11, %v3805_v29  ;;  %v2645_v29 = vstv %s2644_s13 }
0x16b6   :  { %v6496_v8 = vpack.c.bf16 %v2585_v2, %v2585_v2  ;;  %v2648_v2 = vstv %s6517_s5 }
0x16b8   :  { %3379 = vmatmul.mubr.bf16.vlgmr.msra.gmra.mrb[56].mxu1 %v6496_v8 }
0x16b9   :  { %2727 = vmatprep.mubr.bf16.mxu1 %v6454_v27  ;;  %2696 = vmatpush1.bf16.msra.mxu1 %v6309_v60  ;;  %v4158_v27 = vld [vmem:[#allocation5 + $0xa8] ss:$16 sps:$4 sm:$0xff]   ;;  %v4159_v60 = vld [vmem:[#allocation5 + $0xcc] ss:$16 sps:$4 sm:$0xff]  }
0x16ba   :  { %2697 = vmatprep.subr.bf16.mxu1 %v6312_v41  ;;  %v4160_v41 = vld [vmem:[#allocation5 + $0xc8] ss:$16 sps:$4 sm:$0xff]  }
0x16bd   :  { %2698 = vmatpush1.bf16.msra.mxu1 %v6315_v21  ;;  %v4161_v21 = vld [vmem:[#allocation5 + $0xec] ss:$16 sps:$4 sm:$0xff]  }
0x16be   :  { %2699 = vmatprep.subr.bf16.mxu1 %v6318_v43  ;;  %v4162_v43 = vld [vmem:[#allocation5 + $0xe8] ss:$16 sps:$4 sm:$0xff]  }
0x16c1   :  { %2700 = vmatpush1.bf16.msra.mxu1 %v6321_v46  ;;  %v4163_v46 = vld [vmem:[#allocation5 + $0x10c] ss:$16 sps:$4 sm:$0xff]  }
0x16c2   :  { %2701 = vmatprep.subr.bf16.mxu1 %v6324_v6  ;;  %v4164_v6 = vld [vmem:[#allocation5 + $0x108] ss:$16 sps:$4 sm:$0xff]  }
0x16c5   :  { %2702 = vmatpush1.bf16.msra.mxu1 %v6327_v45  ;;  %v4165_v45 = vld [vmem:[#allocation5 + $0x12c] ss:$16 sps:$4 sm:$0xff]  }
0x16c6   :  { %2703 = vmatprep.subr.bf16.mxu1 %v6330_v44  ;;  %v4166_v44 = vld [vmem:[#allocation5 + $0x128] ss:$16 sps:$4 sm:$0xff]  }
0x16c9   :  { %2704 = vmatpush1.bf16.msra.mxu1 %v4156_v36  ;;  %v6522_v36 = vmul.f32 %v3188_v47, %v2645_v29  ;;  %v4210_v47 = vld [vmem:[#allocation8 + $0x104] ss:$16 sps:$4 sm:$0xff]   ;;  %v4211_v29 = vld [vmem:[#allocation8 + $0x10c] ss:$16 sps:$4 sm:$0xff]  }
0x16ca   :  { %2705 = vmatprep.subr.bf16.mxu1 %v4157_v13 }
0x16cd   :  { %2706 = vmatpush1.bf16.msra.mxu1 %v4158_v27 }
0x16ce   :  { %2707 = vmatprep.subr.bf16.mxu1 %v4159_v60 }
0x16d1   :  { %2708 = vmatpush1.bf16.msra.mxu1 %v4160_v41  ;;  %v4180_v41 = vld [vmem:[#allocation8] ss:$16 sps:$4 sm:$0xff]  }
0x16d2   :  { %2709 = vmatprep.subr.bf16.mxu1 %v4161_v21  ;;  %v4181_v21 = vld [vmem:[#allocation8 + $0x8] ss:$16 sps:$4 sm:$0xff]  }
0x16d5   :  { %2710 = vmatpush1.bf16.msra.mxu1 %v4162_v43  ;;  %v4182_v43 = vld [vmem:[#allocation8 + $0x24] ss:$16 sps:$4 sm:$0xff]  }
0x16d6   :  { %2711 = vmatprep.subr.bf16.mxu1 %v4163_v46  ;;  %v4183_v46 = vld [vmem:[#allocation8 + $0x2c] ss:$16 sps:$4 sm:$0xff]  }
0x16d9   :  { %2712 = vmatpush1.bf16.msra.mxu1 %v4164_v6  ;;  %v4184_v6 = vld [vmem:[#allocation8 + $0x20] ss:$16 sps:$4 sm:$0xff]  }
0x16da   :  { %2713 = vmatprep.subr.bf16.mxu1 %v4165_v45  ;;  %v4185_v45 = vld [vmem:[#allocation8 + $0x28] ss:$16 sps:$4 sm:$0xff]  }
0x16dd   :  { %2714 = vmatpush1.bf16.msra.mxu1 %v4166_v44  ;;  %v4186_v44 = vld [vmem:[#allocation8 + $0x44] ss:$16 sps:$4 sm:$0xff]  }
0x16de   :  { %2715 = vmatprep.subr.bf16.mxu1 %v4167_v54  ;;  %v4187_v54 = vld [vmem:[#allocation8 + $0x4c] ss:$16 sps:$4 sm:$0xff]  }
0x16e1   :  { %2716 = vmatpush1.bf16.msra.mxu1 %v4168_v0  ;;  %v4188_v0 = vld [vmem:[#allocation8 + $0x40] ss:$16 sps:$4 sm:$0xff]  }
0x16e2   :  { %2717 = vmatprep.subr.bf16.mxu1 %v4169_v62  ;;  %v4189_v62 = vld [vmem:[#allocation8 + $0x48] ss:$16 sps:$4 sm:$0xff]  }
0x16e5   :  { %2718 = vmatpush1.bf16.msra.mxu1 %v4170_v14  ;;  %v4191_v14 = vld [vmem:[#allocation8 + $0x6c] ss:$16 sps:$4 sm:$0xff]  }
0x16e6   :  { %2719 = vmatprep.subr.bf16.mxu1 %v4171_v53  ;;  %v4192_v53 = vld [vmem:[#allocation8 + $0x60] ss:$16 sps:$4 sm:$0xff]  }
0x16e9   :  { %2720 = vmatpush1.bf16.msra.mxu1 %v4172_v17  ;;  %v4193_v17 = vld [vmem:[#allocation8 + $0x68] ss:$16 sps:$4 sm:$0xff]  }
0x16ea   :  { %2721 = vmatprep.subr.bf16.mxu1 %v4173_v18  ;;  %v4194_v18 = vld [vmem:[#allocation8 + $0x84] ss:$16 sps:$4 sm:$0xff]  }
0x16ed   :  { %2722 = vmatpush1.bf16.msra.mxu1 %v4174_v63  ;;  %v4195_v63 = vld [vmem:[#allocation8 + $0x8c] ss:$16 sps:$4 sm:$0xff]  }
0x16ee   :  { %2723 = vmatprep.subr.bf16.mxu1 %v4175_v57  ;;  %v4196_v57 = vld [vmem:[#allocation8 + $0x80] ss:$16 sps:$4 sm:$0xff]  }
0x16f1   :  { %2724 = vmatpush1.bf16.msra.mxu1 %v4176_v42  ;;  %v4197_v42 = vld [vmem:[#allocation8 + $0x88] ss:$16 sps:$4 sm:$0xff]  }
0x16f2   :  { %2725 = vmatprep.subr.bf16.mxu1 %v4177_v52  ;;  %v4198_v52 = vld [vmem:[#allocation8 + $0xa4] ss:$16 sps:$4 sm:$0xff]  }
0x16f5   :  { %2726 = vmatpush1.bf16.msra.mxu1 %v4178_v32  ;;  %v4199_v32 = vld [vmem:[#allocation8 + $0xac] ss:$16 sps:$4 sm:$0xff]  }
0x16f6   :  { %2802 = vmatprep.subr.bf16.mxu1 %v4179_v12  ;;  %v4200_v12 = vld [vmem:[#allocation8 + $0xa0] ss:$16 sps:$4 sm:$0xff]  }
0x178b   :  { %v2621_v38 = vpop.f32.mrb[56].mxu1 }
0x178c   :  { %v6509_v10 = vadd.f32 %v6360_v30, %v2621_v38  ;;  %v3380_v40 = vpop.f32.mrb[57].mxu1  ;;  %v4201_v38 = vld [vmem:[#allocation8 + $0xa8] ss:$16 sps:$4 sm:$0xff]  }
0x178d   :  { %v2624_v7 = vpop.f32.mrb[58].mxu1  ;;  %v4202_v40 = vld [vmem:[#allocation8 + $0xc4] ss:$16 sps:$4 sm:$0xff]  }
0x178e   :  { %v3381_v34 = vpop.f32.mrb[59].mxu1  ;;  %v2627_v33 = vsel %vm1221_vm3, %v6509_v10, -inf  ;;  %v4203_v7 = vld [vmem:[#allocation8 + $0xcc] ss:$16 sps:$4 sm:$0xff]  }
0x178f   :  { %2628 = vmax.xlane.f32.xlu0 %v2627_v33  ;;  %v4204_v34 = vld [vmem:[#allocation8 + $0xc0] ss:$16 sps:$4 sm:$0xff]   ;;  %v4205_v33 = vld [vmem:[#allocation8 + $0xc8] ss:$16 sps:$4 sm:$0xff]  }
0x181c   :  { %v2629_v58 = vpop.xlane.xlu0 %2628 }
0x181d   :  { %vm2630_vm6 = vcmp.eq.f32.partialorder %v6509_v10, %v2629_v58  ;;  %v4206_v58 = vld [vmem:[#allocation8 + $0xe4] ss:$16 sps:$4 sm:$0xff]  }
0x181e   :  { %v2631_v15 = vsel %vm2630_vm6, %v7383_v28, 128.0 }
0x181f   :  { %v2632_v48 = vsel %vm1221_vm3, %v2631_v15, inf }
0x1820   :  { %2633 = vmin.xlane.f32.xlu1 %v2632_v48  ;;  %v4208_v48 = vld [vmem:[#allocation8 + $0xe0] ss:$16 sps:$4 sm:$0xff]  }
0x18ad   :  { %v2634_v11 = vpop.xlane.xlu1 %2633 }
0x18ae   :  { %vm2635_vm8 = vcmp.eq.f32.partialorder %v2631_v15, %v2634_v11  ;;  %v4207_v15 = vld [vmem:[#allocation8 + $0xec] ss:$16 sps:$4 sm:$0xff]   ;;  %v4212_v11 = vld [vmem:[#allocation8 + $0x100] ss:$16 sps:$4 sm:$0xff]  }
0x18af   :  { %v3186_v28 = vsel %vm2635_vm8, 1.0, %v6996_v3 }
0x18b0   :  { %v2651_v13 = vmul.f32 %v3186_v28, %v2648_v2  ;;  %v4213_v28 = vld [vmem:[#allocation8 + $0x108] ss:$16 sps:$4 sm:$0xff]  }
0x18b2   :  { %v2652_v27 = vadd.f32 %v2651_v13, %v6522_v36  ;;  %v4214_v13 = vld [vmem:[#allocation8 + $0x124] ss:$16 sps:$4 sm:$0xff]  }
0x18b4   :  { %v2653_v60 = vpack.c.bf16 %v2652_v27, %v2652_v27  ;;  %v4215_v27 = vld [vmem:[#allocation8 + $0x12c] ss:$16 sps:$4 sm:$0xff]  }
0x18b6   :  { %2687 = vmatmul.mubr.bf16.vlgmr.msra.gmra.mrb[60].mxu0 %v2653_v60  ;;  %2728 = vmatmul.mubr.bf16.vlgmr.msra.gmra.mrb[60].mxu1 %v2653_v60  ;;  %v4216_v60 = vld [vmem:[#allocation8 + $0x120] ss:$16 sps:$4 sm:$0xff]  }
0x18b7   :  { %2793 = vmatprep.mubr.bf16.mxu0 %v6496_v8  ;;  %2834 = vmatprep.mubr.bf16.mxu1 %v6496_v8  ;;  %v4190_v8 = vld [vmem:[#allocation8 + $0x64] ss:$16 sps:$4 sm:$0xff]  }
0x18b8   :  { %2762 = vmatpush1.bf16.msra.mxu0 %v4180_v41  ;;  %2803 = vmatpush1.bf16.msra.mxu1 %v4181_v21  ;;  %v4217_v41 = vld [vmem:[#allocation8 + $0x128] ss:$16 sps:$4 sm:$0xff]   ;;  %v4218_v21 = vld [vmem:[#allocation8 + $0x144] ss:$16 sps:$4 sm:$0xff]  }
0x18b9   :  { %2763 = vmatprep.subr.bf16.mxu0 %v4182_v43  ;;  %2804 = vmatprep.subr.bf16.mxu1 %v4183_v46  ;;  %v4219_v43 = vld [vmem:[#allocation8 + $0x14c] ss:$16 sps:$4 sm:$0xff]   ;;  %v4220_v46 = vld [vmem:[#allocation8 + $0x140] ss:$16 sps:$4 sm:$0xff]  }
0x18bc   :  { %2764 = vmatpush1.bf16.msra.mxu0 %v4184_v6  ;;  %2805 = vmatpush1.bf16.msra.mxu1 %v4185_v45  ;;  %v4221_v6 = vld [vmem:[#allocation8 + $0x148] ss:$16 sps:$4 sm:$0xff]   ;;  %v4222_v45 = vld [vmem:[#allocation8 + $0x164] ss:$16 sps:$4 sm:$0xff]  }
0x18bd   :  { %2765 = vmatprep.subr.bf16.mxu0 %v4186_v44  ;;  %2806 = vmatprep.subr.bf16.mxu1 %v4187_v54  ;;  %v4223_v44 = vld [vmem:[#allocation8 + $0x16c] ss:$16 sps:$4 sm:$0xff]   ;;  %v4224_v54 = vld [vmem:[#allocation8 + $0x160] ss:$16 sps:$4 sm:$0xff]  }
0x18c0   :  { %2766 = vmatpush1.bf16.msra.mxu0 %v4188_v0  ;;  %2807 = vmatpush1.bf16.msra.mxu1 %v4189_v62  ;;  %v4225_v0 = vld [vmem:[#allocation8 + $0x168] ss:$16 sps:$4 sm:$0xff]   ;;  %v4226_v62 = vld [vmem:[#allocation8 + $0x184] ss:$16 sps:$4 sm:$0xff]  }
0x18c1   :  { %2767 = vmatprep.subr.bf16.mxu0 %v4190_v8  ;;  %2808 = vmatprep.subr.bf16.mxu1 %v4191_v14  ;;  %v4227_v8 = vld [vmem:[#allocation8 + $0x18c] ss:$16 sps:$4 sm:$0xff]   ;;  %v4228_v14 = vld [vmem:[#allocation8 + $0x180] ss:$16 sps:$4 sm:$0xff]  }
0x18c4   :  { %2768 = vmatpush1.bf16.msra.mxu0 %v4192_v53  ;;  %2809 = vmatpush1.bf16.msra.mxu1 %v4193_v17  ;;  %v4229_v53 = vld [vmem:[#allocation8 + $0x188] ss:$16 sps:$4 sm:$0xff]   ;;  %v4230_v17 = vld [vmem:[#allocation8 + $0x1a4] ss:$16 sps:$4 sm:$0xff]  }
0x18c5   :  { %2769 = vmatprep.subr.bf16.mxu0 %v4194_v18  ;;  %2810 = vmatprep.subr.bf16.mxu1 %v4195_v63  ;;  %v4231_v18 = vld [vmem:[#allocation8 + $0x1ac] ss:$16 sps:$4 sm:$0xff]   ;;  %v4232_v63 = vld [vmem:[#allocation8 + $0x1a0] ss:$16 sps:$4 sm:$0xff]  }
0x18c8   :  { %2770 = vmatpush1.bf16.msra.mxu0 %v4196_v57  ;;  %2811 = vmatpush1.bf16.msra.mxu1 %v4197_v42  ;;  %v4233_v57 = vld [vmem:[#allocation8 + $0x1a8] ss:$16 sps:$4 sm:$0xff]   ;;  %v4234_v42 = vld [vmem:[#allocation8 + $0x1c4] ss:$16 sps:$4 sm:$0xff]  }
0x18c9   :  { %2771 = vmatprep.subr.bf16.mxu0 %v4198_v52  ;;  %2812 = vmatprep.subr.bf16.mxu1 %v4199_v32  ;;  %v4235_v52 = vld [vmem:[#allocation8 + $0x1cc] ss:$16 sps:$4 sm:$0xff]   ;;  %v4236_v32 = vld [vmem:[#allocation8 + $0x1c0] ss:$16 sps:$4 sm:$0xff]  }
0x18cc   :  { %2772 = vmatpush1.bf16.msra.mxu0 %v4200_v12  ;;  %2813 = vmatpush1.bf16.msra.mxu1 %v4201_v38  ;;  %v4237_v12 = vld [vmem:[#allocation8 + $0x1c8] ss:$16 sps:$4 sm:$0xff]   ;;  %v4238_v38 = vld [vmem:[#allocation8 + $0x1e4] ss:$16 sps:$4 sm:$0xff]  }
0x18cd   :  { %2773 = vmatprep.subr.bf16.mxu0 %v4202_v40  ;;  %2814 = vmatprep.subr.bf16.mxu1 %v4203_v7  ;;  %v4239_v40 = vld [vmem:[#allocation8 + $0x1ec] ss:$16 sps:$4 sm:$0xff]   ;;  %v4240_v7 = vld [vmem:[#allocation8 + $0x1e0] ss:$16 sps:$4 sm:$0xff]  }
0x18d0   :  { %2774 = vmatpush1.bf16.msra.mxu0 %v4204_v34  ;;  %2815 = vmatpush1.bf16.msra.mxu1 %v4205_v33  ;;  %v4241_v34 = vld [vmem:[#allocation8 + $0x1e8] ss:$16 sps:$4 sm:$0xff]  }
0x18d1   :  { %2775 = vmatprep.subr.bf16.mxu0 %v4206_v58  ;;  %2816 = vmatprep.subr.bf16.mxu1 %v4207_v15 }
0x18d4   :  { %2776 = vmatpush1.bf16.msra.mxu0 %v4208_v48  ;;  %2817 = vmatpush1.bf16.msra.mxu1 %v4209_v23 }
0x18d5   :  { %2777 = vmatprep.subr.bf16.mxu0 %v4210_v47  ;;  %2818 = vmatprep.subr.bf16.mxu1 %v4211_v29 }
0x18d8   :  { %2778 = vmatpush1.bf16.msra.mxu0 %v4212_v11  ;;  %2819 = vmatpush1.bf16.msra.mxu1 %v4213_v28 }
0x18d9   :  { %2779 = vmatprep.subr.bf16.mxu0 %v4214_v13  ;;  %2820 = vmatprep.subr.bf16.mxu1 %v4215_v27 }
0x18dc   :  { %2780 = vmatpush1.bf16.msra.mxu0 %v4216_v60  ;;  %2821 = vmatpush1.bf16.msra.mxu1 %v4217_v41 }
0x18dd   :  { %2781 = vmatprep.subr.bf16.mxu0 %v4218_v21  ;;  %2822 = vmatprep.subr.bf16.mxu1 %v4219_v43 }
0x18e0   :  { %2782 = vmatpush1.bf16.msra.mxu0 %v4220_v46  ;;  %2823 = vmatpush1.bf16.msra.mxu1 %v4221_v6 }
0x18e1   :  { %2783 = vmatprep.subr.bf16.mxu0 %v4222_v45  ;;  %2824 = vmatprep.subr.bf16.mxu1 %v4223_v44 }
0x18e4   :  { %2784 = vmatpush1.bf16.msra.mxu0 %v4224_v54  ;;  %2825 = vmatpush1.bf16.msra.mxu1 %v4225_v0 }
0x18e5   :  { %2785 = vmatprep.subr.bf16.mxu0 %v4226_v62  ;;  %2826 = vmatprep.subr.bf16.mxu1 %v4227_v8 }
0x18e8   :  { %2786 = vmatpush1.bf16.msra.mxu0 %v4228_v14  ;;  %2827 = vmatpush1.bf16.msra.mxu1 %v4229_v53 }
0x18e9   :  { %2787 = vmatprep.subr.bf16.mxu0 %v4230_v17  ;;  %2828 = vmatprep.subr.bf16.mxu1 %v4231_v18 }
0x18ec   :  { %2788 = vmatpush1.bf16.msra.mxu0 %v4232_v63  ;;  %2829 = vmatpush1.bf16.msra.mxu1 %v4233_v57 }
0x18ed   :  { %2789 = vmatprep.subr.bf16.mxu0 %v4234_v42  ;;  %2830 = vmatprep.subr.bf16.mxu1 %v4235_v52 }
0x18f0   :  { %2790 = vmatpush1.bf16.msra.mxu0 %v4236_v32  ;;  %2831 = vmatpush1.bf16.msra.mxu1 %v4237_v12 }
0x18f1   :  { %2791 = vmatprep.subr.bf16.mxu0 %v4238_v38  ;;  %2832 = vmatprep.subr.bf16.mxu1 %v4239_v40 }
0x18f4   :  { %2792 = vmatpush1.bf16.msra.mxu0 %v4240_v7  ;;  %2833 = vmatpush1.bf16.msra.mxu1 %v4241_v34 }
0x18f5   :  { %3382 = vmatprep.subr.bf16.mxu0 %v6996_v3 }
0x1989   :  { %v2688_v33 = vpop.f32.mrb[60].mxu0  ;;  %v2729_v58 = vpop.f32.mrb[60].mxu1 }
0x198a   :  { %v2689_v15 = vadd.f32 %v2688_v33, %v7078_v20  ;;  %v2690_v48 = vpop.f32.mrb[61].mxu0  ;;  %v2731_v23 = vpop.f32.mrb[61].mxu1  ;;  %v2730_v41 = vadd.f32 %v2729_v58, %v7080_v31 }
0x198b   :  { %v2691_v47 = vadd.f32 %v2690_v48, %v7079_v61  ;;  %v2692_v29 = vpop.f32.mrb[62].mxu0  ;;  %v2733_v11 = vpop.f32.mrb[62].mxu1  ;;  %v2732_v21 = vadd.f32 %v2731_v23, %v4889_v59 }
0x198c   :  { %v3190_v28 = vmul.f32 -1.442695, %v2689_v15  ;;  %v2693_v13 = vpop.f32.mrb[63].mxu0  ;;  %v2734_v27 = vpop.f32.mrb[63].mxu1  ;;  %v3192_v43 = vmul.f32 -1.442695, %v2730_v41 }
0x198d   :  { %v3191_v60 = vmul.f32 -1.442695, %v2691_v47 }
0x198e   :  { %3808 = vpow2.f32 %v3190_v28 }
0x198f   :  { %3810 = vpow2.f32 %v3191_v60 }
0x1990   :  { %3812 = vtanh.f32 %v2732_v21  ;;  %v7447_v21 = vld [vmem:[#allocation16_spill] sm:$0xff] }
0x1991   :  { %3814 = vpow2.f32 %v3192_v43  ;;  %v7448_v43 = vstv %s5061_s0  ;;  %s4375_s0 = smov [#allocation11]  }
0x1992   :  { %s2975_s4 = sshll.u32 %s4375_s0, 4  ;;  %s2976_s4 = int_to_ptr.vmem [resolvable:$true] %s2975_s4 }
0x1993   :  { %s4332_s18 = scalar_lea.vmem %s2976_s4, 128  ;;  %p4337_p7 = scmp.lt.s32.totalorder %s2976_s4, %s2976_s4 }
0x1994   :  { %p4333_p6 = scmp.ne.s32.totalorder %s2976_s4, %s4332_s18  ;;  %p4338_p8 = scmp.lt.s32.totalorder %s4332_s18, %s4332_s18 }
0x1996   :  { %p4339_p9 = por %p4338_p8, %p4337_p7 }
0x1998   :  { %v3809_v46 = vpop.eup %3808  ;;  %p4340_p10 = pnand %p4339_p9, %p4333_p6 }
0x1999   :  { %v2745_v6 = vadd.f32 1.0, %v3809_v46  ;;  %v3811_v20 = vpop.eup %3810  ;;  %v1244_v46 = vmul.f32 %v7448_v43, %v7447_v21 }
0x199a   :  { %v2746_v61 = vadd.f32 1.0, %v3811_v20  ;;  %v3813_v45 = vpop.eup %3812  ;;  %v7450_v20 = vstv %s5369_s19 }
0x199b   :  { %3816 = vrcp.f32 %v2745_v6  ;;  %v3815_v44 = vpop.eup %3814  ;;  %v7449_v6 = vld [vmem:[#allocation48_spill] sm:$0xff] }
0x199c   :  { %3818 = vrcp.f32 %v2746_v61  ;;  %v2747_v8 = vadd.f32 1.0, %v3815_v44  ;;  %v1525_v61 = vmul.f32 %v7450_v20, %v7449_v6  ;;  %v7451_v44 = vld [vmem:[#allocation20_spill] sm:$0xff] }
0x199e   :  { %3820 = vrcp.f32 %v2747_v8  ;;  %v7454_v8 = vstv %s6030_s2 }
0x19a5   :  { %v3817_v54 = vpop.eup %3816 }
0x19a6   :  { %v2756_v0 = vmul.f32 %v3817_v54, %v3813_v45  ;;  %v3819_v62 = vpop.eup %3818  ;;  %v2909_v45 = vstv %s3196_s16  ;;  %v7452_v54 = vstv %s5710_s26 }
0x19a7   :  { %v2755_v14 = vmul.f32 %v3819_v62, %v6451_v49  ;;  %v7453_v62 = vld [vmem:[#allocation52_spill] sm:$0xff]  ;;  %vm2910_vm10 = vcmp.eq.s32.totalorder %v7384_v4, %v2909_v45  ;;  %v2989_v4 = vsel %vm4618_vm0, 1.0, %v6996_v3  ;;  %vm2949_vm0 = vcmask 1044480  }
0x19a8   :  { %v3821_v59 = vpop.eup %3820 }
0x19a9   :  { %v6535_v31 = vadd.f32 %v2756_v0, %v2755_v14  ;;  %v1806_v0 = vmul.f32 %v7452_v54, %v7451_v44  ;;  %v2087_v14 = vmul.f32 %v7454_v8, %v7453_v62 }
0x19ab   :  { %3822 = vtanh.f32 %v6535_v31  ;;  %v2960_v13 = vrot.slane %v6535_v31, 6  ;;  %v7455_v31 = vld [vmem:[#allocation18_spill] sm:$0xff] }
0x19b5   :  { %v3823_v53 = vpop.eup %3822 }
0x19b6   :  { %v6538_v17 = vmul.f32 %v3823_v53, %v3821_v59  ;;  %v1245_v59 = vadd.f32 %v1244_v46, %v7455_v31  ;;  %v2368_v53 = vmul.f32 %v2367_v19, %v6363_v37 }
0x19b8   :  { %v2760_v18 = vpack.c.bf16 %v6538_v17, %v6538_v17 }
0x19ba   :  { %2794 = vmatmul.mubr.bf16.vlgmr.msra.gmra.mrb[64].mxu0 %v2760_v18  ;;  %2835 = vmatmul.mubr.bf16.vlgmr.msra.gmra.mrb[64].mxu1 %v2760_v18 }
0x19bb   :  { %3383 = vmatpush3.bf16.msra.mxu0 %v6459_v56  ;;  %3398 = vmatprep.mubr.msk.bf16.mxu0 %vm4374_vm2, %v6996_v3  ;;  %vm2943_vm2 = vcmask 1041408  }
0x19bc   :  { %3384 = vmatprep.subr.bf16.mxu0 %v6996_v3 }
0x19bf   :  { %3385 = vmatpush3.bf16.msra.mxu0 %v6465_v5 }
0x19c0   :  { %3386 = vmatprep.subr.bf16.mxu0 %v6996_v3 }
0x19c3   :  { %3387 = vmatpush3.bf16.msra.mxu0 %v6469_v9 }
0x19c4   :  { %3388 = vmatprep.subr.bf16.mxu0 %v6996_v3 }
0x19c7   :  { %3389 = vmatpush3.bf16.msra.mxu0 %v6473_v35 }
0x19c8   :  { %3390 = vmatprep.subr.bf16.mxu0 %v6996_v3 }
0x19cb   :  { %3391 = vmatpush3.bf16.msra.mxu0 %v6477_v1 }
0x19cc   :  { %3392 = vmatprep.subr.bf16.mxu0 %v6996_v3 }
0x19cf   :  { %3393 = vmatpush3.bf16.msra.mxu0 %v6265_v25 }
0x19d0   :  { %3394 = vmatprep.subr.bf16.mxu0 %v6996_v3 }
0x19d3   :  { %3395 = vmatpush3.bf16.msra.mxu0 %v6483_v16 }
0x19d4   :  { %3396 = vmatprep.subr.bf16.mxu0 %v6996_v3 }
0x19d7   :  { %3397 = vmatpush3.bf16.msra.mxu0 %v6275_v39 }
0x1a8d   :  { %v2795_v49 = vpop.f32.mrb[64].mxu0  ;;  %v2836_v56 = vpop.f32.mrb[64].mxu1 }
0x1a8e   :  { %v2796_v5 = vadd.f32 %v2795_v49, %v4971_v22  ;;  %v2797_v9 = vpop.f32.mrb[65].mxu0  ;;  %v2838_v35 = vpop.f32.mrb[65].mxu1  ;;  %v2837_v16 = vadd.f32 %v2836_v56, %v4981_v50  ;;  %v2649_v49 = vmul.f32 %v2648_v2, %v6509_v10  ;;  %v7457_v56 = vld [vmem:[#allocation21_spill] sm:$0xff] }
0x1a8f   :  { %v2798_v1 = vadd.f32 %v2797_v9, %v4975_v26  ;;  %v2799_v63 = vpop.f32.mrb[66].mxu0  ;;  %v2840_v57 = vpop.f32.mrb[66].mxu1  ;;  %v2839_v39 = vadd.f32 %v2838_v35, %v4985_v51  ;;  %v7458_v9 = vld [vmem:[#allocation53_spill] sm:$0xff] }
0x1a90   :  { %v3193_v42 = vmul.f32 -1.442695, %v2796_v5  ;;  %v2800_v25 = vpop.f32.mrb[67].mxu0  ;;  %v2841_v52 = vpop.f32.mrb[67].mxu1  ;;  %v3195_v12 = vmul.f32 -1.442695, %v2837_v16  ;;  %v1807_v5 = vadd.f32 %v1806_v0, %v7457_v56  ;;  %v2088_v35 = vadd.f32 %v2087_v14, %v7458_v9 }
0x1a91   :  { %v3194_v32 = vmul.f32 -1.442695, %v2798_v1  ;;  %v3197_v1 = vsel %vm2910_vm10, 1.0, %v6996_v3  ;;  %v2915_v63 = vstv %s2914_s1  ;;  %v2922_v57 = vrot.slane %v1245_v59, 7 }
0x1a92   :  { %3824 = vpow2.f32 %v3193_v42  ;;  %v2369_v42 = vadd.f32 %v2368_v53, %v6376_v55  ;;  %v2650_v25 = vadd.f32 %v2649_v49, %v6522_v36  ;;  %v2928_v2 = vrot.slane %v1807_v5, 5 }
0x1a93   :  { %3826 = vpow2.f32 %v3194_v32  ;;  %v2916_v16 = vmul.f32 %v3197_v1, %v2915_v63 }
0x1a94   :  { %3828 = vtanh.f32 %v2839_v39 }
0x1a95   :  { %3830 = vpow2.f32 %v3195_v12  ;;  %v2931_v12 = vrot.slane %v2088_v35, 4 }
0x1a9c   :  { %v3825_v38 = vpop.eup %3824 }
0x1a9d   :  { %v2852_v40 = vadd.f32 1.0, %v3825_v38  ;;  %v3827_v22 = vpop.eup %3826 }
0x1a9e   :  { %v2853_v26 = vadd.f32 1.0, %v3827_v22  ;;  %v3829_v7 = vpop.eup %3828  ;;  %v2934_v22 = vrot.slane %v2369_v42, 3 }
0x1a9f   :  { %3832 = vrcp.f32 %v2852_v40  ;;  %v3831_v34 = vpop.eup %3830  ;;  %v2942_v40 = vsel %vm1221_vm3, %v2989_v4, %v2922_v57 }
0x1aa0   :  { %3834 = vrcp.f32 %v2853_v26  ;;  %v2854_v48 = vadd.f32 1.0, %v3831_v34 }
0x1aa2   :  { %3836 = vrcp.f32 %v2854_v48 }
0x1aa9   :  { %v3833_v33 = vpop.eup %3832 }
0x1aaa   :  { %v2863_v58 = vmul.f32 %v3833_v33, %v3829_v7  ;;  %v3835_v15 = vpop.eup %3834  ;;  %v2937_v7 = vrot.slane %v2650_v25, 2 }
0x1aab   :  { %v2862_v23 = vmul.f32 %v3835_v15, %v6493_v24 }
0x1aac   :  { %v3837_v51 = vpop.eup %3836 }
0x1aad   :  { %v2864_v50 = vadd.f32 %v2863_v58, %v2862_v23 }
0x1aaf   :  { %3838 = vtanh.f32 %v2864_v50  ;;  %v2963_v27 = vrot.slane %v2864_v50, 5 }
0x1ab9   :  { %v3839_v47 = vpop.eup %3838 }
0x1aba   :  { %v2866_v29 = vmul.f32 %v3839_v47, %v3837_v51 }
0x1abc   :  { %v2867_v11 = vpack.c.bf16 %v2866_v29, %v2866_v29  ;;  %v2957_v28 = vrot.slane %v2866_v29, 7 }
0x1abe   :  { %3399 = vmatmul.mubr.bf16.vlgmr.msra.gmra.mrb[68].mxu0 %v2867_v11  ;;  %v2965_v24 = vsel %vm1221_vm3, %v6538_v17, %v2957_v28  ;;  %v7456_v17 = vld [vmem:[#allocation49_spill] sm:$0xff] }
0x1abf   :  { %v2966_v60 = vsel %vm2943_vm2, %v2965_v24, %v2960_v13  ;;  %v1526_v18 = vadd.f32 %v1525_v61, %v7456_v17 }
0x1ac0   :  { %v2967_v41 = vsel %vm2945_vm9, %v2966_v60, %v2963_v27 }
0x1ac1   :  { %2968 = vst [vmem:[%s6625_s9] sm:$0xf] %v2967_v41  ;;  %s2917_s9 = ssub.f32 1.0, %s2914_s1  ;;  %v2925_v19 = vrot.slane %v1526_v18, 6 }
0x1ac3   :  { %v2918_v10 = vstv %s2917_s9  ;;  %v2944_v3 = vsel %vm2943_vm2, %v2942_v40, %v2925_v19 }
0x1ac4   :  { %v2946_v36 = vsel %vm2945_vm9, %v2944_v3, %v2928_v2 }
0x1b91   :  { %v2902_v52 = vpop.f32.mrb[68].mxu0 }
0x1b92   :  { %v2903_v32 = vadd.f32 %v6360_v30, %v2902_v52  ;;  %v3400_v39 = vpop.f32.mrb[69].mxu0  ;;  %v2948_v30 = vsel %vm2947_vm11, %v2946_v36, %v2931_v12 }
0x1b93   :  { %v2905_v38 = vpop.f32.mrb[70].mxu0  ;;  %v2950_v58 = vsel %vm2949_vm0, %v2948_v30, %v2934_v22 }
0x1b94   :  { %v2919_v55 = vmul.f32 %v2918_v10, %v2903_v32  ;;  %v3401_v26 = vpop.f32.mrb[71].mxu0  ;;  %v2952_v15 = vsel %vm2951_vm12, %v2950_v58, %v2937_v7 }
0x1b96   :  { %v2920_v34 = vadd.f32 %v2919_v55, %v2916_v16 }
0x1b98   :  { %v2940_v33 = vrot.slane %v2920_v34, 1 }
0x1b9a   :  { %v2954_v48 = vsel %vm2953_vm13, %v2952_v15, %v2940_v33 }
0x1b9b   :  { %2955 = vst [vmem:[#allocation11] sm:$0xff] %v2954_v48 }
0x1b9c   :  { %4343 = shalt.err (!%p4340_p10)
}
0x1b9d   :  { %s4344_s22 = scalar_lea.hbm %s6624_s8, 128 }
0x1b9e   :  { %p4345_p11 = scmp.ne.s32.totalorder %s6624_s8, %s4344_s22  ;;  %p4348_p12 = scmp.lt.u32.totalorder %s4344_s22, %s6624_s8 }
0x1ba0   :  { %p4350_p13 = pnand %p4348_p12, %p4345_p11 }
0x1ba2   :  { %4353 = shalt.err (!%p4350_p13)
}
0x1ba3   :  { %2978 = dma.vmem_to_hbm [thread:$0]  %s2976_s4, 128, %s6624_s8, [#allocation7]  }
0x1ba4   :  { %4360 = dma.done.wait [#allocation7], 128  }
0x1ba5   :  { %4361 = vsyncadd [#allocation7], 4294967168 }
0x1ba6   :  { %2986 = vsyncpa [#allocation6], 1 }
0x1ba7   :  { %2987 = vsyncpa [#allocation9], 1 }
0x1ba8   :  { %2988 = vsyncpa [#allocation7], 1 }

</bundles_post_ra>
